<compile_context>
chip_gen: v6e
topology: v6e:2x2x1
jax: 0.10.0
libtpu: 0.0.40
codegen_flags: <defaults>
</compile_context>

<pallas_src>
import functools

import jax
import jax.numpy as jnp
from jax import lax
from jax.experimental import pallas as pl
from jax.experimental.pallas import tpu as pltpu


def _round_up(x, m):
    return (x + m - 1) // m * m


def _largest_divisor_leq(n, cap):
    for d in range(max(1, min(n, cap)), 0, -1):
        if n % d == 0:
            return d
    return 1


def _vmem_limit_bytes():
    """Per-kernel VMEM budget derived from the chip (v5e/v6e: 128 MiB, v7x: 64 MiB)."""
    cap = 64 * 1024 * 1024
    try:
        cap = int(getattr(pltpu.get_tpu_info(), "vmem_capacity_bytes", cap))
    except Exception:
        pass
    return min((cap * 5) // 8, 96 * 1024 * 1024)


def _const_spec(block_shape, index_map):
    """BlockSpec for a grid-invariant block: request single buffering (saves VMEM)."""
    try:
        return pl.BlockSpec(block_shape, index_map, pipeline_mode=pl.Buffered(1))
    except Exception:  # older jax without pipeline_mode on BlockSpec
        return pl.BlockSpec(block_shape, index_map)


# --------------------------- Embedding row gather -----------------------------
def _embedding_gather_kernel(ids_ref, table_ref, out_ref, sems, *, rows):
    """Gather `rows` embedding rows via manual DMA, straight into the output block.

    ids_ref:   SMEM (N,) int32 (scalar-prefetched token ids, time-major flat)
    table_ref: HBM  (V, E) embedding table (memory_space=pl.ANY, no auto-DMA)
    out_ref:   VMEM (rows, E) output block (DMA destination — no scratch bounce)
    sems:      DMA semaphores (rows,)
    """
    base = pl.program_id(0) * rows
    copies = []
    for r in range(rows):                       # static, unrolled: many DMAs in flight
        idx = ids_ref[base + r]
        cp = pltpu.make_async_copy(table_ref.at[idx], out_ref.at[r], sems.at[r])
        cp.start()
        copies.append(cp)
    for cp in copies:
        cp.wait()


def embedding_lookup(ids_flat, table):
    """ids_flat: (N,) int32 with N % 8 == 0; table: (V, E). Returns (N, E)."""
    n = ids_flat.shape[0]
    assert n % 8 == 0
    _, e = table.shape
    rows = 8 * _largest_divisor_leq(n // 8, 8)     # 8..64 rows of DMA per grid step
    kernel = functools.partial(_embedding_gather_kernel, rows=rows)
    return pl.pallas_call(
        kernel,
        out_shape=jax.ShapeDtypeStruct((n, e), table.dtype),
        grid_spec=pltpu.PrefetchScalarGridSpec(
            num_scalar_prefetch=1,
            grid=(n // rows,),
            in_specs=[pl.BlockSpec(memory_space=pl.ANY)],
            out_specs=pl.BlockSpec((rows, e), lambda i, ids: (i, 0)),
            scratch_shapes=[pltpu.SemaphoreType.DMA((rows,))]),
        compiler_params=pltpu.CompilerParams(
            dimension_semantics=("parallel",)),
    )(ids_flat.astype(jnp.int32), table)


# -------------------- Hoisted layer-0 input projection (X @ W_ih + b) ---------
def _input_proj_kernel(x_ref, w_ref, b_ref, out_ref):
    x = x_ref[...].astype(w_ref.dtype)
    out_ref[...] = (jnp.dot(x, w_ref[...], preferred_element_type=jnp.float32)
                    + b_ref[...]).astype(out_ref.dtype)


def input_projection(x, w_t, bias, *, act_dtype, vmem_limit):
    """x: (N, E); w_t: (E, 4H); bias: (1, 4H).  Returns (N, 4H) in act_dtype."""
    n, e = x.shape
    four_h = w_t.shape[1]
    act_bytes = jnp.dtype(act_dtype).itemsize
    row_unit = 8 if act_bytes >= 4 else 16          # keep bf16 output blocks tile-aligned
    assert n % row_unit == 0
    fixed = e * four_h * jnp.dtype(w_t.dtype).itemsize + four_h * 4
    per_row = 2 * e * x.dtype.itemsize + 2 * four_h * act_bytes   # double-buffered x / out
    budget = int(vmem_limit * 0.8)
    cap_rows = max(row_unit, min(512, (budget - fixed) // max(1, per_row)))
    tm = row_unit * _largest_divisor_leq(n // row_unit, max(1, cap_rows // row_unit))
    # TODO(synk): for very large (E,4H) weights (H >= 2048 f32), add an N-axis grid so the
    #             weight is tiled instead of fully VMEM-resident (v7x 64 MiB).
    return pl.pallas_call(
        _input_proj_kernel,
        out_shape=jax.ShapeDtypeStruct((n, four_h), act_dtype),
        grid_spec=pltpu.PrefetchScalarGridSpec(
            num_scalar_prefetch=0,
            grid=(n // tm,),
            in_specs=[pl.BlockSpec((tm, e), lambda i: (i, 0)),
                      _const_spec((e, four_h), lambda i: (0, 0)),
                      _const_spec((1, four_h), lambda i: (0, 0))],
            out_specs=pl.BlockSpec((tm, four_h), lambda i: (i, 0))),
        compiler_params=pltpu.CompilerParams(
            dimension_semantics=("parallel",),
            vmem_limit_bytes=vmem_limit),
    )(x, w_t, bias)


# ----------------------------- LSTM layer (recurrence) ------------------------
def _lstm_layer_kernel(*refs, hidden_dim, chunk, batch, fuse):
    if fuse:
        (gates_ref, whh_ref, wihn_ref, bn_ref,
         gnext_ref, hn_ref, cn_ref, h_sc, c_sc, hbuf_sc) = refs
    else:
        (gates_ref, whh_ref, out_ref, hn_ref, cn_ref, h_sc, c_sc) = refs

    H = hidden_dim
    c_idx = pl.program_id(0)

    @pl.when(c_idx == 0)
    def _():
        h_sc[...] = jnp.zeros_like(h_sc)
        c_sc[...] = jnp.zeros_like(c_sc)

    def step(t, carry):
        # Gate pre-activations for timestep t: hoisted x@W_ih + bias (from HBM) + h@W_hh.
        g = gates_ref[t].astype(jnp.float32) + jnp.dot(
            h_sc[...].astype(whh_ref.dtype), whh_ref[...],
            preferred_element_type=jnp.float32)                    # (Bp, 4H), order (i,f,o,g)
        s = jax.nn.sigmoid(g[:, :3 * H])        # one contiguous EUP slab for i,f,o
        i_g = s[:, 0 * H:1 * H]
        f_g = s[:, 1 * H:2 * H]
        o_g = s[:, 2 * H:3 * H]
        g_g = jnp.tanh(g[:, 3 * H:4 * H])
        c_new = f_g * c_sc[...] + i_g * g_g     # f32 elementwise (fast on v5e too)
        h_new = o_g * jnp.tanh(c_new)
        c_sc[...] = c_new
        h_sc[...] = h_new
        if fuse:
            row = pl.multiple_of(t * batch, batch)
            hbuf_sc[pl.ds(row, batch), :] = h_new
        else:
            out_ref[t] = h_new.astype(out_ref.dtype)
        return carry

    # Partial unroll: cross-timestep LLO visibility (VPU/EUP tail overlaps next MXU push).
    lax.fori_loop(0, chunk, step, 0, unroll=min(8, chunk))

    if fuse:
        # Fused next-layer input projection: one chunk-sized MXU matmul instead of a
        # (T,Bp,H) HBM write+read and a separate kernel launch.
        gnext_ref[...] = (
            jnp.dot(hbuf_sc[...].astype(wihn_ref.dtype), wihn_ref[...],
                    preferred_element_type=jnp.float32)
            + bn_ref[...]).astype(gnext_ref.dtype)

    @pl.when(c_idx == pl.num_programs(0) - 1)
    def _():
        hn_ref[...] = h_sc[...]
        cn_ref[...] = c_sc[...]


def lstm_layer(gates_tb4h, whh_t, hidden_dim, *, next_proj, act_dtype, vmem_limit):
    """One LSTM layer over precomputed gate pre-activations.

    gates_tb4h: (T, Bp, 4H) = x @ W_ih^T + bias (time-major, gate columns i,f,o,g).
    whh_t:      (H, 4H) recurrent weight (same column order).
    next_proj:  None, or (W_ih_{l+1}^T (H, 4H'), bias_{l+1} (1, 4H')) — if given, emits the
                next layer's gate pre-activations (T*Bp, 4H') instead of the h sequence.
    Returns (seq (T,Bp,H) f32 | gates_next (T*Bp,4H') act_dtype, h_n (Bp,H), c_n (Bp,H)).
    """
    T, Bp, four_h = gates_tb4h.shape
    H = hidden_dim
    act_bytes = jnp.dtype(act_dtype).itemsize
    w_bytes = jnp.dtype(whh_t.dtype).itemsize

    # VMEM-budget-derived chunk (v7x 64 MiB vs v5e/v6e 128 MiB handled via vmem_limit).
    fixed = H * four_h * w_bytes + 2 * Bp * H * 4
    per_chunk = 2 * Bp * four_h * act_bytes                 # gates input, double-buffered
    if next_proj is not None:
        wihn_t, bn = next_proj
        four_hn = wihn_t.shape[1]
        fixed += H * four_hn * w_bytes + four_hn * 4
        per_chunk += 2 * Bp * four_hn * act_bytes + Bp * H * 4   # gates_next out + h chunk buf
    else:
        per_chunk += 2 * Bp * H * 4                         # f32 sequence output blocks
    budget = int(vmem_limit * 0.8)
    chunk_cap = max(1, (budget - fixed) // max(1, per_chunk))
    chunk = _largest_divisor_leq(T, min(int(chunk_cap), 256))

    kernel = functools.partial(_lstm_layer_kernel, hidden_dim=H, chunk=chunk,
                               batch=Bp, fuse=next_proj is not None)

    in_specs = [pl.BlockSpec((chunk, Bp, four_h), lambda c: (c, 0, 0)),
                _const_spec((H, four_h), lambda c: (0, 0))]
    scratch = [pltpu.VMEM((Bp, H), jnp.float32),
               pltpu.VMEM((Bp, H), jnp.float32)]
    operands = [gates_tb4h, whh_t]

    if next_proj is not None:
        in_specs += [_const_spec((H, four_hn), lambda c: (0, 0)),
                     _const_spec((1, four_hn), lambda c: (0, 0))]
        operands += [wihn_t, bn]
        out_shape = (jax.ShapeDtypeStruct((T * Bp, four_hn), act_dtype),
                     jax.ShapeDtypeStruct((Bp, H), jnp.float32),
                     jax.ShapeDtypeStruct((Bp, H), jnp.float32))
        out_specs = (pl.BlockSpec((chunk * Bp, four_hn), lambda c: (c, 0)),
                     pl.BlockSpec((Bp, H), lambda c: (0, 0)),
                     pl.BlockSpec((Bp, H), lambda c: (0, 0)))
        scratch += [pltpu.VMEM((chunk * Bp, H), jnp.float32)]
    else:
        out_shape = (jax.ShapeDtypeStruct((T, Bp, H), jnp.float32),
                     jax.ShapeDtypeStruct((Bp, H), jnp.float32),
                     jax.ShapeDtypeStruct((Bp, H), jnp.float32))
        out_specs = (pl.BlockSpec((chunk, Bp, H), lambda c: (c, 0, 0)),
                     pl.BlockSpec((Bp, H), lambda c: (0, 0)),
                     pl.BlockSpec((Bp, H), lambda c: (0, 0)))

    return pl.pallas_call(
        kernel,
        out_shape=out_shape,
        grid_spec=pltpu.PrefetchScalarGridSpec(
            num_scalar_prefetch=0,
            grid=(T // chunk,),
            in_specs=in_specs,
            out_specs=out_specs,
            scratch_shapes=scratch),
        compiler_params=pltpu.CompilerParams(
            dimension_semantics=("arbitrary",),     # time is sequential (carried h/c)
            vmem_limit_bytes=vmem_limit),
    )(*operands)


# ------------------------------ Encoder wrapper --------------------------------
def _reorder_ifgo_to_ifog(w, H):
    """Reorder gate blocks along the last axis from PyTorch (i,f,g,o) to (i,f,o,g)."""
    return jnp.concatenate([w[..., 0 * H:2 * H], w[..., 3 * H:4 * H], w[..., 2 * H:3 * H]],
                           axis=-1)


class Encoder:
    def __init__(self, vocab_size, embedding_dim, hidden_dim, num_layers, dropout,
                 key, compute_dtype=jnp.bfloat16):
        self.vocab_size = vocab_size
        self.embedding_dim = embedding_dim
        self.hidden_dim = hidden_dim
        self.num_layers = num_layers
        self.dropout = dropout                 # eval-mode: unused (no-op)
        self.compute_dtype = compute_dtype     # MXU-operand + inter-layer activation dtype
        self.act_dtype = compute_dtype
        self.vmem_limit = _vmem_limit_bytes()
        # Batch sublane padding: f32 tiles are 8 rows; bf16 packed tiles are 16 rows.
        self.batch_pad = 8 if jnp.dtype(self.act_dtype).itemsize >= 4 else 16

        k_emb, key = jax.random.split(key)
        # nn.Embedding default init: N(0, 1).  Kept f32 so the row-gather DMA stays whole-word.
        # TODO(synk): pack bf16 rows 2-per-u32 (pltpu.bitcast trick) to halve gather bandwidth.
        self.embedding = jax.random.normal(
            k_emb, (vocab_size, embedding_dim), dtype=jnp.float32)

        # nn.LSTM default init: U(-1/sqrt(H), 1/sqrt(H))
        bound = 1.0 / float(hidden_dim) ** 0.5
        self.lstm_params = []   # raw PyTorch-layout f32 params (pure-JAX reference)
        self.layers = []        # prepped once: (W_ih^T, W_hh^T, combined bias), order (i,f,o,g)
        for layer in range(num_layers):
            in_dim = embedding_dim if layer == 0 else hidden_dim
            key, k1, k2, k3, k4 = jax.random.split(key, 5)
            w_ih = jax.random.uniform(k1, (4 * hidden_dim, in_dim),
                                      minval=-bound, maxval=bound, dtype=jnp.float32)
            w_hh = jax.random.uniform(k2, (4 * hidden_dim, hidden_dim),
                                      minval=-bound, maxval=bound, dtype=jnp.float32)
            b_ih = jax.random.uniform(k3, (4 * hidden_dim,),
                                      minval=-bound, maxval=bound, dtype=jnp.float32)
            b_hh = jax.random.uniform(k4, (4 * hidden_dim,),
                                      minval=-bound, maxval=bound, dtype=jnp.float32)
            self.lstm_params.append((w_ih, w_hh, b_ih, b_hh))
            self.layers.append((
                _reorder_ifgo_to_ifog(jnp.transpose(w_ih), hidden_dim).astype(compute_dtype),
                _reorder_ifgo_to_ifog(jnp.transpose(w_hh), hidden_dim).astype(compute_dtype),
                _reorder_ifgo_to_ifog((b_ih + b_hh).reshape(1, 4 * hidden_dim),
                                      hidden_dim).astype(jnp.float32),
            ))

    def __call__(self, x_bt):
        # x_bt: (B, T) int32 token ids
        B, T = x_bt.shape
        H = self.hidden_dim
        Bp = _round_up(B, self.batch_pad)
        x_pad = jnp.pad(x_bt.astype(jnp.int32), ((0, Bp - B), (0, 0)))
        ids_tm = jnp.transpose(x_pad).reshape(T * Bp)          # time-major flat ids
        # PyTorch nn.Embedding raises on out-of-range ids; clamp instead of an OOB DMA.
        ids_tm = jnp.clip(ids_tm, 0, self.vocab_size - 1)
        emb = embedding_lookup(ids_tm, self.embedding)         # (T*Bp, E) f32, time-major

        wih0_t, _, b0 = self.layers[0]
        gates = input_projection(emb, wih0_t, b0, act_dtype=self.act_dtype,
                                 vmem_limit=self.vmem_limit)   # (T*Bp, 4H)

        h_fin, c_fin = [], []
        seq = None
        for li in range(self.num_layers):
            _, whh_t, _ = self.layers[li]
            gates3 = gates.reshape(T, Bp, 4 * H)               # free row-major relabel
            if li == self.num_layers - 1:
                seq, h_n, c_n = lstm_layer(gates3, whh_t, H, next_proj=None,
                                           act_dtype=self.act_dtype,
                                           vmem_limit=self.vmem_limit)
            else:
                # TODO(synk): inter-layer dropout (training mode) not implemented.
                wihn_t, _, bn = self.layers[li + 1]
                gates, h_n, c_n = lstm_layer(gates3, whh_t, H, next_proj=(wihn_t, bn),
                                             act_dtype=self.act_dtype,
                                             vmem_limit=self.vmem_limit)
            h_fin.append(h_n[:B])
            c_fin.append(c_n[:B])

        output = jnp.transpose(seq, (1, 0, 2))[:B]             # (B, T, H) batch_first
        h_n = jnp.stack(h_fin, axis=0)                         # (L, B, H)
        c_n = jnp.stack(c_fin, axis=0)                         # (L, B, H)
        return output, (h_n, c_n)


# ------------------------------ pure-JAX reference -----------------------------
def _reference_forward(enc, x_bt):
    emb = enc.embedding.astype(jnp.float32)[x_bt]              # (B, T, E)
    x = jnp.transpose(emb, (1, 0, 2))                          # (T, B, E)
    H = enc.hidden_dim
    hs, cs = [], []
    for (w_ih, w_hh, b_ih, b_hh) in enc.lstm_params:
        B = x.shape[1]
        h0 = jnp.zeros((B, H), jnp.float32)
        c0 = jnp.zeros((B, H), jnp.float32)

        def step(carry, x_t, w_ih=w_ih, w_hh=w_hh, b_ih=b_ih, b_hh=b_hh):
            h, c = carry
            g = x_t @ w_ih.T + b_ih + h @ w_hh.T + b_hh
            i = jax.nn.sigmoid(g[:, 0 * H:1 * H])
            f = jax.nn.sigmoid(g[:, 1 * H:2 * H])
            gg = jnp.tanh(g[:, 2 * H:3 * H])
            o = jax.nn.sigmoid(g[:, 3 * H:4 * H])
            c = f * c + i * gg
            h = o * jnp.tanh(c)
            return (h, c), h

        (h_f, c_f), out = lax.scan(step, (h0, c0), x)
        hs.append(h_f)
        cs.append(c_f)
        x = out
    return jnp.transpose(x, (1, 0, 2)), (jnp.stack(hs), jnp.stack(cs))


if __name__ == "__main__":
    VOCAB, EMB, HID, LAYERS, DROPOUT = 50, 32, 32, 2, 0.1
    B, T = 2, 8

    key = jax.random.PRNGKey(0)
    k_in, k_params = jax.random.split(key)
    x = jax.random.randint(k_in, (B, T), 0, VOCAB, dtype=jnp.int32)

    # f32 path: exact check against the pure-JAX reference.
    enc_f32 = Encoder(VOCAB, EMB, HID, LAYERS, DROPOUT, k_params, compute_dtype=jnp.float32)
    output, (h_n, c_n) = enc_f32(x)
    jax.block_until_ready((output, h_n, c_n))

    ref_out, (ref_h, ref_c) = _reference_forward(enc_f32, x)
    assert output.shape == (B, T, HID)
    assert h_n.shape == (LAYERS, B, HID) and c_n.shape == (LAYERS, B, HID)
    assert jnp.allclose(output, ref_out, atol=1e-4)
    assert jnp.allclose(h_n, ref_h, atol=1e-4)
    assert jnp.allclose(c_n, ref_c, atol=1e-4)

    # Default bf16 (MXU-native weights + bf16 inter-layer activations): loose sanity check.
    enc_bf16 = Encoder(VOCAB, EMB, HID, LAYERS, DROPOUT, k_params)
    out_bf, (h_bf, c_bf) = enc_bf16(x)
    jax.block_until_ready((out_bf, h_bf, c_bf))
    assert out_bf.shape == (B, T, HID)
    assert bool(jnp.all(jnp.isfinite(out_bf)))
    assert jnp.allclose(out_bf, ref_out, atol=2.5e-1)

    print("KERNEL_OK")
</pallas_src>

<mosaic_0001>
module attributes {stable_mosaic.version = 11 : i64} {
  func.func @_embedding_gather_kernel(%arg0: i32, %arg1: memref<64xi32, #tpu.memory_space<smem>>, %arg2: memref<50x32xf32, #tpu.memory_space<any>>, %arg3: memref<64x32xf32, #tpu.memory_space<vmem>>, %arg4: memref<64x!tpu.dma_semaphore, #tpu.memory_space<semaphore_mem>>) attributes {dimension_semantics = [#tpu.dimension_semantics<parallel>], iteration_bounds = array<i64: 1>, scalar_prefetch = 1 : i64, scratch_operands = 1 : i64, tpu.core_type = #tpu.core_type<tc>, window_params = [{}, {transform_indices = @transform_1, window_bounds = array<i64: 64, 32>}]} {
    %c64_i32 = arith.constant 64 : i32
    %0 = arith.muli %arg0, %c64_i32 : i32
    %c0_i32 = arith.constant 0 : i32
    %1 = arith.addi %0, %c0_i32 : i32
    %2 = arith.index_cast %1 : i32 to index
    %3 = memref.load %arg1[%2] : memref<64xi32, #tpu.memory_space<smem>>
    %c0_i32_0 = arith.constant 0 : i32
    %c0_i32_1 = arith.constant 0 : i32
    %c0_i32_2 = arith.constant 0 : i32
    %4 = tpu.memref_slice %arg2[%3, %c0_i32_2] : memref<50x32xf32, #tpu.memory_space<any>> -> memref<1x32xf32, #tpu.memory_space<any>>
    %5 = tpu.memref_squeeze %4 : memref<1x32xf32, #tpu.memory_space<any>> -> memref<32xf32, #tpu.memory_space<any>>
    %c0_i32_3 = arith.constant 0 : i32
    %6 = tpu.memref_slice %arg3[%c0_i32_0, %c0_i32_3] : memref<64x32xf32, #tpu.memory_space<vmem>> -> memref<1x32xf32, #tpu.memory_space<vmem>>
    %7 = tpu.memref_squeeze %6 : memref<1x32xf32, #tpu.memory_space<vmem>> -> memref<32xf32, #tpu.memory_space<vmem>>
    %8 = tpu.memref_slice %arg4[%c0_i32_1] : memref<64x!tpu.dma_semaphore, #tpu.memory_space<semaphore_mem>> -> memref<1x!tpu.dma_semaphore, #tpu.memory_space<semaphore_mem>>
    %9 = tpu.memref_squeeze %8 : memref<1x!tpu.dma_semaphore, #tpu.memory_space<semaphore_mem>> -> memref<!tpu.dma_semaphore, #tpu.memory_space<semaphore_mem>>
    tpu.enqueue_dma source(%5 : memref<32xf32, #tpu.memory_space<any>>) target(%7 : memref<32xf32, #tpu.memory_space<vmem>>) target_semaphore(%9 : memref<!tpu.dma_semaphore, #tpu.memory_space<semaphore_mem>>)
    %c1_i32 = arith.constant 1 : i32
    %10 = arith.addi %0, %c1_i32 : i32
    %11 = arith.index_cast %10 : i32 to index
    %12 = memref.load %arg1[%11] : memref<64xi32, #tpu.memory_space<smem>>
    %c1_i32_4 = arith.constant 1 : i32
    %c1_i32_5 = arith.constant 1 : i32
    %c0_i32_6 = arith.constant 0 : i32
    %13 = tpu.memref_slice %arg2[%12, %c0_i32_6] : memref<50x32xf32, #tpu.memory_space<any>> -> memref<1x32xf32, #tpu.memory_space<any>>
    %14 = tpu.memref_squeeze %13 : memref<1x32xf32, #tpu.memory_space<any>> -> memref<32xf32, #tpu.memory_space<any>>
    %c0_i32_7 = arith.constant 0 : i32
    %15 = tpu.memref_slice %arg3[%c1_i32_4, %c0_i32_7] : memref<64x32xf32, #tpu.memory_space<vmem>> -> memref<1x32xf32, #tpu.memory_space<vmem>>
    %16 = tpu.memref_squeeze %15 : memref<1x32xf32, #tpu.memory_space<vmem>> -> memref<32xf32, #tpu.memory_space<vmem>>
    %17 = tpu.memref_slice %arg4[%c1_i32_5] : memref<64x!tpu.dma_semaphore, #tpu.memory_space<semaphore_mem>> -> memref<1x!tpu.dma_semaphore, #tpu.memory_space<semaphore_mem>>
    %18 = tpu.memref_squeeze %17 : memref<1x!tpu.dma_semaphore, #tpu.memory_space<semaphore_mem>> -> memref<!tpu.dma_semaphore, #tpu.memory_space<semaphore_mem>>
    tpu.enqueue_dma source(%14 : memref<32xf32, #tpu.memory_space<any>>) target(%16 : memref<32xf32, #tpu.memory_space<vmem>>) target_semaphore(%18 : memref<!tpu.dma_semaphore, #tpu.memory_space<semaphore_mem>>)
    %c2_i32 = arith.constant 2 : i32
    %19 = arith.addi %0, %c2_i32 : i32
    %20 = arith.index_cast %19 : i32 to index
    %21 = memref.load %arg1[%20] : memref<64xi32, #tpu.memory_space<smem>>
    %c2_i32_8 = arith.constant 2 : i32
    %c2_i32_9 = arith.constant 2 : i32
    %c0_i32_10 = arith.constant 0 : i32
    %22 = tpu.memref_slice %arg2[%21, %c0_i32_10] : memref<50x32xf32, #tpu.memory_space<any>> -> memref<1x32xf32, #tpu.memory_space<any>>
    %23 = tpu.memref_squeeze %22 : memref<1x32xf32, #tpu.memory_space<any>> -> memref<32xf32, #tpu.memory_space<any>>
    %c0_i32_11 = arith.constant 0 : i32
    %24 = tpu.memref_slice %arg3[%c2_i32_8, %c0_i32_11] : memref<64x32xf32, #tpu.memory_space<vmem>> -> memref<1x32xf32, #tpu.memory_space<vmem>>
    %25 = tpu.memref_squeeze %24 : memref<1x32xf32, #tpu.memory_space<vmem>> -> memref<32xf32, #tpu.memory_space<vmem>>
    %26 = tpu.memref_slice %arg4[%c2_i32_9] : memref<64x!tpu.dma_semaphore, #tpu.memory_space<semaphore_mem>> -> memref<1x!tpu.dma_semaphore, #tpu.memory_space<semaphore_mem>>
    %27 = tpu.memref_squeeze %26 : memref<1x!tpu.dma_semaphore, #tpu.memory_space<semaphore_mem>> -> memref<!tpu.dma_semaphore, #tpu.memory_space<semaphore_mem>>
    tpu.enqueue_dma source(%23 : memref<32xf32, #tpu.memory_space<any>>) target(%25 : memref<32xf32, #tpu.memory_space<vmem>>) target_semaphore(%27 : memref<!tpu.dma_semaphore, #tpu.memory_space<semaphore_mem>>)
    %c3_i32 = arith.constant 3 : i32
    %28 = arith.addi %0, %c3_i32 : i32
    %29 = arith.index_cast %28 : i32 to index
    %30 = memref.load %arg1[%29] : memref<64xi32, #tpu.memory_space<smem>>
    %c3_i32_12 = arith.constant 3 : i32
    %c3_i32_13 = arith.constant 3 : i32
    %c0_i32_14 = arith.constant 0 : i32
    %31 = tpu.memref_slice %arg2[%30, %c0_i32_14] : memref<50x32xf32, #tpu.memory_space<any>> -> memref<1x32xf32, #tpu.memory_space<any>>
    %32 = tpu.memref_squeeze %31 : memref<1x32xf32, #tpu.memory_space<any>> -> memref<32xf32, #tpu.memory_space<any>>
    %c0_i32_15 = arith.constant 0 : i32
    %33 = tpu.memref_slice %arg3[%c3_i32_12, %c0_i32_15] : memref<64x32xf32, #tpu.memory_space<vmem>> -> memref<1x32xf32, #tpu.memory_space<vmem>>
    %34 = tpu.memref_squeeze %33 : memref<1x32xf32, #tpu.memory_space<vmem>> -> memref<32xf32, #tpu.memory_space<vmem>>
    %35 = tpu.memref_slice %arg4[%c3_i32_13] : memref<64x!tpu.dma_semaphore, #tpu.memory_space<semaphore_mem>> -> memref<1x!tpu.dma_semaphore, #tpu.memory_space<semaphore_mem>>
    %36 = tpu.memref_squeeze %35 : memref<1x!tpu.dma_semaphore, #tpu.memory_space<semaphore_mem>> -> memref<!tpu.dma_semaphore, #tpu.memory_space<semaphore_mem>>
    tpu.enqueue_dma source(%32 : memref<32xf32, #tpu.memory_space<any>>) target(%34 : memref<32xf32, #tpu.memory_space<vmem>>) target_semaphore(%36 : memref<!tpu.dma_semaphore, #tpu.memory_space<semaphore_mem>>)
    %c4_i32 = arith.constant 4 : i32
    %37 = arith.addi %0, %c4_i32 : i32
    %38 = arith.index_cast %37 : i32 to index
    %39 = memref.load %arg1[%38] : memref<64xi32, #tpu.memory_space<smem>>
    %c4_i32_16 = arith.constant 4 : i32
    %c4_i32_17 = arith.constant 4 : i32
    %c0_i32_18 = arith.constant 0 : i32
    %40 = tpu.memref_slice %arg2[%39, %c0_i32_18] : memref<50x32xf32, #tpu.memory_space<any>> -> memref<1x32xf32, #tpu.memory_space<any>>
    %41 = tpu.memref_squeeze %40 : memref<1x32xf32, #tpu.memory_space<any>> -> memref<32xf32, #tpu.memory_space<any>>
    %c0_i32_19 = arith.constant 0 : i32
    %42 = tpu.memref_slice %arg3[%c4_i32_16, %c0_i32_19] : memref<64x32xf32, #tpu.memory_space<vmem>> -> memref<1x32xf32, #tpu.memory_space<vmem>>
    %43 = tpu.memref_squeeze %42 : memref<1x32xf32, #tpu.memory_space<vmem>> -> memref<32xf32, #tpu.memory_space<vmem>>
    %44 = tpu.memref_slice %arg4[%c4_i32_17] : memref<64x!tpu.dma_semaphore, #tpu.memory_space<semaphore_mem>> -> memref<1x!tpu.dma_semaphore, #tpu.memory_space<semaphore_mem>>
    %45 = tpu.memref_squeeze %44 : memref<1x!tpu.dma_semaphore, #tpu.memory_space<semaphore_mem>> -> memref<!tpu.dma_semaphore, #tpu.memory_space<semaphore_mem>>
    tpu.enqueue_dma source(%41 : memref<32xf32, #tpu.memory_space<any>>) target(%43 : memref<32xf32, #tpu.memory_space<vmem>>) target_semaphore(%45 : memref<!tpu.dma_semaphore, #tpu.memory_space<semaphore_mem>>)
    %c5_i32 = arith.constant 5 : i32
    %46 = arith.addi %0, %c5_i32 : i32
    %47 = arith.index_cast %46 : i32 to index
    %48 = memref.load %arg1[%47] : memref<64xi32, #tpu.memory_space<smem>>
    %c5_i32_20 = arith.constant 5 : i32
    %c5_i32_21 = arith.constant 5 : i32
    %c0_i32_22 = arith.constant 0 : i32
    %49 = tpu.memref_slice %arg2[%48, %c0_i32_22] : memref<50x32xf32, #tpu.memory_space<any>> -> memref<1x32xf32, #tpu.memory_space<any>>
    %50 = tpu.memref_squeeze %49 : memref<1x32xf32, #tpu.memory_space<any>> -> memref<32xf32, #tpu.memory_space<any>>
    %c0_i32_23 = arith.constant 0 : i32
    %51 = tpu.memref_slice %arg3[%c5_i32_20, %c0_i32_23] : memref<64x32xf32, #tpu.memory_space<vmem>> -> memref<1x32xf32, #tpu.memory_space<vmem>>
    %52 = tpu.memref_squeeze %51 : memref<1x32xf32, #tpu.memory_space<vmem>> -> memref<32xf32, #tpu.memory_space<vmem>>
    %53 = tpu.memref_slice %arg4[%c5_i32_21] : memref<64x!tpu.dma_semaphore, #tpu.memory_space<semaphore_mem>> -> memref<1x!tpu.dma_semaphore, #tpu.memory_space<semaphore_mem>>
    %54 = tpu.memref_squeeze %53 : memref<1x!tpu.dma_semaphore, #tpu.memory_space<semaphore_mem>> -> memref<!tpu.dma_semaphore, #tpu.memory_space<semaphore_mem>>
    tpu.enqueue_dma source(%50 : memref<32xf32, #tpu.memory_space<any>>) target(%52 : memref<32xf32, #tpu.memory_space<vmem>>) target_semaphore(%54 : memref<!tpu.dma_semaphore, #tpu.memory_space<semaphore_mem>>)
    %c6_i32 = arith.constant 6 : i32
    %55 = arith.addi %0, %c6_i32 : i32
    %56 = arith.index_cast %55 : i32 to index
    %57 = memref.load %arg1[%56] : memref<64xi32, #tpu.memory_space<smem>>
    %c6_i32_24 = arith.constant 6 : i32
    %c6_i32_25 = arith.constant 6 : i32
    %c0_i32_26 = arith.constant 0 : i32
    %58 = tpu.memref_slice %arg2[%57, %c0_i32_26] : memref<50x32xf32, #tpu.memory_space<any>> -> memref<1x32xf32, #tpu.memory_space<any>>
    %59 = tpu.memref_squeeze %58 : memref<1x32xf32, #tpu.memory_space<any>> -> memref<32xf32, #tpu.memory_space<any>>
    %c0_i32_27 = arith.constant 0 : i32
    %60 = tpu.memref_slice %arg3[%c6_i32_24, %c0_i32_27] : memref<64x32xf32, #tpu.memory_space<vmem>> -> memref<1x32xf32, #tpu.memory_space<vmem>>
    %61 = tpu.memref_squeeze %60 : memref<1x32xf32, #tpu.memory_space<vmem>> -> memref<32xf32, #tpu.memory_space<vmem>>
    %62 = tpu.memref_slice %arg4[%c6_i32_25] : memref<64x!tpu.dma_semaphore, #tpu.memory_space<semaphore_mem>> -> memref<1x!tpu.dma_semaphore, #tpu.memory_space<semaphore_mem>>
    %63 = tpu.memref_squeeze %62 : memref<1x!tpu.dma_semaphore, #tpu.memory_space<semaphore_mem>> -> memref<!tpu.dma_semaphore, #tpu.memory_space<semaphore_mem>>
    tpu.enqueue_dma source(%59 : memref<32xf32, #tpu.memory_space<any>>) target(%61 : memref<32xf32, #tpu.memory_space<vmem>>) target_semaphore(%63 : memref<!tpu.dma_semaphore, #tpu.memory_space<semaphore_mem>>)
    %c7_i32 = arith.constant 7 : i32
    %64 = arith.addi %0, %c7_i32 : i32
    %65 = arith.index_cast %64 : i32 to index
    %66 = memref.load %arg1[%65] : memref<64xi32, #tpu.memory_space<smem>>
    %c7_i32_28 = arith.constant 7 : i32
    %c7_i32_29 = arith.constant 7 : i32
    %c0_i32_30 = arith.constant 0 : i32
    %67 = tpu.memref_slice %arg2[%66, %c0_i32_30] : memref<50x32xf32, #tpu.memory_space<any>> -> memref<1x32xf32, #tpu.memory_space<any>>
    %68 = tpu.memref_squeeze %67 : memref<1x32xf32, #tpu.memory_space<any>> -> memref<32xf32, #tpu.memory_space<any>>
    %c0_i32_31 = arith.constant 0 : i32
    %69 = tpu.memref_slice %arg3[%c7_i32_28, %c0_i32_31] : memref<64x32xf32, #tpu.memory_space<vmem>> -> memref<1x32xf32, #tpu.memory_space<vmem>>
    %70 = tpu.memref_squeeze %69 : memref<1x32xf32, #tpu.memory_space<vmem>> -> memref<32xf32, #tpu.memory_space<vmem>>
    %71 = tpu.memref_slice %arg4[%c7_i32_29] : memref<64x!tpu.dma_semaphore, #tpu.memory_space<semaphore_mem>> -> memref<1x!tpu.dma_semaphore, #tpu.memory_space<semaphore_mem>>
    %72 = tpu.memref_squeeze %71 : memref<1x!tpu.dma_semaphore, #tpu.memory_space<semaphore_mem>> -> memref<!tpu.dma_semaphore, #tpu.memory_space<semaphore_mem>>
    tpu.enqueue_dma source(%68 : memref<32xf32, #tpu.memory_space<any>>) target(%70 : memref<32xf32, #tpu.memory_space<vmem>>) target_semaphore(%72 : memref<!tpu.dma_semaphore, #tpu.memory_space<semaphore_mem>>)
    %c8_i32 = arith.constant 8 : i32
    %73 = arith.addi %0, %c8_i32 : i32
    %74 = arith.index_cast %73 : i32 to index
    %75 = memref.load %arg1[%74] : memref<64xi32, #tpu.memory_space<smem>>
    %c8_i32_32 = arith.constant 8 : i32
    %c8_i32_33 = arith.constant 8 : i32
    %c0_i32_34 = arith.constant 0 : i32
    %76 = tpu.memref_slice %arg2[%75, %c0_i32_34] : memref<50x32xf32, #tpu.memory_space<any>> -> memref<1x32xf32, #tpu.memory_space<any>>
    %77 = tpu.memref_squeeze %76 : memref<1x32xf32, #tpu.memory_space<any>> -> memref<32xf32, #tpu.memory_space<any>>
    %c0_i32_35 = arith.constant 0 : i32
    %78 = tpu.memref_slice %arg3[%c8_i32_32, %c0_i32_35] : memref<64x32xf32, #tpu.memory_space<vmem>> -> memref<1x32xf32, #tpu.memory_space<vmem>>
    %79 = tpu.memref_squeeze %78 : memref<1x32xf32, #tpu.memory_space<vmem>> -> memref<32xf32, #tpu.memory_space<vmem>>
    %80 = tpu.memref_slice %arg4[%c8_i32_33] : memref<64x!tpu.dma_semaphore, #tpu.memory_space<semaphore_mem>> -> memref<1x!tpu.dma_semaphore, #tpu.memory_space<semaphore_mem>>
    %81 = tpu.memref_squeeze %80 : memref<1x!tpu.dma_semaphore, #tpu.memory_space<semaphore_mem>> -> memref<!tpu.dma_semaphore, #tpu.memory_space<semaphore_mem>>
    tpu.enqueue_dma source(%77 : memref<32xf32, #tpu.memory_space<any>>) target(%79 : memref<32xf32, #tpu.memory_space<vmem>>) target_semaphore(%81 : memref<!tpu.dma_semaphore, #tpu.memory_space<semaphore_mem>>)
    %c9_i32 = arith.constant 9 : i32
    %82 = arith.addi %0, %c9_i32 : i32
    %83 = arith.index_cast %82 : i32 to index
    %84 = memref.load %arg1[%83] : memref<64xi32, #tpu.memory_space<smem>>
    %c9_i32_36 = arith.constant 9 : i32
    %c9_i32_37 = arith.constant 9 : i32
    %c0_i32_38 = arith.constant 0 : i32
    %85 = tpu.memref_slice %arg2[%84, %c0_i32_38] : memref<50x32xf32, #tpu.memory_space<any>> -> memref<1x32xf32, #tpu.memory_space<any>>
    %86 = tpu.memref_squeeze %85 : memref<1x32xf32, #tpu.memory_space<any>> -> memref<32xf32, #tpu.memory_space<any>>
    %c0_i32_39 = arith.constant 0 : i32
    %87 = tpu.memref_slice %arg3[%c9_i32_36, %c0_i32_39] : memref<64x32xf32, #tpu.memory_space<vmem>> -> memref<1x32xf32, #tpu.memory_space<vmem>>
    %88 = tpu.memref_squeeze %87 : memref<1x32xf32, #tpu.memory_space<vmem>> -> memref<32xf32, #tpu.memory_space<vmem>>
    %89 = tpu.memref_slice %arg4[%c9_i32_37] : memref<64x!tpu.dma_semaphore, #tpu.memory_space<semaphore_mem>> -> memref<1x!tpu.dma_semaphore, #tpu.memory_space<semaphore_mem>>
    %90 = tpu.memref_squeeze %89 : memref<1x!tpu.dma_semaphore, #tpu.memory_space<semaphore_mem>> -> memref<!tpu.dma_semaphore, #tpu.memory_space<semaphore_mem>>
    tpu.enqueue_dma source(%86 : memref<32xf32, #tpu.memory_space<any>>) target(%88 : memref<32xf32, #tpu.memory_space<vmem>>) target_semaphore(%90 : memref<!tpu.dma_semaphore, #tpu.memory_space<semaphore_mem>>)
    %c10_i32 = arith.constant 10 : i32
    %91 = arith.addi %0, %c10_i32 : i32
    %92 = arith.index_cast %91 : i32 to index
    %93 = memref.load %arg1[%92] : memref<64xi32, #tpu.memory_space<smem>>
    %c10_i32_40 = arith.constant 10 : i32
    %c10_i32_41 = arith.constant 10 : i32
    %c0_i32_42 = arith.constant 0 : i32
    %94 = tpu.memref_slice %arg2[%93, %c0_i32_42] : memref<50x32xf32, #tpu.memory_space<any>> -> memref<1x32xf32, #tpu.memory_space<any>>
    %95 = tpu.memref_squeeze %94 : memref<1x32xf32, #tpu.memory_space<any>> -> memref<32xf32, #tpu.memory_space<any>>
    %c0_i32_43 = arith.constant 0 : i32
    %96 = tpu.memref_slice %arg3[%c10_i32_40, %c0_i32_43] : memref<64x32xf32, #tpu.memory_space<vmem>> -> memref<1x32xf32, #tpu.memory_space<vmem>>
    %97 = tpu.memref_squeeze %96 : memref<1x32xf32, #tpu.memory_space<vmem>> -> memref<32xf32, #tpu.memory_space<vmem>>
    %98 = tpu.memref_slice %arg4[%c10_i32_41] : memref<64x!tpu.dma_semaphore, #tpu.memory_space<semaphore_mem>> -> memref<1x!tpu.dma_semaphore, #tpu.memory_space<semaphore_mem>>
    %99 = tpu.memref_squeeze %98 : memref<1x!tpu.dma_semaphore, #tpu.memory_space<semaphore_mem>> -> memref<!tpu.dma_semaphore, #tpu.memory_space<semaphore_mem>>
    tpu.enqueue_dma source(%95 : memref<32xf32, #tpu.memory_space<any>>) target(%97 : memref<32xf32, #tpu.memory_space<vmem>>) target_semaphore(%99 : memref<!tpu.dma_semaphore, #tpu.memory_space<semaphore_mem>>)
    %c11_i32 = arith.constant 11 : i32
    %100 = arith.addi %0, %c11_i32 : i32
    %101 = arith.index_cast %100 : i32 to index
    %102 = memref.load %arg1[%101] : memref<64xi32, #tpu.memory_space<smem>>
    %c11_i32_44 = arith.constant 11 : i32
    %c11_i32_45 = arith.constant 11 : i32
    %c0_i32_46 = arith.constant 0 : i32
    %103 = tpu.memref_slice %arg2[%102, %c0_i32_46] : memref<50x32xf32, #tpu.memory_space<any>> -> memref<1x32xf32, #tpu.memory_space<any>>
    %104 = tpu.memref_squeeze %103 : memref<1x32xf32, #tpu.memory_space<any>> -> memref<32xf32, #tpu.memory_space<any>>
    %c0_i32_47 = arith.constant 0 : i32
    %105 = tpu.memref_slice %arg3[%c11_i32_44, %c0_i32_47] : memref<64x32xf32, #tpu.memory_space<vmem>> -> memref<1x32xf32, #tpu.memory_space<vmem>>
    %106 = tpu.memref_squeeze %105 : memref<1x32xf32, #tpu.memory_space<vmem>> -> memref<32xf32, #tpu.memory_space<vmem>>
    %107 = tpu.memref_slice %arg4[%c11_i32_45] : memref<64x!tpu.dma_semaphore, #tpu.memory_space<semaphore_mem>> -> memref<1x!tpu.dma_semaphore, #tpu.memory_space<semaphore_mem>>
    %108 = tpu.memref_squeeze %107 : memref<1x!tpu.dma_semaphore, #tpu.memory_space<semaphore_mem>> -> memref<!tpu.dma_semaphore, #tpu.memory_space<semaphore_mem>>
    tpu.enqueue_dma source(%104 : memref<32xf32, #tpu.memory_space<any>>) target(%106 : memref<32xf32, #tpu.memory_space<vmem>>) target_semaphore(%108 : memref<!tpu.dma_semaphore, #tpu.memory_space<semaphore_mem>>)
    %c12_i32 = arith.constant 12 : i32
    %109 = arith.addi %0, %c12_i32 : i32
    %110 = arith.index_cast %109 : i32 to index
    %111 = memref.load %arg1[%110] : memref<64xi32, #tpu.memory_space<smem>>
    %c12_i32_48 = arith.constant 12 : i32
    %c12_i32_49 = arith.constant 12 : i32
    %c0_i32_50 = arith.constant 0 : i32
    %112 = tpu.memref_slice %arg2[%111, %c0_i32_50] : memref<50x32xf32, #tpu.memory_space<any>> -> memref<1x32xf32, #tpu.memory_space<any>>
    %113 = tpu.memref_squeeze %112 : memref<1x32xf32, #tpu.memory_space<any>> -> memref<32xf32, #tpu.memory_space<any>>
    %c0_i32_51 = arith.constant 0 : i32
    %114 = tpu.memref_slice %arg3[%c12_i32_48, %c0_i32_51] : memref<64x32xf32, #tpu.memory_space<vmem>> -> memref<1x32xf32, #tpu.memory_space<vmem>>
    %115 = tpu.memref_squeeze %114 : memref<1x32xf32, #tpu.memory_space<vmem>> -> memref<32xf32, #tpu.memory_space<vmem>>
    %116 = tpu.memref_slice %arg4[%c12_i32_49] : memref<64x!tpu.dma_semaphore, #tpu.memory_space<semaphore_mem>> -> memref<1x!tpu.dma_semaphore, #tpu.memory_space<semaphore_mem>>
    %117 = tpu.memref_squeeze %116 : memref<1x!tpu.dma_semaphore, #tpu.memory_space<semaphore_mem>> -> memref<!tpu.dma_semaphore, #tpu.memory_space<semaphore_mem>>
    tpu.enqueue_dma source(%113 : memref<32xf32, #tpu.memory_space<any>>) target(%115 : memref<32xf32, #tpu.memory_space<vmem>>) target_semaphore(%117 : memref<!tpu.dma_semaphore, #tpu.memory_space<semaphore_mem>>)
    %c13_i32 = arith.constant 13 : i32
    %118 = arith.addi %0, %c13_i32 : i32
    %119 = arith.index_cast %118 : i32 to index
    %120 = memref.load %arg1[%119] : memref<64xi32, #tpu.memory_space<smem>>
    %c13_i32_52 = arith.constant 13 : i32
    %c13_i32_53 = arith.constant 13 : i32
    %c0_i32_54 = arith.constant 0 : i32
    %121 = tpu.memref_slice %arg2[%120, %c0_i32_54] : memref<50x32xf32, #tpu.memory_space<any>> -> memref<1x32xf32, #tpu.memory_space<any>>
    %122 = tpu.memref_squeeze %121 : memref<1x32xf32, #tpu.memory_space<any>> -> memref<32xf32, #tpu.memory_space<any>>
    %c0_i32_55 = arith.constant 0 : i32
    %123 = tpu.memref_slice %arg3[%c13_i32_52, %c0_i32_55] : memref<64x32xf32, #tpu.memory_space<vmem>> -> memref<1x32xf32, #tpu.memory_space<vmem>>
    %124 = tpu.memref_squeeze %123 : memref<1x32xf32, #tpu.memory_space<vmem>> -> memref<32xf32, #tpu.memory_space<vmem>>
    %125 = tpu.memref_slice %arg4[%c13_i32_53] : memref<64x!tpu.dma_semaphore, #tpu.memory_space<semaphore_mem>> -> memref<1x!tpu.dma_semaphore, #tpu.memory_space<semaphore_mem>>
    %126 = tpu.memref_squeeze %125 : memref<1x!tpu.dma_semaphore, #tpu.memory_space<semaphore_mem>> -> memref<!tpu.dma_semaphore, #tpu.memory_space<semaphore_mem>>
    tpu.enqueue_dma source(%122 : memref<32xf32, #tpu.memory_space<any>>) target(%124 : memref<32xf32, #tpu.memory_space<vmem>>) target_semaphore(%126 : memref<!tpu.dma_semaphore, #tpu.memory_space<semaphore_mem>>)
    %c14_i32 = arith.constant 14 : i32
    %127 = arith.addi %0, %c14_i32 : i32
    %128 = arith.index_cast %127 : i32 to index
    %129 = memref.load %arg1[%128] : memref<64xi32, #tpu.memory_space<smem>>
    %c14_i32_56 = arith.constant 14 : i32
    %c14_i32_57 = arith.constant 14 : i32
    %c0_i32_58 = arith.constant 0 : i32
    %130 = tpu.memref_slice %arg2[%129, %c0_i32_58] : memref<50x32xf32, #tpu.memory_space<any>> -> memref<1x32xf32, #tpu.memory_space<any>>
    %131 = tpu.memref_squeeze %130 : memref<1x32xf32, #tpu.memory_space<any>> -> memref<32xf32, #tpu.memory_space<any>>
    %c0_i32_59 = arith.constant 0 : i32
    %132 = tpu.memref_slice %arg3[%c14_i32_56, %c0_i32_59] : memref<64x32xf32, #tpu.memory_space<vmem>> -> memref<1x32xf32, #tpu.memory_space<vmem>>
    %133 = tpu.memref_squeeze %132 : memref<1x32xf32, #tpu.memory_space<vmem>> -> memref<32xf32, #tpu.memory_space<vmem>>
    %134 = tpu.memref_slice %arg4[%c14_i32_57] : memref<64x!tpu.dma_semaphore, #tpu.memory_space<semaphore_mem>> -> memref<1x!tpu.dma_semaphore, #tpu.memory_space<semaphore_mem>>
    %135 = tpu.memref_squeeze %134 : memref<1x!tpu.dma_semaphore, #tpu.memory_space<semaphore_mem>> -> memref<!tpu.dma_semaphore, #tpu.memory_space<semaphore_mem>>
    tpu.enqueue_dma source(%131 : memref<32xf32, #tpu.memory_space<any>>) target(%133 : memref<32xf32, #tpu.memory_space<vmem>>) target_semaphore(%135 : memref<!tpu.dma_semaphore, #tpu.memory_space<semaphore_mem>>)
    %c15_i32 = arith.constant 15 : i32
    %136 = arith.addi %0, %c15_i32 : i32
    %137 = arith.index_cast %136 : i32 to index
    %138 = memref.load %arg1[%137] : memref<64xi32, #tpu.memory_space<smem>>
    %c15_i32_60 = arith.constant 15 : i32
    %c15_i32_61 = arith.constant 15 : i32
    %c0_i32_62 = arith.constant 0 : i32
    %139 = tpu.memref_slice %arg2[%138, %c0_i32_62] : memref<50x32xf32, #tpu.memory_space<any>> -> memref<1x32xf32, #tpu.memory_space<any>>
    %140 = tpu.memref_squeeze %139 : memref<1x32xf32, #tpu.memory_space<any>> -> memref<32xf32, #tpu.memory_space<any>>
    %c0_i32_63 = arith.constant 0 : i32
    %141 = tpu.memref_slice %arg3[%c15_i32_60, %c0_i32_63] : memref<64x32xf32, #tpu.memory_space<vmem>> -> memref<1x32xf32, #tpu.memory_space<vmem>>
    %142 = tpu.memref_squeeze %141 : memref<1x32xf32, #tpu.memory_space<vmem>> -> memref<32xf32, #tpu.memory_space<vmem>>
    %143 = tpu.memref_slice %arg4[%c15_i32_61] : memref<64x!tpu.dma_semaphore, #tpu.memory_space<semaphore_mem>> -> memref<1x!tpu.dma_semaphore, #tpu.memory_space<semaphore_mem>>
    %144 = tpu.memref_squeeze %143 : memref<1x!tpu.dma_semaphore, #tpu.memory_space<semaphore_mem>> -> memref<!tpu.dma_semaphore, #tpu.memory_space<semaphore_mem>>
    tpu.enqueue_dma source(%140 : memref<32xf32, #tpu.memory_space<any>>) target(%142 : memref<32xf32, #tpu.memory_space<vmem>>) target_semaphore(%144 : memref<!tpu.dma_semaphore, #tpu.memory_space<semaphore_mem>>)
    %c16_i32 = arith.constant 16 : i32
    %145 = arith.addi %0, %c16_i32 : i32
    %146 = arith.index_cast %145 : i32 to index
    %147 = memref.load %arg1[%146] : memref<64xi32, #tpu.memory_space<smem>>
    %c16_i32_64 = arith.constant 16 : i32
    %c16_i32_65 = arith.constant 16 : i32
    %c0_i32_66 = arith.constant 0 : i32
    %148 = tpu.memref_slice %arg2[%147, %c0_i32_66] : memref<50x32xf32, #tpu.memory_space<any>> -> memref<1x32xf32, #tpu.memory_space<any>>
    %149 = tpu.memref_squeeze %148 : memref<1x32xf32, #tpu.memory_space<any>> -> memref<32xf32, #tpu.memory_space<any>>
    %c0_i32_67 = arith.constant 0 : i32
    %150 = tpu.memref_slice %arg3[%c16_i32_64, %c0_i32_67] : memref<64x32xf32, #tpu.memory_space<vmem>> -> memref<1x32xf32, #tpu.memory_space<vmem>>
    %151 = tpu.memref_squeeze %150 : memref<1x32xf32, #tpu.memory_space<vmem>> -> memref<32xf32, #tpu.memory_space<vmem>>
    %152 = tpu.memref_slice %arg4[%c16_i32_65] : memref<64x!tpu.dma_semaphore, #tpu.memory_space<semaphore_mem>> -> memref<1x!tpu.dma_semaphore, #tpu.memory_space<semaphore_mem>>
    %153 = tpu.memref_squeeze %152 : memref<1x!tpu.dma_semaphore, #tpu.memory_space<semaphore_mem>> -> memref<!tpu.dma_semaphore, #tpu.memory_space<semaphore_mem>>
    tpu.enqueue_dma source(%149 : memref<32xf32, #tpu.memory_space<any>>) target(%151 : memref<32xf32, #tpu.memory_space<vmem>>) target_semaphore(%153 : memref<!tpu.dma_semaphore, #tpu.memory_space<semaphore_mem>>)
    %c17_i32 = arith.constant 17 : i32
    %154 = arith.addi %0, %c17_i32 : i32
    %155 = arith.index_cast %154 : i32 to index
    %156 = memref.load %arg1[%155] : memref<64xi32, #tpu.memory_space<smem>>
    %c17_i32_68 = arith.constant 17 : i32
    %c17_i32_69 = arith.constant 17 : i32
    %c0_i32_70 = arith.constant 0 : i32
    %157 = tpu.memref_slice %arg2[%156, %c0_i32_70] : memref<50x32xf32, #tpu.memory_space<any>> -> memref<1x32xf32, #tpu.memory_space<any>>
    %158 = tpu.memref_squeeze %157 : memref<1x32xf32, #tpu.memory_space<any>> -> memref<32xf32, #tpu.memory_space<any>>
    %c0_i32_71 = arith.constant 0 : i32
    %159 = tpu.memref_slice %arg3[%c17_i32_68, %c0_i32_71] : memref<64x32xf32, #tpu.memory_space<vmem>> -> memref<1x32xf32, #tpu.memory_space<vmem>>
    %160 = tpu.memref_squeeze %159 : memref<1x32xf32, #tpu.memory_space<vmem>> -> memref<32xf32, #tpu.memory_space<vmem>>
    %161 = tpu.memref_slice %arg4[%c17_i32_69] : memref<64x!tpu.dma_semaphore, #tpu.memory_space<semaphore_mem>> -> memref<1x!tpu.dma_semaphore, #tpu.memory_space<semaphore_mem>>
    %162 = tpu.memref_squeeze %161 : memref<1x!tpu.dma_semaphore, #tpu.memory_space<semaphore_mem>> -> memref<!tpu.dma_semaphore, #tpu.memory_space<semaphore_mem>>
    tpu.enqueue_dma source(%158 : memref<32xf32, #tpu.memory_space<any>>) target(%160 : memref<32xf32, #tpu.memory_space<vmem>>) target_semaphore(%162 : memref<!tpu.dma_semaphore, #tpu.memory_space<semaphore_mem>>)
    %c18_i32 = arith.constant 18 : i32
    %163 = arith.addi %0, %c18_i32 : i32
    %164 = arith.index_cast %163 : i32 to index
    %165 = memref.load %arg1[%164] : memref<64xi32, #tpu.memory_space<smem>>
    %c18_i32_72 = arith.constant 18 : i32
    %c18_i32_73 = arith.constant 18 : i32
    %c0_i32_74 = arith.constant 0 : i32
    %166 = tpu.memref_slice %arg2[%165, %c0_i32_74] : memref<50x32xf32, #tpu.memory_space<any>> -> memref<1x32xf32, #tpu.memory_space<any>>
    %167 = tpu.memref_squeeze %166 : memref<1x32xf32, #tpu.memory_space<any>> -> memref<32xf32, #tpu.memory_space<any>>
    %c0_i32_75 = arith.constant 0 : i32
    %168 = tpu.memref_slice %arg3[%c18_i32_72, %c0_i32_75] : memref<64x32xf32, #tpu.memory_space<vmem>> -> memref<1x32xf32, #tpu.memory_space<vmem>>
    %169 = tpu.memref_squeeze %168 : memref<1x32xf32, #tpu.memory_space<vmem>> -> memref<32xf32, #tpu.memory_space<vmem>>
    %170 = tpu.memref_slice %arg4[%c18_i32_73] : memref<64x!tpu.dma_semaphore, #tpu.memory_space<semaphore_mem>> -> memref<1x!tpu.dma_semaphore, #tpu.memory_space<semaphore_mem>>
    %171 = tpu.memref_squeeze %170 : memref<1x!tpu.dma_semaphore, #tpu.memory_space<semaphore_mem>> -> memref<!tpu.dma_semaphore, #tpu.memory_space<semaphore_mem>>
    tpu.enqueue_dma source(%167 : memref<32xf32, #tpu.memory_space<any>>) target(%169 : memref<32xf32, #tpu.memory_space<vmem>>) target_semaphore(%171 : memref<!tpu.dma_semaphore, #tpu.memory_space<semaphore_mem>>)
    %c19_i32 = arith.constant 19 : i32
    %172 = arith.addi %0, %c19_i32 : i32
    %173 = arith.index_cast %172 : i32 to index
    %174 = memref.load %arg1[%173] : memref<64xi32, #tpu.memory_space<smem>>
    %c19_i32_76 = arith.constant 19 : i32
    %c19_i32_77 = arith.constant 19 : i32
    %c0_i32_78 = arith.constant 0 : i32
    %175 = tpu.memref_slice %arg2[%174, %c0_i32_78] : memref<50x32xf32, #tpu.memory_space<any>> -> memref<1x32xf32, #tpu.memory_space<any>>
    %176 = tpu.memref_squeeze %175 : memref<1x32xf32, #tpu.memory_space<any>> -> memref<32xf32, #tpu.memory_space<any>>
    %c0_i32_79 = arith.constant 0 : i32
    %177 = tpu.memref_slice %arg3[%c19_i32_76, %c0_i32_79] : memref<64x32xf32, #tpu.memory_space<vmem>> -> memref<1x32xf32, #tpu.memory_space<vmem>>
    %178 = tpu.memref_squeeze %177 : memref<1x32xf32, #tpu.memory_space<vmem>> -> memref<32xf32, #tpu.memory_space<vmem>>
    %179 = tpu.memref_slice %arg4[%c19_i32_77] : memref<64x!tpu.dma_semaphore, #tpu.memory_space<semaphore_mem>> -> memref<1x!tpu.dma_semaphore, #tpu.memory_space<semaphore_mem>>
    %180 = tpu.memref_squeeze %179 : memref<1x!tpu.dma_semaphore, #tpu.memory_space<semaphore_mem>> -> memref<!tpu.dma_semaphore, #tpu.memory_space<semaphore_mem>>
    tpu.enqueue_dma source(%176 : memref<32xf32, #tpu.memory_space<any>>) target(%178 : memref<32xf32, #tpu.memory_space<vmem>>) target_semaphore(%180 : memref<!tpu.dma_semaphore, #tpu.memory_space<semaphore_mem>>)
    %c20_i32 = arith.constant 20 : i32
    %181 = arith.addi %0, %c20_i32 : i32
    %182 = arith.index_cast %181 : i32 to index
    %183 = memref.load %arg1[%182] : memref<64xi32, #tpu.memory_space<smem>>
    %c20_i32_80 = arith.constant 20 : i32
    %c20_i32_81 = arith.constant 20 : i32
    %c0_i32_82 = arith.constant 0 : i32
    %184 = tpu.memref_slice %arg2[%183, %c0_i32_82] : memref<50x32xf32, #tpu.memory_space<any>> -> memref<1x32xf32, #tpu.memory_space<any>>
    %185 = tpu.memref_squeeze %184 : memref<1x32xf32, #tpu.memory_space<any>> -> memref<32xf32, #tpu.memory_space<any>>
    %c0_i32_83 = arith.constant 0 : i32
    %186 = tpu.memref_slice %arg3[%c20_i32_80, %c0_i32_83] : memref<64x32xf32, #tpu.memory_space<vmem>> -> memref<1x32xf32, #tpu.memory_space<vmem>>
    %187 = tpu.memref_squeeze %186 : memref<1x32xf32, #tpu.memory_space<vmem>> -> memref<32xf32, #tpu.memory_space<vmem>>
    %188 = tpu.memref_slice %arg4[%c20_i32_81] : memref<64x!tpu.dma_semaphore, #tpu.memory_space<semaphore_mem>> -> memref<1x!tpu.dma_semaphore, #tpu.memory_space<semaphore_mem>>
    %189 = tpu.memref_squeeze %188 : memref<1x!tpu.dma_semaphore, #tpu.memory_space<semaphore_mem>> -> memref<!tpu.dma_semaphore, #tpu.memory_space<semaphore_mem>>
    tpu.enqueue_dma source(%185 : memref<32xf32, #tpu.memory_space<any>>) target(%187 : memref<32xf32, #tpu.memory_space<vmem>>) target_semaphore(%189 : memref<!tpu.dma_semaphore, #tpu.memory_space<semaphore_mem>>)
    %c21_i32 = arith.constant 21 : i32
    %190 = arith.addi %0, %c21_i32 : i32
    %191 = arith.index_cast %190 : i32 to index
    %192 = memref.load %arg1[%191] : memref<64xi32, #tpu.memory_space<smem>>
    %c21_i32_84 = arith.constant 21 : i32
    %c21_i32_85 = arith.constant 21 : i32
    %c0_i32_86 = arith.constant 0 : i32
    %193 = tpu.memref_slice %arg2[%192, %c0_i32_86] : memref<50x32xf32, #tpu.memory_space<any>> -> memref<1x32xf32, #tpu.memory_space<any>>
    %194 = tpu.memref_squeeze %193 : memref<1x32xf32, #tpu.memory_space<any>> -> memref<32xf32, #tpu.memory_space<any>>
    %c0_i32_87 = arith.constant 0 : i32
    %195 = tpu.memref_slice %arg3[%c21_i32_84, %c0_i32_87] : memref<64x32xf32, #tpu.memory_space<vmem>> -> memref<1x32xf32, #tpu.memory_space<vmem>>
    %196 = tpu.memref_squeeze %195 : memref<1x32xf32, #tpu.memory_space<vmem>> -> memref<32xf32, #tpu.memory_space<vmem>>
    %197 = tpu.memref_slice %arg4[%c21_i32_85] : memref<64x!tpu.dma_semaphore, #tpu.memory_space<semaphore_mem>> -> memref<1x!tpu.dma_semaphore, #tpu.memory_space<semaphore_mem>>
    %198 = tpu.memref_squeeze %197 : memref<1x!tpu.dma_semaphore, #tpu.memory_space<semaphore_mem>> -> memref<!tpu.dma_semaphore, #tpu.memory_space<semaphore_mem>>
    tpu.enqueue_dma source(%194 : memref<32xf32, #tpu.memory_space<any>>) target(%196 : memref<32xf32, #tpu.memory_space<vmem>>) target_semaphore(%198 : memref<!tpu.dma_semaphore, #tpu.memory_space<semaphore_mem>>)
    %c22_i32 = arith.constant 22 : i32
    %199 = arith.addi %0, %c22_i32 : i32
    %200 = arith.index_cast %199 : i32 to index
    %201 = memref.load %arg1[%200] : memref<64xi32, #tpu.memory_space<smem>>
    %c22_i32_88 = arith.constant 22 : i32
    %c22_i32_89 = arith.constant 22 : i32
    %c0_i32_90 = arith.constant 0 : i32
    %202 = tpu.memref_slice %arg2[%201, %c0_i32_90] : memref<50x32xf32, #tpu.memory_space<any>> -> memref<1x32xf32, #tpu.memory_space<any>>
    %203 = tpu.memref_squeeze %202 : memref<1x32xf32, #tpu.memory_space<any>> -> memref<32xf32, #tpu.memory_space<any>>
    %c0_i32_91 = arith.constant 0 : i32
    %204 = tpu.memref_slice %arg3[%c22_i32_88, %c0_i32_91] : memref<64x32xf32, #tpu.memory_space<vmem>> -> memref<1x32xf32, #tpu.memory_space<vmem>>
    %205 = tpu.memref_squeeze %204 : memref<1x32xf32, #tpu.memory_space<vmem>> -> memref<32xf32, #tpu.memory_space<vmem>>
    %206 = tpu.memref_slice %arg4[%c22_i32_89] : memref<64x!tpu.dma_semaphore, #tpu.memory_space<semaphore_mem>> -> memref<1x!tpu.dma_semaphore, #tpu.memory_space<semaphore_mem>>
    %207 = tpu.memref_squeeze %206 : memref<1x!tpu.dma_semaphore, #tpu.memory_space<semaphore_mem>> -> memref<!tpu.dma_semaphore, #tpu.memory_space<semaphore_mem>>
    tpu.enqueue_dma source(%203 : memref<32xf32, #tpu.memory_space<any>>) target(%205 : memref<32xf32, #tpu.memory_space<vmem>>) target_semaphore(%207 : memref<!tpu.dma_semaphore, #tpu.memory_space<semaphore_mem>>)
    %c23_i32 = arith.constant 23 : i32
    %208 = arith.addi %0, %c23_i32 : i32
    %209 = arith.index_cast %208 : i32 to index
    %210 = memref.load %arg1[%209] : memref<64xi32, #tpu.memory_space<smem>>
    %c23_i32_92 = arith.constant 23 : i32
    %c23_i32_93 = arith.constant 23 : i32
    %c0_i32_94 = arith.constant 0 : i32
    %211 = tpu.memref_slice %arg2[%210, %c0_i32_94] : memref<50x32xf32, #tpu.memory_space<any>> -> memref<1x32xf32, #tpu.memory_space<any>>
    %212 = tpu.memref_squeeze %211 : memref<1x32xf32, #tpu.memory_space<any>> -> memref<32xf32, #tpu.memory_space<any>>
    %c0_i32_95 = arith.constant 0 : i32
    %213 = tpu.memref_slice %arg3[%c23_i32_92, %c0_i32_95] : memref<64x32xf32, #tpu.memory_space<vmem>> -> memref<1x32xf32, #tpu.memory_space<vmem>>
    %214 = tpu.memref_squeeze %213 : memref<1x32xf32, #tpu.memory_space<vmem>> -> memref<32xf32, #tpu.memory_space<vmem>>
    %215 = tpu.memref_slice %arg4[%c23_i32_93] : memref<64x!tpu.dma_semaphore, #tpu.memory_space<semaphore_mem>> -> memref<1x!tpu.dma_semaphore, #tpu.memory_space<semaphore_mem>>
    %216 = tpu.memref_squeeze %215 : memref<1x!tpu.dma_semaphore, #tpu.memory_space<semaphore_mem>> -> memref<!tpu.dma_semaphore, #tpu.memory_space<semaphore_mem>>
    tpu.enqueue_dma source(%212 : memref<32xf32, #tpu.memory_space<any>>) target(%214 : memref<32xf32, #tpu.memory_space<vmem>>) target_semaphore(%216 : memref<!tpu.dma_semaphore, #tpu.memory_space<semaphore_mem>>)
    %c24_i32 = arith.constant 24 : i32
    %217 = arith.addi %0, %c24_i32 : i32
    %218 = arith.index_cast %217 : i32 to index
    %219 = memref.load %arg1[%218] : memref<64xi32, #tpu.memory_space<smem>>
    %c24_i32_96 = arith.constant 24 : i32
    %c24_i32_97 = arith.constant 24 : i32
    %c0_i32_98 = arith.constant 0 : i32
    %220 = tpu.memref_slice %arg2[%219, %c0_i32_98] : memref<50x32xf32, #tpu.memory_space<any>> -> memref<1x32xf32, #tpu.memory_space<any>>
    %221 = tpu.memref_squeeze %220 : memref<1x32xf32, #tpu.memory_space<any>> -> memref<32xf32, #tpu.memory_space<any>>
    %c0_i32_99 = arith.constant 0 : i32
    %222 = tpu.memref_slice %arg3[%c24_i32_96, %c0_i32_99] : memref<64x32xf32, #tpu.memory_space<vmem>> -> memref<1x32xf32, #tpu.memory_space<vmem>>
    %223 = tpu.memref_squeeze %222 : memref<1x32xf32, #tpu.memory_space<vmem>> -> memref<32xf32, #tpu.memory_space<vmem>>
    %224 = tpu.memref_slice %arg4[%c24_i32_97] : memref<64x!tpu.dma_semaphore, #tpu.memory_space<semaphore_mem>> -> memref<1x!tpu.dma_semaphore, #tpu.memory_space<semaphore_mem>>
    %225 = tpu.memref_squeeze %224 : memref<1x!tpu.dma_semaphore, #tpu.memory_space<semaphore_mem>> -> memref<!tpu.dma_semaphore, #tpu.memory_space<semaphore_mem>>
    tpu.enqueue_dma source(%221 : memref<32xf32, #tpu.memory_space<any>>) target(%223 : memref<32xf32, #tpu.memory_space<vmem>>) target_semaphore(%225 : memref<!tpu.dma_semaphore, #tpu.memory_space<semaphore_mem>>)
    %c25_i32 = arith.constant 25 : i32
    %226 = arith.addi %0, %c25_i32 : i32
    %227 = arith.index_cast %226 : i32 to index
    %228 = memref.load %arg1[%227] : memref<64xi32, #tpu.memory_space<smem>>
    %c25_i32_100 = arith.constant 25 : i32
    %c25_i32_101 = arith.constant 25 : i32
    %c0_i32_102 = arith.constant 0 : i32
    %229 = tpu.memref_slice %arg2[%228, %c0_i32_102] : memref<50x32xf32, #tpu.memory_space<any>> -> memref<1x32xf32, #tpu.memory_space<any>>
    %230 = tpu.memref_squeeze %229 : memref<1x32xf32, #tpu.memory_space<any>> -> memref<32xf32, #tpu.memory_space<any>>
    %c0_i32_103 = arith.constant 0 : i32
    %231 = tpu.memref_slice %arg3[%c25_i32_100, %c0_i32_103] : memref<64x32xf32, #tpu.memory_space<vmem>> -> memref<1x32xf32, #tpu.memory_space<vmem>>
    %232 = tpu.memref_squeeze %231 : memref<1x32xf32, #tpu.memory_space<vmem>> -> memref<32xf32, #tpu.memory_space<vmem>>
    %233 = tpu.memref_slice %arg4[%c25_i32_101] : memref<64x!tpu.dma_semaphore, #tpu.memory_space<semaphore_mem>> -> memref<1x!tpu.dma_semaphore, #tpu.memory_space<semaphore_mem>>
    %234 = tpu.memref_squeeze %233 : memref<1x!tpu.dma_semaphore, #tpu.memory_space<semaphore_mem>> -> memref<!tpu.dma_semaphore, #tpu.memory_space<semaphore_mem>>
    tpu.enqueue_dma source(%230 : memref<32xf32, #tpu.memory_space<any>>) target(%232 : memref<32xf32, #tpu.memory_space<vmem>>) target_semaphore(%234 : memref<!tpu.dma_semaphore, #tpu.memory_space<semaphore_mem>>)
    %c26_i32 = arith.constant 26 : i32
    %235 = arith.addi %0, %c26_i32 : i32
    %236 = arith.index_cast %235 : i32 to index
    %237 = memref.load %arg1[%236] : memref<64xi32, #tpu.memory_space<smem>>
    %c26_i32_104 = arith.constant 26 : i32
    %c26_i32_105 = arith.constant 26 : i32
    %c0_i32_106 = arith.constant 0 : i32
    %238 = tpu.memref_slice %arg2[%237, %c0_i32_106] : memref<50x32xf32, #tpu.memory_space<any>> -> memref<1x32xf32, #tpu.memory_space<any>>
    %239 = tpu.memref_squeeze %238 : memref<1x32xf32, #tpu.memory_space<any>> -> memref<32xf32, #tpu.memory_space<any>>
    %c0_i32_107 = arith.constant 0 : i32
    %240 = tpu.memref_slice %arg3[%c26_i32_104, %c0_i32_107] : memref<64x32xf32, #tpu.memory_space<vmem>> -> memref<1x32xf32, #tpu.memory_space<vmem>>
    %241 = tpu.memref_squeeze %240 : memref<1x32xf32, #tpu.memory_space<vmem>> -> memref<32xf32, #tpu.memory_space<vmem>>
    %242 = tpu.memref_slice %arg4[%c26_i32_105] : memref<64x!tpu.dma_semaphore, #tpu.memory_space<semaphore_mem>> -> memref<1x!tpu.dma_semaphore, #tpu.memory_space<semaphore_mem>>
    %243 = tpu.memref_squeeze %242 : memref<1x!tpu.dma_semaphore, #tpu.memory_space<semaphore_mem>> -> memref<!tpu.dma_semaphore, #tpu.memory_space<semaphore_mem>>
    tpu.enqueue_dma source(%239 : memref<32xf32, #tpu.memory_space<any>>) target(%241 : memref<32xf32, #tpu.memory_space<vmem>>) target_semaphore(%243 : memref<!tpu.dma_semaphore, #tpu.memory_space<semaphore_mem>>)
    %c27_i32 = arith.constant 27 : i32
    %244 = arith.addi %0, %c27_i32 : i32
    %245 = arith.index_cast %244 : i32 to index
    %246 = memref.load %arg1[%245] : memref<64xi32, #tpu.memory_space<smem>>
    %c27_i32_108 = arith.constant 27 : i32
    %c27_i32_109 = arith.constant 27 : i32
    %c0_i32_110 = arith.constant 0 : i32
    %247 = tpu.memref_slice %arg2[%246, %c0_i32_110] : memref<50x32xf32, #tpu.memory_space<any>> -> memref<1x32xf32, #tpu.memory_space<any>>
    %248 = tpu.memref_squeeze %247 : memref<1x32xf32, #tpu.memory_space<any>> -> memref<32xf32, #tpu.memory_space<any>>
    %c0_i32_111 = arith.constant 0 : i32
    %249 = tpu.memref_slice %arg3[%c27_i32_108, %c0_i32_111] : memref<64x32xf32, #tpu.memory_space<vmem>> -> memref<1x32xf32, #tpu.memory_space<vmem>>
    %250 = tpu.memref_squeeze %249 : memref<1x32xf32, #tpu.memory_space<vmem>> -> memref<32xf32, #tpu.memory_space<vmem>>
    %251 = tpu.memref_slice %arg4[%c27_i32_109] : memref<64x!tpu.dma_semaphore, #tpu.memory_space<semaphore_mem>> -> memref<1x!tpu.dma_semaphore, #tpu.memory_space<semaphore_mem>>
    %252 = tpu.memref_squeeze %251 : memref<1x!tpu.dma_semaphore, #tpu.memory_space<semaphore_mem>> -> memref<!tpu.dma_semaphore, #tpu.memory_space<semaphore_mem>>
    tpu.enqueue_dma source(%248 : memref<32xf32, #tpu.memory_space<any>>) target(%250 : memref<32xf32, #tpu.memory_space<vmem>>) target_semaphore(%252 : memref<!tpu.dma_semaphore, #tpu.memory_space<semaphore_mem>>)
    %c28_i32 = arith.constant 28 : i32
    %253 = arith.addi %0, %c28_i32 : i32
    %254 = arith.index_cast %253 : i32 to index
    %255 = memref.load %arg1[%254] : memref<64xi32, #tpu.memory_space<smem>>
    %c28_i32_112 = arith.constant 28 : i32
    %c28_i32_113 = arith.constant 28 : i32
    %c0_i32_114 = arith.constant 0 : i32
    %256 = tpu.memref_slice %arg2[%255, %c0_i32_114] : memref<50x32xf32, #tpu.memory_space<any>> -> memref<1x32xf32, #tpu.memory_space<any>>
    %257 = tpu.memref_squeeze %256 : memref<1x32xf32, #tpu.memory_space<any>> -> memref<32xf32, #tpu.memory_space<any>>
    %c0_i32_115 = arith.constant 0 : i32
    %258 = tpu.memref_slice %arg3[%c28_i32_112, %c0_i32_115] : memref<64x32xf32, #tpu.memory_space<vmem>> -> memref<1x32xf32, #tpu.memory_space<vmem>>
    %259 = tpu.memref_squeeze %258 : memref<1x32xf32, #tpu.memory_space<vmem>> -> memref<32xf32, #tpu.memory_space<vmem>>
    %260 = tpu.memref_slice %arg4[%c28_i32_113] : memref<64x!tpu.dma_semaphore, #tpu.memory_space<semaphore_mem>> -> memref<1x!tpu.dma_semaphore, #tpu.memory_space<semaphore_mem>>
    %261 = tpu.memref_squeeze %260 : memref<1x!tpu.dma_semaphore, #tpu.memory_space<semaphore_mem>> -> memref<!tpu.dma_semaphore, #tpu.memory_space<semaphore_mem>>
    tpu.enqueue_dma source(%257 : memref<32xf32, #tpu.memory_space<any>>) target(%259 : memref<32xf32, #tpu.memory_space<vmem>>) target_semaphore(%261 : memref<!tpu.dma_semaphore, #tpu.memory_space<semaphore_mem>>)
    %c29_i32 = arith.constant 29 : i32
    %262 = arith.addi %0, %c29_i32 : i32
    %263 = arith.index_cast %262 : i32 to index
    %264 = memref.load %arg1[%263] : memref<64xi32, #tpu.memory_space<smem>>
    %c29_i32_116 = arith.constant 29 : i32
    %c29_i32_117 = arith.constant 29 : i32
    %c0_i32_118 = arith.constant 0 : i32
    %265 = tpu.memref_slice %arg2[%264, %c0_i32_118] : memref<50x32xf32, #tpu.memory_space<any>> -> memref<1x32xf32, #tpu.memory_space<any>>
    %266 = tpu.memref_squeeze %265 : memref<1x32xf32, #tpu.memory_space<any>> -> memref<32xf32, #tpu.memory_space<any>>
    %c0_i32_119 = arith.constant 0 : i32
    %267 = tpu.memref_slice %arg3[%c29_i32_116, %c0_i32_119] : memref<64x32xf32, #tpu.memory_space<vmem>> -> memref<1x32xf32, #tpu.memory_space<vmem>>
    %268 = tpu.memref_squeeze %267 : memref<1x32xf32, #tpu.memory_space<vmem>> -> memref<32xf32, #tpu.memory_space<vmem>>
    %269 = tpu.memref_slice %arg4[%c29_i32_117] : memref<64x!tpu.dma_semaphore, #tpu.memory_space<semaphore_mem>> -> memref<1x!tpu.dma_semaphore, #tpu.memory_space<semaphore_mem>>
    %270 = tpu.memref_squeeze %269 : memref<1x!tpu.dma_semaphore, #tpu.memory_space<semaphore_mem>> -> memref<!tpu.dma_semaphore, #tpu.memory_space<semaphore_mem>>
    tpu.enqueue_dma source(%266 : memref<32xf32, #tpu.memory_space<any>>) target(%268 : memref<32xf32, #tpu.memory_space<vmem>>) target_semaphore(%270 : memref<!tpu.dma_semaphore, #tpu.memory_space<semaphore_mem>>)
    %c30_i32 = arith.constant 30 : i32
    %271 = arith.addi %0, %c30_i32 : i32
    %272 = arith.index_cast %271 : i32 to index
    %273 = memref.load %arg1[%272] : memref<64xi32, #tpu.memory_space<smem>>
    %c30_i32_120 = arith.constant 30 : i32
    %c30_i32_121 = arith.constant 30 : i32
    %c0_i32_122 = arith.constant 0 : i32
    %274 = tpu.memref_slice %arg2[%273, %c0_i32_122] : memref<50x32xf32, #tpu.memory_space<any>> -> memref<1x32xf32, #tpu.memory_space<any>>
    %275 = tpu.memref_squeeze %274 : memref<1x32xf32, #tpu.memory_space<any>> -> memref<32xf32, #tpu.memory_space<any>>
    %c0_i32_123 = arith.constant 0 : i32
    %276 = tpu.memref_slice %arg3[%c30_i32_120, %c0_i32_123] : memref<64x32xf32, #tpu.memory_space<vmem>> -> memref<1x32xf32, #tpu.memory_space<vmem>>
    %277 = tpu.memref_squeeze %276 : memref<1x32xf32, #tpu.memory_space<vmem>> -> memref<32xf32, #tpu.memory_space<vmem>>
    %278 = tpu.memref_slice %arg4[%c30_i32_121] : memref<64x!tpu.dma_semaphore, #tpu.memory_space<semaphore_mem>> -> memref<1x!tpu.dma_semaphore, #tpu.memory_space<semaphore_mem>>
    %279 = tpu.memref_squeeze %278 : memref<1x!tpu.dma_semaphore, #tpu.memory_space<semaphore_mem>> -> memref<!tpu.dma_semaphore, #tpu.memory_space<semaphore_mem>>
    tpu.enqueue_dma source(%275 : memref<32xf32, #tpu.memory_space<any>>) target(%277 : memref<32xf32, #tpu.memory_space<vmem>>) target_semaphore(%279 : memref<!tpu.dma_semaphore, #tpu.memory_space<semaphore_mem>>)
    %c31_i32 = arith.constant 31 : i32
    %280 = arith.addi %0, %c31_i32 : i32
    %281 = arith.index_cast %280 : i32 to index
    %282 = memref.load %arg1[%281] : memref<64xi32, #tpu.memory_space<smem>>
    %c31_i32_124 = arith.constant 31 : i32
    %c31_i32_125 = arith.constant 31 : i32
    %c0_i32_126 = arith.constant 0 : i32
    %283 = tpu.memref_slice %arg2[%282, %c0_i32_126] : memref<50x32xf32, #tpu.memory_space<any>> -> memref<1x32xf32, #tpu.memory_space<any>>
    %284 = tpu.memref_squeeze %283 : memref<1x32xf32, #tpu.memory_space<any>> -> memref<32xf32, #tpu.memory_space<any>>
    %c0_i32_127 = arith.constant 0 : i32
    %285 = tpu.memref_slice %arg3[%c31_i32_124, %c0_i32_127] : memref<64x32xf32, #tpu.memory_space<vmem>> -> memref<1x32xf32, #tpu.memory_space<vmem>>
    %286 = tpu.memref_squeeze %285 : memref<1x32xf32, #tpu.memory_space<vmem>> -> memref<32xf32, #tpu.memory_space<vmem>>
    %287 = tpu.memref_slice %arg4[%c31_i32_125] : memref<64x!tpu.dma_semaphore, #tpu.memory_space<semaphore_mem>> -> memref<1x!tpu.dma_semaphore, #tpu.memory_space<semaphore_mem>>
    %288 = tpu.memref_squeeze %287 : memref<1x!tpu.dma_semaphore, #tpu.memory_space<semaphore_mem>> -> memref<!tpu.dma_semaphore, #tpu.memory_space<semaphore_mem>>
    tpu.enqueue_dma source(%284 : memref<32xf32, #tpu.memory_space<any>>) target(%286 : memref<32xf32, #tpu.memory_space<vmem>>) target_semaphore(%288 : memref<!tpu.dma_semaphore, #tpu.memory_space<semaphore_mem>>)
    %c32_i32 = arith.constant 32 : i32
    %289 = arith.addi %0, %c32_i32 : i32
    %290 = arith.index_cast %289 : i32 to index
    %291 = memref.load %arg1[%290] : memref<64xi32, #tpu.memory_space<smem>>
    %c32_i32_128 = arith.constant 32 : i32
    %c32_i32_129 = arith.constant 32 : i32
    %c0_i32_130 = arith.constant 0 : i32
    %292 = tpu.memref_slice %arg2[%291, %c0_i32_130] : memref<50x32xf32, #tpu.memory_space<any>> -> memref<1x32xf32, #tpu.memory_space<any>>
    %293 = tpu.memref_squeeze %292 : memref<1x32xf32, #tpu.memory_space<any>> -> memref<32xf32, #tpu.memory_space<any>>
    %c0_i32_131 = arith.constant 0 : i32
    %294 = tpu.memref_slice %arg3[%c32_i32_128, %c0_i32_131] : memref<64x32xf32, #tpu.memory_space<vmem>> -> memref<1x32xf32, #tpu.memory_space<vmem>>
    %295 = tpu.memref_squeeze %294 : memref<1x32xf32, #tpu.memory_space<vmem>> -> memref<32xf32, #tpu.memory_space<vmem>>
    %296 = tpu.memref_slice %arg4[%c32_i32_129] : memref<64x!tpu.dma_semaphore, #tpu.memory_space<semaphore_mem>> -> memref<1x!tpu.dma_semaphore, #tpu.memory_space<semaphore_mem>>
    %297 = tpu.memref_squeeze %296 : memref<1x!tpu.dma_semaphore, #tpu.memory_space<semaphore_mem>> -> memref<!tpu.dma_semaphore, #tpu.memory_space<semaphore_mem>>
    tpu.enqueue_dma source(%293 : memref<32xf32, #tpu.memory_space<any>>) target(%295 : memref<32xf32, #tpu.memory_space<vmem>>) target_semaphore(%297 : memref<!tpu.dma_semaphore, #tpu.memory_space<semaphore_mem>>)
    %c33_i32 = arith.constant 33 : i32
    %298 = arith.addi %0, %c33_i32 : i32
    %299 = arith.index_cast %298 : i32 to index
    %300 = memref.load %arg1[%299] : memref<64xi32, #tpu.memory_space<smem>>
    %c33_i32_132 = arith.constant 33 : i32
    %c33_i32_133 = arith.constant 33 : i32
    %c0_i32_134 = arith.constant 0 : i32
    %301 = tpu.memref_slice %arg2[%300, %c0_i32_134] : memref<50x32xf32, #tpu.memory_space<any>> -> memref<1x32xf32, #tpu.memory_space<any>>
    %302 = tpu.memref_squeeze %301 : memref<1x32xf32, #tpu.memory_space<any>> -> memref<32xf32, #tpu.memory_space<any>>
    %c0_i32_135 = arith.constant 0 : i32
    %303 = tpu.memref_slice %arg3[%c33_i32_132, %c0_i32_135] : memref<64x32xf32, #tpu.memory_space<vmem>> -> memref<1x32xf32, #tpu.memory_space<vmem>>
    %304 = tpu.memref_squeeze %303 : memref<1x32xf32, #tpu.memory_space<vmem>> -> memref<32xf32, #tpu.memory_space<vmem>>
    %305 = tpu.memref_slice %arg4[%c33_i32_133] : memref<64x!tpu.dma_semaphore, #tpu.memory_space<semaphore_mem>> -> memref<1x!tpu.dma_semaphore, #tpu.memory_space<semaphore_mem>>
    %306 = tpu.memref_squeeze %305 : memref<1x!tpu.dma_semaphore, #tpu.memory_space<semaphore_mem>> -> memref<!tpu.dma_semaphore, #tpu.memory_space<semaphore_mem>>
    tpu.enqueue_dma source(%302 : memref<32xf32, #tpu.memory_space<any>>) target(%304 : memref<32xf32, #tpu.memory_space<vmem>>) target_semaphore(%306 : memref<!tpu.dma_semaphore, #tpu.memory_space<semaphore_mem>>)
    %c34_i32 = arith.constant 34 : i32
    %307 = arith.addi %0, %c34_i32 : i32
    %308 = arith.index_cast %307 : i32 to index
    %309 = memref.load %arg1[%308] : memref<64xi32, #tpu.memory_space<smem>>
    %c34_i32_136 = arith.constant 34 : i32
    %c34_i32_137 = arith.constant 34 : i32
    %c0_i32_138 = arith.constant 0 : i32
    %310 = tpu.memref_slice %arg2[%309, %c0_i32_138] : memref<50x32xf32, #tpu.memory_space<any>> -> memref<1x32xf32, #tpu.memory_space<any>>
    %311 = tpu.memref_squeeze %310 : memref<1x32xf32, #tpu.memory_space<any>> -> memref<32xf32, #tpu.memory_space<any>>
    %c0_i32_139 = arith.constant 0 : i32
    %312 = tpu.memref_slice %arg3[%c34_i32_136, %c0_i32_139] : memref<64x32xf32, #tpu.memory_space<vmem>> -> memref<1x32xf32, #tpu.memory_space<vmem>>
    %313 = tpu.memref_squeeze %312 : memref<1x32xf32, #tpu.memory_space<vmem>> -> memref<32xf32, #tpu.memory_space<vmem>>
    %314 = tpu.memref_slice %arg4[%c34_i32_137] : memref<64x!tpu.dma_semaphore, #tpu.memory_space<semaphore_mem>> -> memref<1x!tpu.dma_semaphore, #tpu.memory_space<semaphore_mem>>
    %315 = tpu.memref_squeeze %314 : memref<1x!tpu.dma_semaphore, #tpu.memory_space<semaphore_mem>> -> memref<!tpu.dma_semaphore, #tpu.memory_space<semaphore_mem>>
    tpu.enqueue_dma source(%311 : memref<32xf32, #tpu.memory_space<any>>) target(%313 : memref<32xf32, #tpu.memory_space<vmem>>) target_semaphore(%315 : memref<!tpu.dma_semaphore, #tpu.memory_space<semaphore_mem>>)
    %c35_i32 = arith.constant 35 : i32
    %316 = arith.addi %0, %c35_i32 : i32
    %317 = arith.index_cast %316 : i32 to index
    %318 = memref.load %arg1[%317] : memref<64xi32, #tpu.memory_space<smem>>
    %c35_i32_140 = arith.constant 35 : i32
    %c35_i32_141 = arith.constant 35 : i32
    %c0_i32_142 = arith.constant 0 : i32
    %319 = tpu.memref_slice %arg2[%318, %c0_i32_142] : memref<50x32xf32, #tpu.memory_space<any>> -> memref<1x32xf32, #tpu.memory_space<any>>
    %320 = tpu.memref_squeeze %319 : memref<1x32xf32, #tpu.memory_space<any>> -> memref<32xf32, #tpu.memory_space<any>>
    %c0_i32_143 = arith.constant 0 : i32
    %321 = tpu.memref_slice %arg3[%c35_i32_140, %c0_i32_143] : memref<64x32xf32, #tpu.memory_space<vmem>> -> memref<1x32xf32, #tpu.memory_space<vmem>>
    %322 = tpu.memref_squeeze %321 : memref<1x32xf32, #tpu.memory_space<vmem>> -> memref<32xf32, #tpu.memory_space<vmem>>
    %323 = tpu.memref_slice %arg4[%c35_i32_141] : memref<64x!tpu.dma_semaphore, #tpu.memory_space<semaphore_mem>> -> memref<1x!tpu.dma_semaphore, #tpu.memory_space<semaphore_mem>>
    %324 = tpu.memref_squeeze %323 : memref<1x!tpu.dma_semaphore, #tpu.memory_space<semaphore_mem>> -> memref<!tpu.dma_semaphore, #tpu.memory_space<semaphore_mem>>
    tpu.enqueue_dma source(%320 : memref<32xf32, #tpu.memory_space<any>>) target(%322 : memref<32xf32, #tpu.memory_space<vmem>>) target_semaphore(%324 : memref<!tpu.dma_semaphore, #tpu.memory_space<semaphore_mem>>)
    %c36_i32 = arith.constant 36 : i32
    %325 = arith.addi %0, %c36_i32 : i32
    %326 = arith.index_cast %325 : i32 to index
    %327 = memref.load %arg1[%326] : memref<64xi32, #tpu.memory_space<smem>>
    %c36_i32_144 = arith.constant 36 : i32
    %c36_i32_145 = arith.constant 36 : i32
    %c0_i32_146 = arith.constant 0 : i32
    %328 = tpu.memref_slice %arg2[%327, %c0_i32_146] : memref<50x32xf32, #tpu.memory_space<any>> -> memref<1x32xf32, #tpu.memory_space<any>>
    %329 = tpu.memref_squeeze %328 : memref<1x32xf32, #tpu.memory_space<any>> -> memref<32xf32, #tpu.memory_space<any>>
    %c0_i32_147 = arith.constant 0 : i32
    %330 = tpu.memref_slice %arg3[%c36_i32_144, %c0_i32_147] : memref<64x32xf32, #tpu.memory_space<vmem>> -> memref<1x32xf32, #tpu.memory_space<vmem>>
    %331 = tpu.memref_squeeze %330 : memref<1x32xf32, #tpu.memory_space<vmem>> -> memref<32xf32, #tpu.memory_space<vmem>>
    %332 = tpu.memref_slice %arg4[%c36_i32_145] : memref<64x!tpu.dma_semaphore, #tpu.memory_space<semaphore_mem>> -> memref<1x!tpu.dma_semaphore, #tpu.memory_space<semaphore_mem>>
    %333 = tpu.memref_squeeze %332 : memref<1x!tpu.dma_semaphore, #tpu.memory_space<semaphore_mem>> -> memref<!tpu.dma_semaphore, #tpu.memory_space<semaphore_mem>>
    tpu.enqueue_dma source(%329 : memref<32xf32, #tpu.memory_space<any>>) target(%331 : memref<32xf32, #tpu.memory_space<vmem>>) target_semaphore(%333 : memref<!tpu.dma_semaphore, #tpu.memory_space<semaphore_mem>>)
    %c37_i32 = arith.constant 37 : i32
    %334 = arith.addi %0, %c37_i32 : i32
    %335 = arith.index_cast %334 : i32 to index
    %336 = memref.load %arg1[%335] : memref<64xi32, #tpu.memory_space<smem>>
    %c37_i32_148 = arith.constant 37 : i32
    %c37_i32_149 = arith.constant 37 : i32
    %c0_i32_150 = arith.constant 0 : i32
    %337 = tpu.memref_slice %arg2[%336, %c0_i32_150] : memref<50x32xf32, #tpu.memory_space<any>> -> memref<1x32xf32, #tpu.memory_space<any>>
    %338 = tpu.memref_squeeze %337 : memref<1x32xf32, #tpu.memory_space<any>> -> memref<32xf32, #tpu.memory_space<any>>
    %c0_i32_151 = arith.constant 0 : i32
    %339 = tpu.memref_slice %arg3[%c37_i32_148, %c0_i32_151] : memref<64x32xf32, #tpu.memory_space<vmem>> -> memref<1x32xf32, #tpu.memory_space<vmem>>
    %340 = tpu.memref_squeeze %339 : memref<1x32xf32, #tpu.memory_space<vmem>> -> memref<32xf32, #tpu.memory_space<vmem>>
    %341 = tpu.memref_slice %arg4[%c37_i32_149] : memref<64x!tpu.dma_semaphore, #tpu.memory_space<semaphore_mem>> -> memref<1x!tpu.dma_semaphore, #tpu.memory_space<semaphore_mem>>
    %342 = tpu.memref_squeeze %341 : memref<1x!tpu.dma_semaphore, #tpu.memory_space<semaphore_mem>> -> memref<!tpu.dma_semaphore, #tpu.memory_space<semaphore_mem>>
    tpu.enqueue_dma source(%338 : memref<32xf32, #tpu.memory_space<any>>) target(%340 : memref<32xf32, #tpu.memory_space<vmem>>) target_semaphore(%342 : memref<!tpu.dma_semaphore, #tpu.memory_space<semaphore_mem>>)
    %c38_i32 = arith.constant 38 : i32
    %343 = arith.addi %0, %c38_i32 : i32
    %344 = arith.index_cast %343 : i32 to index
    %345 = memref.load %arg1[%344] : memref<64xi32, #tpu.memory_space<smem>>
    %c38_i32_152 = arith.constant 38 : i32
    %c38_i32_153 = arith.constant 38 : i32
    %c0_i32_154 = arith.constant 0 : i32
    %346 = tpu.memref_slice %arg2[%345, %c0_i32_154] : memref<50x32xf32, #tpu.memory_space<any>> -> memref<1x32xf32, #tpu.memory_space<any>>
    %347 = tpu.memref_squeeze %346 : memref<1x32xf32, #tpu.memory_space<any>> -> memref<32xf32, #tpu.memory_space<any>>
    %c0_i32_155 = arith.constant 0 : i32
    %348 = tpu.memref_slice %arg3[%c38_i32_152, %c0_i32_155] : memref<64x32xf32, #tpu.memory_space<vmem>> -> memref<1x32xf32, #tpu.memory_space<vmem>>
    %349 = tpu.memref_squeeze %348 : memref<1x32xf32, #tpu.memory_space<vmem>> -> memref<32xf32, #tpu.memory_space<vmem>>
    %350 = tpu.memref_slice %arg4[%c38_i32_153] : memref<64x!tpu.dma_semaphore, #tpu.memory_space<semaphore_mem>> -> memref<1x!tpu.dma_semaphore, #tpu.memory_space<semaphore_mem>>
    %351 = tpu.memref_squeeze %350 : memref<1x!tpu.dma_semaphore, #tpu.memory_space<semaphore_mem>> -> memref<!tpu.dma_semaphore, #tpu.memory_space<semaphore_mem>>
    tpu.enqueue_dma source(%347 : memref<32xf32, #tpu.memory_space<any>>) target(%349 : memref<32xf32, #tpu.memory_space<vmem>>) target_semaphore(%351 : memref<!tpu.dma_semaphore, #tpu.memory_space<semaphore_mem>>)
    %c39_i32 = arith.constant 39 : i32
    %352 = arith.addi %0, %c39_i32 : i32
    %353 = arith.index_cast %352 : i32 to index
    %354 = memref.load %arg1[%353] : memref<64xi32, #tpu.memory_space<smem>>
    %c39_i32_156 = arith.constant 39 : i32
    %c39_i32_157 = arith.constant 39 : i32
    %c0_i32_158 = arith.constant 0 : i32
    %355 = tpu.memref_slice %arg2[%354, %c0_i32_158] : memref<50x32xf32, #tpu.memory_space<any>> -> memref<1x32xf32, #tpu.memory_space<any>>
    %356 = tpu.memref_squeeze %355 : memref<1x32xf32, #tpu.memory_space<any>> -> memref<32xf32, #tpu.memory_space<any>>
    %c0_i32_159 = arith.constant 0 : i32
    %357 = tpu.memref_slice %arg3[%c39_i32_156, %c0_i32_159] : memref<64x32xf32, #tpu.memory_space<vmem>> -> memref<1x32xf32, #tpu.memory_space<vmem>>
    %358 = tpu.memref_squeeze %357 : memref<1x32xf32, #tpu.memory_space<vmem>> -> memref<32xf32, #tpu.memory_space<vmem>>
    %359 = tpu.memref_slice %arg4[%c39_i32_157] : memref<64x!tpu.dma_semaphore, #tpu.memory_space<semaphore_mem>> -> memref<1x!tpu.dma_semaphore, #tpu.memory_space<semaphore_mem>>
    %360 = tpu.memref_squeeze %359 : memref<1x!tpu.dma_semaphore, #tpu.memory_space<semaphore_mem>> -> memref<!tpu.dma_semaphore, #tpu.memory_space<semaphore_mem>>
    tpu.enqueue_dma source(%356 : memref<32xf32, #tpu.memory_space<any>>) target(%358 : memref<32xf32, #tpu.memory_space<vmem>>) target_semaphore(%360 : memref<!tpu.dma_semaphore, #tpu.memory_space<semaphore_mem>>)
    %c40_i32 = arith.constant 40 : i32
    %361 = arith.addi %0, %c40_i32 : i32
    %362 = arith.index_cast %361 : i32 to index
    %363 = memref.load %arg1[%362] : memref<64xi32, #tpu.memory_space<smem>>
    %c40_i32_160 = arith.constant 40 : i32
    %c40_i32_161 = arith.constant 40 : i32
    %c0_i32_162 = arith.constant 0 : i32
    %364 = tpu.memref_slice %arg2[%363, %c0_i32_162] : memref<50x32xf32, #tpu.memory_space<any>> -> memref<1x32xf32, #tpu.memory_space<any>>
    %365 = tpu.memref_squeeze %364 : memref<1x32xf32, #tpu.memory_space<any>> -> memref<32xf32, #tpu.memory_space<any>>
    %c0_i32_163 = arith.constant 0 : i32
    %366 = tpu.memref_slice %arg3[%c40_i32_160, %c0_i32_163] : memref<64x32xf32, #tpu.memory_space<vmem>> -> memref<1x32xf32, #tpu.memory_space<vmem>>
    %367 = tpu.memref_squeeze %366 : memref<1x32xf32, #tpu.memory_space<vmem>> -> memref<32xf32, #tpu.memory_space<vmem>>
    %368 = tpu.memref_slice %arg4[%c40_i32_161] : memref<64x!tpu.dma_semaphore, #tpu.memory_space<semaphore_mem>> -> memref<1x!tpu.dma_semaphore, #tpu.memory_space<semaphore_mem>>
    %369 = tpu.memref_squeeze %368 : memref<1x!tpu.dma_semaphore, #tpu.memory_space<semaphore_mem>> -> memref<!tpu.dma_semaphore, #tpu.memory_space<semaphore_mem>>
    tpu.enqueue_dma source(%365 : memref<32xf32, #tpu.memory_space<any>>) target(%367 : memref<32xf32, #tpu.memory_space<vmem>>) target_semaphore(%369 : memref<!tpu.dma_semaphore, #tpu.memory_space<semaphore_mem>>)
    %c41_i32 = arith.constant 41 : i32
    %370 = arith.addi %0, %c41_i32 : i32
    %371 = arith.index_cast %370 : i32 to index
    %372 = memref.load %arg1[%371] : memref<64xi32, #tpu.memory_space<smem>>
    %c41_i32_164 = arith.constant 41 : i32
    %c41_i32_165 = arith.constant 41 : i32
    %c0_i32_166 = arith.constant 0 : i32
    %373 = tpu.memref_slice %arg2[%372, %c0_i32_166] : memref<50x32xf32, #tpu.memory_space<any>> -> memref<1x32xf32, #tpu.memory_space<any>>
    %374 = tpu.memref_squeeze %373 : memref<1x32xf32, #tpu.memory_space<any>> -> memref<32xf32, #tpu.memory_space<any>>
    %c0_i32_167 = arith.constant 0 : i32
    %375 = tpu.memref_slice %arg3[%c41_i32_164, %c0_i32_167] : memref<64x32xf32, #tpu.memory_space<vmem>> -> memref<1x32xf32, #tpu.memory_space<vmem>>
    %376 = tpu.memref_squeeze %375 : memref<1x32xf32, #tpu.memory_space<vmem>> -> memref<32xf32, #tpu.memory_space<vmem>>
    %377 = tpu.memref_slice %arg4[%c41_i32_165] : memref<64x!tpu.dma_semaphore, #tpu.memory_space<semaphore_mem>> -> memref<1x!tpu.dma_semaphore, #tpu.memory_space<semaphore_mem>>
    %378 = tpu.memref_squeeze %377 : memref<1x!tpu.dma_semaphore, #tpu.memory_space<semaphore_mem>> -> memref<!tpu.dma_semaphore, #tpu.memory_space<semaphore_mem>>
    tpu.enqueue_dma source(%374 : memref<32xf32, #tpu.memory_space<any>>) target(%376 : memref<32xf32, #tpu.memory_space<vmem>>) target_semaphore(%378 : memref<!tpu.dma_semaphore, #tpu.memory_space<semaphore_mem>>)
    %c42_i32 = arith.constant 42 : i32
    %379 = arith.addi %0, %c42_i32 : i32
    %380 = arith.index_cast %379 : i32 to index
    %381 = memref.load %arg1[%380] : memref<64xi32, #tpu.memory_space<smem>>
    %c42_i32_168 = arith.constant 42 : i32
    %c42_i32_169 = arith.constant 42 : i32
    %c0_i32_170 = arith.constant 0 : i32
    %382 = tpu.memref_slice %arg2[%381, %c0_i32_170] : memref<50x32xf32, #tpu.memory_space<any>> -> memref<1x32xf32, #tpu.memory_space<any>>
    %383 = tpu.memref_squeeze %382 : memref<1x32xf32, #tpu.memory_space<any>> -> memref<32xf32, #tpu.memory_space<any>>
    %c0_i32_171 = arith.constant 0 : i32
    %384 = tpu.memref_slice %arg3[%c42_i32_168, %c0_i32_171] : memref<64x32xf32, #tpu.memory_space<vmem>> -> memref<1x32xf32, #tpu.memory_space<vmem>>
    %385 = tpu.memref_squeeze %384 : memref<1x32xf32, #tpu.memory_space<vmem>> -> memref<32xf32, #tpu.memory_space<vmem>>
    %386 = tpu.memref_slice %arg4[%c42_i32_169] : memref<64x!tpu.dma_semaphore, #tpu.memory_space<semaphore_mem>> -> memref<1x!tpu.dma_semaphore, #tpu.memory_space<semaphore_mem>>
    %387 = tpu.memref_squeeze %386 : memref<1x!tpu.dma_semaphore, #tpu.memory_space<semaphore_mem>> -> memref<!tpu.dma_semaphore, #tpu.memory_space<semaphore_mem>>
    tpu.enqueue_dma source(%383 : memref<32xf32, #tpu.memory_space<any>>) target(%385 : memref<32xf32, #tpu.memory_space<vmem>>) target_semaphore(%387 : memref<!tpu.dma_semaphore, #tpu.memory_space<semaphore_mem>>)
    %c43_i32 = arith.constant 43 : i32
    %388 = arith.addi %0, %c43_i32 : i32
    %389 = arith.index_cast %388 : i32 to index
    %390 = memref.load %arg1[%389] : memref<64xi32, #tpu.memory_space<smem>>
    %c43_i32_172 = arith.constant 43 : i32
    %c43_i32_173 = arith.constant 43 : i32
    %c0_i32_174 = arith.constant 0 : i32
    %391 = tpu.memref_slice %arg2[%390, %c0_i32_174] : memref<50x32xf32, #tpu.memory_space<any>> -> memref<1x32xf32, #tpu.memory_space<any>>
    %392 = tpu.memref_squeeze %391 : memref<1x32xf32, #tpu.memory_space<any>> -> memref<32xf32, #tpu.memory_space<any>>
    %c0_i32_175 = arith.constant 0 : i32
    %393 = tpu.memref_slice %arg3[%c43_i32_172, %c0_i32_175] : memref<64x32xf32, #tpu.memory_space<vmem>> -> memref<1x32xf32, #tpu.memory_space<vmem>>
    %394 = tpu.memref_squeeze %393 : memref<1x32xf32, #tpu.memory_space<vmem>> -> memref<32xf32, #tpu.memory_space<vmem>>
    %395 = tpu.memref_slice %arg4[%c43_i32_173] : memref<64x!tpu.dma_semaphore, #tpu.memory_space<semaphore_mem>> -> memref<1x!tpu.dma_semaphore, #tpu.memory_space<semaphore_mem>>
    %396 = tpu.memref_squeeze %395 : memref<1x!tpu.dma_semaphore, #tpu.memory_space<semaphore_mem>> -> memref<!tpu.dma_semaphore, #tpu.memory_space<semaphore_mem>>
    tpu.enqueue_dma source(%392 : memref<32xf32, #tpu.memory_space<any>>) target(%394 : memref<32xf32, #tpu.memory_space<vmem>>) target_semaphore(%396 : memref<!tpu.dma_semaphore, #tpu.memory_space<semaphore_mem>>)
    %c44_i32 = arith.constant 44 : i32
    %397 = arith.addi %0, %c44_i32 : i32
    %398 = arith.index_cast %397 : i32 to index
    %399 = memref.load %arg1[%398] : memref<64xi32, #tpu.memory_space<smem>>
    %c44_i32_176 = arith.constant 44 : i32
    %c44_i32_177 = arith.constant 44 : i32
    %c0_i32_178 = arith.constant 0 : i32
    %400 = tpu.memref_slice %arg2[%399, %c0_i32_178] : memref<50x32xf32, #tpu.memory_space<any>> -> memref<1x32xf32, #tpu.memory_space<any>>
    %401 = tpu.memref_squeeze %400 : memref<1x32xf32, #tpu.memory_space<any>> -> memref<32xf32, #tpu.memory_space<any>>
    %c0_i32_179 = arith.constant 0 : i32
    %402 = tpu.memref_slice %arg3[%c44_i32_176, %c0_i32_179] : memref<64x32xf32, #tpu.memory_space<vmem>> -> memref<1x32xf32, #tpu.memory_space<vmem>>
    %403 = tpu.memref_squeeze %402 : memref<1x32xf32, #tpu.memory_space<vmem>> -> memref<32xf32, #tpu.memory_space<vmem>>
    %404 = tpu.memref_slice %arg4[%c44_i32_177] : memref<64x!tpu.dma_semaphore, #tpu.memory_space<semaphore_mem>> -> memref<1x!tpu.dma_semaphore, #tpu.memory_space<semaphore_mem>>
    %405 = tpu.memref_squeeze %404 : memref<1x!tpu.dma_semaphore, #tpu.memory_space<semaphore_mem>> -> memref<!tpu.dma_semaphore, #tpu.memory_space<semaphore_mem>>
    tpu.enqueue_dma source(%401 : memref<32xf32, #tpu.memory_space<any>>) target(%403 : memref<32xf32, #tpu.memory_space<vmem>>) target_semaphore(%405 : memref<!tpu.dma_semaphore, #tpu.memory_space<semaphore_mem>>)
    %c45_i32 = arith.constant 45 : i32
    %406 = arith.addi %0, %c45_i32 : i32
    %407 = arith.index_cast %406 : i32 to index
    %408 = memref.load %arg1[%407] : memref<64xi32, #tpu.memory_space<smem>>
    %c45_i32_180 = arith.constant 45 : i32
    %c45_i32_181 = arith.constant 45 : i32
    %c0_i32_182 = arith.constant 0 : i32
    %409 = tpu.memref_slice %arg2[%408, %c0_i32_182] : memref<50x32xf32, #tpu.memory_space<any>> -> memref<1x32xf32, #tpu.memory_space<any>>
    %410 = tpu.memref_squeeze %409 : memref<1x32xf32, #tpu.memory_space<any>> -> memref<32xf32, #tpu.memory_space<any>>
    %c0_i32_183 = arith.constant 0 : i32
    %411 = tpu.memref_slice %arg3[%c45_i32_180, %c0_i32_183] : memref<64x32xf32, #tpu.memory_space<vmem>> -> memref<1x32xf32, #tpu.memory_space<vmem>>
    %412 = tpu.memref_squeeze %411 : memref<1x32xf32, #tpu.memory_space<vmem>> -> memref<32xf32, #tpu.memory_space<vmem>>
    %413 = tpu.memref_slice %arg4[%c45_i32_181] : memref<64x!tpu.dma_semaphore, #tpu.memory_space<semaphore_mem>> -> memref<1x!tpu.dma_semaphore, #tpu.memory_space<semaphore_mem>>
    %414 = tpu.memref_squeeze %413 : memref<1x!tpu.dma_semaphore, #tpu.memory_space<semaphore_mem>> -> memref<!tpu.dma_semaphore, #tpu.memory_space<semaphore_mem>>
    tpu.enqueue_dma source(%410 : memref<32xf32, #tpu.memory_space<any>>) target(%412 : memref<32xf32, #tpu.memory_space<vmem>>) target_semaphore(%414 : memref<!tpu.dma_semaphore, #tpu.memory_space<semaphore_mem>>)
    %c46_i32 = arith.constant 46 : i32
    %415 = arith.addi %0, %c46_i32 : i32
    %416 = arith.index_cast %415 : i32 to index
    %417 = memref.load %arg1[%416] : memref<64xi32, #tpu.memory_space<smem>>
    %c46_i32_184 = arith.constant 46 : i32
    %c46_i32_185 = arith.constant 46 : i32
    %c0_i32_186 = arith.constant 0 : i32
    %418 = tpu.memref_slice %arg2[%417, %c0_i32_186] : memref<50x32xf32, #tpu.memory_space<any>> -> memref<1x32xf32, #tpu.memory_space<any>>
    %419 = tpu.memref_squeeze %418 : memref<1x32xf32, #tpu.memory_space<any>> -> memref<32xf32, #tpu.memory_space<any>>
    %c0_i32_187 = arith.constant 0 : i32
    %420 = tpu.memref_slice %arg3[%c46_i32_184, %c0_i32_187] : memref<64x32xf32, #tpu.memory_space<vmem>> -> memref<1x32xf32, #tpu.memory_space<vmem>>
    %421 = tpu.memref_squeeze %420 : memref<1x32xf32, #tpu.memory_space<vmem>> -> memref<32xf32, #tpu.memory_space<vmem>>
    %422 = tpu.memref_slice %arg4[%c46_i32_185] : memref<64x!tpu.dma_semaphore, #tpu.memory_space<semaphore_mem>> -> memref<1x!tpu.dma_semaphore, #tpu.memory_space<semaphore_mem>>
    %423 = tpu.memref_squeeze %422 : memref<1x!tpu.dma_semaphore, #tpu.memory_space<semaphore_mem>> -> memref<!tpu.dma_semaphore, #tpu.memory_space<semaphore_mem>>
    tpu.enqueue_dma source(%419 : memref<32xf32, #tpu.memory_space<any>>) target(%421 : memref<32xf32, #tpu.memory_space<vmem>>) target_semaphore(%423 : memref<!tpu.dma_semaphore, #tpu.memory_space<semaphore_mem>>)
    %c47_i32 = arith.constant 47 : i32
    %424 = arith.addi %0, %c47_i32 : i32
    %425 = arith.index_cast %424 : i32 to index
    %426 = memref.load %arg1[%425] : memref<64xi32, #tpu.memory_space<smem>>
    %c47_i32_188 = arith.constant 47 : i32
    %c47_i32_189 = arith.constant 47 : i32
    %c0_i32_190 = arith.constant 0 : i32
    %427 = tpu.memref_slice %arg2[%426, %c0_i32_190] : memref<50x32xf32, #tpu.memory_space<any>> -> memref<1x32xf32, #tpu.memory_space<any>>
    %428 = tpu.memref_squeeze %427 : memref<1x32xf32, #tpu.memory_space<any>> -> memref<32xf32, #tpu.memory_space<any>>
    %c0_i32_191 = arith.constant 0 : i32
    %429 = tpu.memref_slice %arg3[%c47_i32_188, %c0_i32_191] : memref<64x32xf32, #tpu.memory_space<vmem>> -> memref<1x32xf32, #tpu.memory_space<vmem>>
    %430 = tpu.memref_squeeze %429 : memref<1x32xf32, #tpu.memory_space<vmem>> -> memref<32xf32, #tpu.memory_space<vmem>>
    %431 = tpu.memref_slice %arg4[%c47_i32_189] : memref<64x!tpu.dma_semaphore, #tpu.memory_space<semaphore_mem>> -> memref<1x!tpu.dma_semaphore, #tpu.memory_space<semaphore_mem>>
    %432 = tpu.memref_squeeze %431 : memref<1x!tpu.dma_semaphore, #tpu.memory_space<semaphore_mem>> -> memref<!tpu.dma_semaphore, #tpu.memory_space<semaphore_mem>>
    tpu.enqueue_dma source(%428 : memref<32xf32, #tpu.memory_space<any>>) target(%430 : memref<32xf32, #tpu.memory_space<vmem>>) target_semaphore(%432 : memref<!tpu.dma_semaphore, #tpu.memory_space<semaphore_mem>>)
    %c48_i32 = arith.constant 48 : i32
    %433 = arith.addi %0, %c48_i32 : i32
    %434 = arith.index_cast %433 : i32 to index
    %435 = memref.load %arg1[%434] : memref<64xi32, #tpu.memory_space<smem>>
    %c48_i32_192 = arith.constant 48 : i32
    %c48_i32_193 = arith.constant 48 : i32
    %c0_i32_194 = arith.constant 0 : i32
    %436 = tpu.memref_slice %arg2[%435, %c0_i32_194] : memref<50x32xf32, #tpu.memory_space<any>> -> memref<1x32xf32, #tpu.memory_space<any>>
    %437 = tpu.memref_squeeze %436 : memref<1x32xf32, #tpu.memory_space<any>> -> memref<32xf32, #tpu.memory_space<any>>
    %c0_i32_195 = arith.constant 0 : i32
    %438 = tpu.memref_slice %arg3[%c48_i32_192, %c0_i32_195] : memref<64x32xf32, #tpu.memory_space<vmem>> -> memref<1x32xf32, #tpu.memory_space<vmem>>
    %439 = tpu.memref_squeeze %438 : memref<1x32xf32, #tpu.memory_space<vmem>> -> memref<32xf32, #tpu.memory_space<vmem>>
    %440 = tpu.memref_slice %arg4[%c48_i32_193] : memref<64x!tpu.dma_semaphore, #tpu.memory_space<semaphore_mem>> -> memref<1x!tpu.dma_semaphore, #tpu.memory_space<semaphore_mem>>
    %441 = tpu.memref_squeeze %440 : memref<1x!tpu.dma_semaphore, #tpu.memory_space<semaphore_mem>> -> memref<!tpu.dma_semaphore, #tpu.memory_space<semaphore_mem>>
    tpu.enqueue_dma source(%437 : memref<32xf32, #tpu.memory_space<any>>) target(%439 : memref<32xf32, #tpu.memory_space<vmem>>) target_semaphore(%441 : memref<!tpu.dma_semaphore, #tpu.memory_space<semaphore_mem>>)
    %c49_i32 = arith.constant 49 : i32
    %442 = arith.addi %0, %c49_i32 : i32
    %443 = arith.index_cast %442 : i32 to index
    %444 = memref.load %arg1[%443] : memref<64xi32, #tpu.memory_space<smem>>
    %c49_i32_196 = arith.constant 49 : i32
    %c49_i32_197 = arith.constant 49 : i32
    %c0_i32_198 = arith.constant 0 : i32
    %445 = tpu.memref_slice %arg2[%444, %c0_i32_198] : memref<50x32xf32, #tpu.memory_space<any>> -> memref<1x32xf32, #tpu.memory_space<any>>
    %446 = tpu.memref_squeeze %445 : memref<1x32xf32, #tpu.memory_space<any>> -> memref<32xf32, #tpu.memory_space<any>>
    %c0_i32_199 = arith.constant 0 : i32
    %447 = tpu.memref_slice %arg3[%c49_i32_196, %c0_i32_199] : memref<64x32xf32, #tpu.memory_space<vmem>> -> memref<1x32xf32, #tpu.memory_space<vmem>>
    %448 = tpu.memref_squeeze %447 : memref<1x32xf32, #tpu.memory_space<vmem>> -> memref<32xf32, #tpu.memory_space<vmem>>
    %449 = tpu.memref_slice %arg4[%c49_i32_197] : memref<64x!tpu.dma_semaphore, #tpu.memory_space<semaphore_mem>> -> memref<1x!tpu.dma_semaphore, #tpu.memory_space<semaphore_mem>>
    %450 = tpu.memref_squeeze %449 : memref<1x!tpu.dma_semaphore, #tpu.memory_space<semaphore_mem>> -> memref<!tpu.dma_semaphore, #tpu.memory_space<semaphore_mem>>
    tpu.enqueue_dma source(%446 : memref<32xf32, #tpu.memory_space<any>>) target(%448 : memref<32xf32, #tpu.memory_space<vmem>>) target_semaphore(%450 : memref<!tpu.dma_semaphore, #tpu.memory_space<semaphore_mem>>)
    %c50_i32 = arith.constant 50 : i32
    %451 = arith.addi %0, %c50_i32 : i32
    %452 = arith.index_cast %451 : i32 to index
    %453 = memref.load %arg1[%452] : memref<64xi32, #tpu.memory_space<smem>>
    %c50_i32_200 = arith.constant 50 : i32
    %c50_i32_201 = arith.constant 50 : i32
    %c0_i32_202 = arith.constant 0 : i32
    %454 = tpu.memref_slice %arg2[%453, %c0_i32_202] : memref<50x32xf32, #tpu.memory_space<any>> -> memref<1x32xf32, #tpu.memory_space<any>>
    %455 = tpu.memref_squeeze %454 : memref<1x32xf32, #tpu.memory_space<any>> -> memref<32xf32, #tpu.memory_space<any>>
    %c0_i32_203 = arith.constant 0 : i32
    %456 = tpu.memref_slice %arg3[%c50_i32_200, %c0_i32_203] : memref<64x32xf32, #tpu.memory_space<vmem>> -> memref<1x32xf32, #tpu.memory_space<vmem>>
    %457 = tpu.memref_squeeze %456 : memref<1x32xf32, #tpu.memory_space<vmem>> -> memref<32xf32, #tpu.memory_space<vmem>>
    %458 = tpu.memref_slice %arg4[%c50_i32_201] : memref<64x!tpu.dma_semaphore, #tpu.memory_space<semaphore_mem>> -> memref<1x!tpu.dma_semaphore, #tpu.memory_space<semaphore_mem>>
    %459 = tpu.memref_squeeze %458 : memref<1x!tpu.dma_semaphore, #tpu.memory_space<semaphore_mem>> -> memref<!tpu.dma_semaphore, #tpu.memory_space<semaphore_mem>>
    tpu.enqueue_dma source(%455 : memref<32xf32, #tpu.memory_space<any>>) target(%457 : memref<32xf32, #tpu.memory_space<vmem>>) target_semaphore(%459 : memref<!tpu.dma_semaphore, #tpu.memory_space<semaphore_mem>>)
    %c51_i32 = arith.constant 51 : i32
    %460 = arith.addi %0, %c51_i32 : i32
    %461 = arith.index_cast %460 : i32 to index
    %462 = memref.load %arg1[%461] : memref<64xi32, #tpu.memory_space<smem>>
    %c51_i32_204 = arith.constant 51 : i32
    %c51_i32_205 = arith.constant 51 : i32
    %c0_i32_206 = arith.constant 0 : i32
    %463 = tpu.memref_slice %arg2[%462, %c0_i32_206] : memref<50x32xf32, #tpu.memory_space<any>> -> memref<1x32xf32, #tpu.memory_space<any>>
    %464 = tpu.memref_squeeze %463 : memref<1x32xf32, #tpu.memory_space<any>> -> memref<32xf32, #tpu.memory_space<any>>
    %c0_i32_207 = arith.constant 0 : i32
    %465 = tpu.memref_slice %arg3[%c51_i32_204, %c0_i32_207] : memref<64x32xf32, #tpu.memory_space<vmem>> -> memref<1x32xf32, #tpu.memory_space<vmem>>
    %466 = tpu.memref_squeeze %465 : memref<1x32xf32, #tpu.memory_space<vmem>> -> memref<32xf32, #tpu.memory_space<vmem>>
    %467 = tpu.memref_slice %arg4[%c51_i32_205] : memref<64x!tpu.dma_semaphore, #tpu.memory_space<semaphore_mem>> -> memref<1x!tpu.dma_semaphore, #tpu.memory_space<semaphore_mem>>
    %468 = tpu.memref_squeeze %467 : memref<1x!tpu.dma_semaphore, #tpu.memory_space<semaphore_mem>> -> memref<!tpu.dma_semaphore, #tpu.memory_space<semaphore_mem>>
    tpu.enqueue_dma source(%464 : memref<32xf32, #tpu.memory_space<any>>) target(%466 : memref<32xf32, #tpu.memory_space<vmem>>) target_semaphore(%468 : memref<!tpu.dma_semaphore, #tpu.memory_space<semaphore_mem>>)
    %c52_i32 = arith.constant 52 : i32
    %469 = arith.addi %0, %c52_i32 : i32
    %470 = arith.index_cast %469 : i32 to index
    %471 = memref.load %arg1[%470] : memref<64xi32, #tpu.memory_space<smem>>
    %c52_i32_208 = arith.constant 52 : i32
    %c52_i32_209 = arith.constant 52 : i32
    %c0_i32_210 = arith.constant 0 : i32
    %472 = tpu.memref_slice %arg2[%471, %c0_i32_210] : memref<50x32xf32, #tpu.memory_space<any>> -> memref<1x32xf32, #tpu.memory_space<any>>
    %473 = tpu.memref_squeeze %472 : memref<1x32xf32, #tpu.memory_space<any>> -> memref<32xf32, #tpu.memory_space<any>>
    %c0_i32_211 = arith.constant 0 : i32
    %474 = tpu.memref_slice %arg3[%c52_i32_208, %c0_i32_211] : memref<64x32xf32, #tpu.memory_space<vmem>> -> memref<1x32xf32, #tpu.memory_space<vmem>>
    %475 = tpu.memref_squeeze %474 : memref<1x32xf32, #tpu.memory_space<vmem>> -> memref<32xf32, #tpu.memory_space<vmem>>
    %476 = tpu.memref_slice %arg4[%c52_i32_209] : memref<64x!tpu.dma_semaphore, #tpu.memory_space<semaphore_mem>> -> memref<1x!tpu.dma_semaphore, #tpu.memory_space<semaphore_mem>>
    %477 = tpu.memref_squeeze %476 : memref<1x!tpu.dma_semaphore, #tpu.memory_space<semaphore_mem>> -> memref<!tpu.dma_semaphore, #tpu.memory_space<semaphore_mem>>
    tpu.enqueue_dma source(%473 : memref<32xf32, #tpu.memory_space<any>>) target(%475 : memref<32xf32, #tpu.memory_space<vmem>>) target_semaphore(%477 : memref<!tpu.dma_semaphore, #tpu.memory_space<semaphore_mem>>)
    %c53_i32 = arith.constant 53 : i32
    %478 = arith.addi %0, %c53_i32 : i32
    %479 = arith.index_cast %478 : i32 to index
    %480 = memref.load %arg1[%479] : memref<64xi32, #tpu.memory_space<smem>>
    %c53_i32_212 = arith.constant 53 : i32
    %c53_i32_213 = arith.constant 53 : i32
    %c0_i32_214 = arith.constant 0 : i32
    %481 = tpu.memref_slice %arg2[%480, %c0_i32_214] : memref<50x32xf32, #tpu.memory_space<any>> -> memref<1x32xf32, #tpu.memory_space<any>>
    %482 = tpu.memref_squeeze %481 : memref<1x32xf32, #tpu.memory_space<any>> -> memref<32xf32, #tpu.memory_space<any>>
    %c0_i32_215 = arith.constant 0 : i32
    %483 = tpu.memref_slice %arg3[%c53_i32_212, %c0_i32_215] : memref<64x32xf32, #tpu.memory_space<vmem>> -> memref<1x32xf32, #tpu.memory_space<vmem>>
    %484 = tpu.memref_squeeze %483 : memref<1x32xf32, #tpu.memory_space<vmem>> -> memref<32xf32, #tpu.memory_space<vmem>>
    %485 = tpu.memref_slice %arg4[%c53_i32_213] : memref<64x!tpu.dma_semaphore, #tpu.memory_space<semaphore_mem>> -> memref<1x!tpu.dma_semaphore, #tpu.memory_space<semaphore_mem>>
    %486 = tpu.memref_squeeze %485 : memref<1x!tpu.dma_semaphore, #tpu.memory_space<semaphore_mem>> -> memref<!tpu.dma_semaphore, #tpu.memory_space<semaphore_mem>>
    tpu.enqueue_dma source(%482 : memref<32xf32, #tpu.memory_space<any>>) target(%484 : memref<32xf32, #tpu.memory_space<vmem>>) target_semaphore(%486 : memref<!tpu.dma_semaphore, #tpu.memory_space<semaphore_mem>>)
    %c54_i32 = arith.constant 54 : i32
    %487 = arith.addi %0, %c54_i32 : i32
    %488 = arith.index_cast %487 : i32 to index
    %489 = memref.load %arg1[%488] : memref<64xi32, #tpu.memory_space<smem>>
    %c54_i32_216 = arith.constant 54 : i32
    %c54_i32_217 = arith.constant 54 : i32
    %c0_i32_218 = arith.constant 0 : i32
    %490 = tpu.memref_slice %arg2[%489, %c0_i32_218] : memref<50x32xf32, #tpu.memory_space<any>> -> memref<1x32xf32, #tpu.memory_space<any>>
    %491 = tpu.memref_squeeze %490 : memref<1x32xf32, #tpu.memory_space<any>> -> memref<32xf32, #tpu.memory_space<any>>
    %c0_i32_219 = arith.constant 0 : i32
    %492 = tpu.memref_slice %arg3[%c54_i32_216, %c0_i32_219] : memref<64x32xf32, #tpu.memory_space<vmem>> -> memref<1x32xf32, #tpu.memory_space<vmem>>
    %493 = tpu.memref_squeeze %492 : memref<1x32xf32, #tpu.memory_space<vmem>> -> memref<32xf32, #tpu.memory_space<vmem>>
    %494 = tpu.memref_slice %arg4[%c54_i32_217] : memref<64x!tpu.dma_semaphore, #tpu.memory_space<semaphore_mem>> -> memref<1x!tpu.dma_semaphore, #tpu.memory_space<semaphore_mem>>
    %495 = tpu.memref_squeeze %494 : memref<1x!tpu.dma_semaphore, #tpu.memory_space<semaphore_mem>> -> memref<!tpu.dma_semaphore, #tpu.memory_space<semaphore_mem>>
    tpu.enqueue_dma source(%491 : memref<32xf32, #tpu.memory_space<any>>) target(%493 : memref<32xf32, #tpu.memory_space<vmem>>) target_semaphore(%495 : memref<!tpu.dma_semaphore, #tpu.memory_space<semaphore_mem>>)
    %c55_i32 = arith.constant 55 : i32
    %496 = arith.addi %0, %c55_i32 : i32
    %497 = arith.index_cast %496 : i32 to index
    %498 = memref.load %arg1[%497] : memref<64xi32, #tpu.memory_space<smem>>
    %c55_i32_220 = arith.constant 55 : i32
    %c55_i32_221 = arith.constant 55 : i32
    %c0_i32_222 = arith.constant 0 : i32
    %499 = tpu.memref_slice %arg2[%498, %c0_i32_222] : memref<50x32xf32, #tpu.memory_space<any>> -> memref<1x32xf32, #tpu.memory_space<any>>
    %500 = tpu.memref_squeeze %499 : memref<1x32xf32, #tpu.memory_space<any>> -> memref<32xf32, #tpu.memory_space<any>>
    %c0_i32_223 = arith.constant 0 : i32
    %501 = tpu.memref_slice %arg3[%c55_i32_220, %c0_i32_223] : memref<64x32xf32, #tpu.memory_space<vmem>> -> memref<1x32xf32, #tpu.memory_space<vmem>>
    %502 = tpu.memref_squeeze %501 : memref<1x32xf32, #tpu.memory_space<vmem>> -> memref<32xf32, #tpu.memory_space<vmem>>
    %503 = tpu.memref_slice %arg4[%c55_i32_221] : memref<64x!tpu.dma_semaphore, #tpu.memory_space<semaphore_mem>> -> memref<1x!tpu.dma_semaphore, #tpu.memory_space<semaphore_mem>>
    %504 = tpu.memref_squeeze %503 : memref<1x!tpu.dma_semaphore, #tpu.memory_space<semaphore_mem>> -> memref<!tpu.dma_semaphore, #tpu.memory_space<semaphore_mem>>
    tpu.enqueue_dma source(%500 : memref<32xf32, #tpu.memory_space<any>>) target(%502 : memref<32xf32, #tpu.memory_space<vmem>>) target_semaphore(%504 : memref<!tpu.dma_semaphore, #tpu.memory_space<semaphore_mem>>)
    %c56_i32 = arith.constant 56 : i32
    %505 = arith.addi %0, %c56_i32 : i32
    %506 = arith.index_cast %505 : i32 to index
    %507 = memref.load %arg1[%506] : memref<64xi32, #tpu.memory_space<smem>>
    %c56_i32_224 = arith.constant 56 : i32
    %c56_i32_225 = arith.constant 56 : i32
    %c0_i32_226 = arith.constant 0 : i32
    %508 = tpu.memref_slice %arg2[%507, %c0_i32_226] : memref<50x32xf32, #tpu.memory_space<any>> -> memref<1x32xf32, #tpu.memory_space<any>>
    %509 = tpu.memref_squeeze %508 : memref<1x32xf32, #tpu.memory_space<any>> -> memref<32xf32, #tpu.memory_space<any>>
    %c0_i32_227 = arith.constant 0 : i32
    %510 = tpu.memref_slice %arg3[%c56_i32_224, %c0_i32_227] : memref<64x32xf32, #tpu.memory_space<vmem>> -> memref<1x32xf32, #tpu.memory_space<vmem>>
    %511 = tpu.memref_squeeze %510 : memref<1x32xf32, #tpu.memory_space<vmem>> -> memref<32xf32, #tpu.memory_space<vmem>>
    %512 = tpu.memref_slice %arg4[%c56_i32_225] : memref<64x!tpu.dma_semaphore, #tpu.memory_space<semaphore_mem>> -> memref<1x!tpu.dma_semaphore, #tpu.memory_space<semaphore_mem>>
    %513 = tpu.memref_squeeze %512 : memref<1x!tpu.dma_semaphore, #tpu.memory_space<semaphore_mem>> -> memref<!tpu.dma_semaphore, #tpu.memory_space<semaphore_mem>>
    tpu.enqueue_dma source(%509 : memref<32xf32, #tpu.memory_space<any>>) target(%511 : memref<32xf32, #tpu.memory_space<vmem>>) target_semaphore(%513 : memref<!tpu.dma_semaphore, #tpu.memory_space<semaphore_mem>>)
    %c57_i32 = arith.constant 57 : i32
    %514 = arith.addi %0, %c57_i32 : i32
    %515 = arith.index_cast %514 : i32 to index
    %516 = memref.load %arg1[%515] : memref<64xi32, #tpu.memory_space<smem>>
    %c57_i32_228 = arith.constant 57 : i32
    %c57_i32_229 = arith.constant 57 : i32
    %c0_i32_230 = arith.constant 0 : i32
    %517 = tpu.memref_slice %arg2[%516, %c0_i32_230] : memref<50x32xf32, #tpu.memory_space<any>> -> memref<1x32xf32, #tpu.memory_space<any>>
    %518 = tpu.memref_squeeze %517 : memref<1x32xf32, #tpu.memory_space<any>> -> memref<32xf32, #tpu.memory_space<any>>
    %c0_i32_231 = arith.constant 0 : i32
    %519 = tpu.memref_slice %arg3[%c57_i32_228, %c0_i32_231] : memref<64x32xf32, #tpu.memory_space<vmem>> -> memref<1x32xf32, #tpu.memory_space<vmem>>
    %520 = tpu.memref_squeeze %519 : memref<1x32xf32, #tpu.memory_space<vmem>> -> memref<32xf32, #tpu.memory_space<vmem>>
    %521 = tpu.memref_slice %arg4[%c57_i32_229] : memref<64x!tpu.dma_semaphore, #tpu.memory_space<semaphore_mem>> -> memref<1x!tpu.dma_semaphore, #tpu.memory_space<semaphore_mem>>
    %522 = tpu.memref_squeeze %521 : memref<1x!tpu.dma_semaphore, #tpu.memory_space<semaphore_mem>> -> memref<!tpu.dma_semaphore, #tpu.memory_space<semaphore_mem>>
    tpu.enqueue_dma source(%518 : memref<32xf32, #tpu.memory_space<any>>) target(%520 : memref<32xf32, #tpu.memory_space<vmem>>) target_semaphore(%522 : memref<!tpu.dma_semaphore, #tpu.memory_space<semaphore_mem>>)
    %c58_i32 = arith.constant 58 : i32
    %523 = arith.addi %0, %c58_i32 : i32
    %524 = arith.index_cast %523 : i32 to index
    %525 = memref.load %arg1[%524] : memref<64xi32, #tpu.memory_space<smem>>
    %c58_i32_232 = arith.constant 58 : i32
    %c58_i32_233 = arith.constant 58 : i32
    %c0_i32_234 = arith.constant 0 : i32
    %526 = tpu.memref_slice %arg2[%525, %c0_i32_234] : memref<50x32xf32, #tpu.memory_space<any>> -> memref<1x32xf32, #tpu.memory_space<any>>
    %527 = tpu.memref_squeeze %526 : memref<1x32xf32, #tpu.memory_space<any>> -> memref<32xf32, #tpu.memory_space<any>>
    %c0_i32_235 = arith.constant 0 : i32
    %528 = tpu.memref_slice %arg3[%c58_i32_232, %c0_i32_235] : memref<64x32xf32, #tpu.memory_space<vmem>> -> memref<1x32xf32, #tpu.memory_space<vmem>>
    %529 = tpu.memref_squeeze %528 : memref<1x32xf32, #tpu.memory_space<vmem>> -> memref<32xf32, #tpu.memory_space<vmem>>
    %530 = tpu.memref_slice %arg4[%c58_i32_233] : memref<64x!tpu.dma_semaphore, #tpu.memory_space<semaphore_mem>> -> memref<1x!tpu.dma_semaphore, #tpu.memory_space<semaphore_mem>>
    %531 = tpu.memref_squeeze %530 : memref<1x!tpu.dma_semaphore, #tpu.memory_space<semaphore_mem>> -> memref<!tpu.dma_semaphore, #tpu.memory_space<semaphore_mem>>
    tpu.enqueue_dma source(%527 : memref<32xf32, #tpu.memory_space<any>>) target(%529 : memref<32xf32, #tpu.memory_space<vmem>>) target_semaphore(%531 : memref<!tpu.dma_semaphore, #tpu.memory_space<semaphore_mem>>)
    %c59_i32 = arith.constant 59 : i32
    %532 = arith.addi %0, %c59_i32 : i32
    %533 = arith.index_cast %532 : i32 to index
    %534 = memref.load %arg1[%533] : memref<64xi32, #tpu.memory_space<smem>>
    %c59_i32_236 = arith.constant 59 : i32
    %c59_i32_237 = arith.constant 59 : i32
    %c0_i32_238 = arith.constant 0 : i32
    %535 = tpu.memref_slice %arg2[%534, %c0_i32_238] : memref<50x32xf32, #tpu.memory_space<any>> -> memref<1x32xf32, #tpu.memory_space<any>>
    %536 = tpu.memref_squeeze %535 : memref<1x32xf32, #tpu.memory_space<any>> -> memref<32xf32, #tpu.memory_space<any>>
    %c0_i32_239 = arith.constant 0 : i32
    %537 = tpu.memref_slice %arg3[%c59_i32_236, %c0_i32_239] : memref<64x32xf32, #tpu.memory_space<vmem>> -> memref<1x32xf32, #tpu.memory_space<vmem>>
    %538 = tpu.memref_squeeze %537 : memref<1x32xf32, #tpu.memory_space<vmem>> -> memref<32xf32, #tpu.memory_space<vmem>>
    %539 = tpu.memref_slice %arg4[%c59_i32_237] : memref<64x!tpu.dma_semaphore, #tpu.memory_space<semaphore_mem>> -> memref<1x!tpu.dma_semaphore, #tpu.memory_space<semaphore_mem>>
    %540 = tpu.memref_squeeze %539 : memref<1x!tpu.dma_semaphore, #tpu.memory_space<semaphore_mem>> -> memref<!tpu.dma_semaphore, #tpu.memory_space<semaphore_mem>>
    tpu.enqueue_dma source(%536 : memref<32xf32, #tpu.memory_space<any>>) target(%538 : memref<32xf32, #tpu.memory_space<vmem>>) target_semaphore(%540 : memref<!tpu.dma_semaphore, #tpu.memory_space<semaphore_mem>>)
    %c60_i32 = arith.constant 60 : i32
    %541 = arith.addi %0, %c60_i32 : i32
    %542 = arith.index_cast %541 : i32 to index
    %543 = memref.load %arg1[%542] : memref<64xi32, #tpu.memory_space<smem>>
    %c60_i32_240 = arith.constant 60 : i32
    %c60_i32_241 = arith.constant 60 : i32
    %c0_i32_242 = arith.constant 0 : i32
    %544 = tpu.memref_slice %arg2[%543, %c0_i32_242] : memref<50x32xf32, #tpu.memory_space<any>> -> memref<1x32xf32, #tpu.memory_space<any>>
    %545 = tpu.memref_squeeze %544 : memref<1x32xf32, #tpu.memory_space<any>> -> memref<32xf32, #tpu.memory_space<any>>
    %c0_i32_243 = arith.constant 0 : i32
    %546 = tpu.memref_slice %arg3[%c60_i32_240, %c0_i32_243] : memref<64x32xf32, #tpu.memory_space<vmem>> -> memref<1x32xf32, #tpu.memory_space<vmem>>
    %547 = tpu.memref_squeeze %546 : memref<1x32xf32, #tpu.memory_space<vmem>> -> memref<32xf32, #tpu.memory_space<vmem>>
    %548 = tpu.memref_slice %arg4[%c60_i32_241] : memref<64x!tpu.dma_semaphore, #tpu.memory_space<semaphore_mem>> -> memref<1x!tpu.dma_semaphore, #tpu.memory_space<semaphore_mem>>
    %549 = tpu.memref_squeeze %548 : memref<1x!tpu.dma_semaphore, #tpu.memory_space<semaphore_mem>> -> memref<!tpu.dma_semaphore, #tpu.memory_space<semaphore_mem>>
    tpu.enqueue_dma source(%545 : memref<32xf32, #tpu.memory_space<any>>) target(%547 : memref<32xf32, #tpu.memory_space<vmem>>) target_semaphore(%549 : memref<!tpu.dma_semaphore, #tpu.memory_space<semaphore_mem>>)
    %c61_i32 = arith.constant 61 : i32
    %550 = arith.addi %0, %c61_i32 : i32
    %551 = arith.index_cast %550 : i32 to index
    %552 = memref.load %arg1[%551] : memref<64xi32, #tpu.memory_space<smem>>
    %c61_i32_244 = arith.constant 61 : i32
    %c61_i32_245 = arith.constant 61 : i32
    %c0_i32_246 = arith.constant 0 : i32
    %553 = tpu.memref_slice %arg2[%552, %c0_i32_246] : memref<50x32xf32, #tpu.memory_space<any>> -> memref<1x32xf32, #tpu.memory_space<any>>
    %554 = tpu.memref_squeeze %553 : memref<1x32xf32, #tpu.memory_space<any>> -> memref<32xf32, #tpu.memory_space<any>>
    %c0_i32_247 = arith.constant 0 : i32
    %555 = tpu.memref_slice %arg3[%c61_i32_244, %c0_i32_247] : memref<64x32xf32, #tpu.memory_space<vmem>> -> memref<1x32xf32, #tpu.memory_space<vmem>>
    %556 = tpu.memref_squeeze %555 : memref<1x32xf32, #tpu.memory_space<vmem>> -> memref<32xf32, #tpu.memory_space<vmem>>
    %557 = tpu.memref_slice %arg4[%c61_i32_245] : memref<64x!tpu.dma_semaphore, #tpu.memory_space<semaphore_mem>> -> memref<1x!tpu.dma_semaphore, #tpu.memory_space<semaphore_mem>>
    %558 = tpu.memref_squeeze %557 : memref<1x!tpu.dma_semaphore, #tpu.memory_space<semaphore_mem>> -> memref<!tpu.dma_semaphore, #tpu.memory_space<semaphore_mem>>
    tpu.enqueue_dma source(%554 : memref<32xf32, #tpu.memory_space<any>>) target(%556 : memref<32xf32, #tpu.memory_space<vmem>>) target_semaphore(%558 : memref<!tpu.dma_semaphore, #tpu.memory_space<semaphore_mem>>)
    %c62_i32 = arith.constant 62 : i32
    %559 = arith.addi %0, %c62_i32 : i32
    %560 = arith.index_cast %559 : i32 to index
    %561 = memref.load %arg1[%560] : memref<64xi32, #tpu.memory_space<smem>>
    %c62_i32_248 = arith.constant 62 : i32
    %c62_i32_249 = arith.constant 62 : i32
    %c0_i32_250 = arith.constant 0 : i32
    %562 = tpu.memref_slice %arg2[%561, %c0_i32_250] : memref<50x32xf32, #tpu.memory_space<any>> -> memref<1x32xf32, #tpu.memory_space<any>>
    %563 = tpu.memref_squeeze %562 : memref<1x32xf32, #tpu.memory_space<any>> -> memref<32xf32, #tpu.memory_space<any>>
    %c0_i32_251 = arith.constant 0 : i32
    %564 = tpu.memref_slice %arg3[%c62_i32_248, %c0_i32_251] : memref<64x32xf32, #tpu.memory_space<vmem>> -> memref<1x32xf32, #tpu.memory_space<vmem>>
    %565 = tpu.memref_squeeze %564 : memref<1x32xf32, #tpu.memory_space<vmem>> -> memref<32xf32, #tpu.memory_space<vmem>>
    %566 = tpu.memref_slice %arg4[%c62_i32_249] : memref<64x!tpu.dma_semaphore, #tpu.memory_space<semaphore_mem>> -> memref<1x!tpu.dma_semaphore, #tpu.memory_space<semaphore_mem>>
    %567 = tpu.memref_squeeze %566 : memref<1x!tpu.dma_semaphore, #tpu.memory_space<semaphore_mem>> -> memref<!tpu.dma_semaphore, #tpu.memory_space<semaphore_mem>>
    tpu.enqueue_dma source(%563 : memref<32xf32, #tpu.memory_space<any>>) target(%565 : memref<32xf32, #tpu.memory_space<vmem>>) target_semaphore(%567 : memref<!tpu.dma_semaphore, #tpu.memory_space<semaphore_mem>>)
    %c63_i32 = arith.constant 63 : i32
    %568 = arith.addi %0, %c63_i32 : i32
    %569 = arith.index_cast %568 : i32 to index
    %570 = memref.load %arg1[%569] : memref<64xi32, #tpu.memory_space<smem>>
    %c63_i32_252 = arith.constant 63 : i32
    %c63_i32_253 = arith.constant 63 : i32
    %c0_i32_254 = arith.constant 0 : i32
    %571 = tpu.memref_slice %arg2[%570, %c0_i32_254] : memref<50x32xf32, #tpu.memory_space<any>> -> memref<1x32xf32, #tpu.memory_space<any>>
    %572 = tpu.memref_squeeze %571 : memref<1x32xf32, #tpu.memory_space<any>> -> memref<32xf32, #tpu.memory_space<any>>
    %c0_i32_255 = arith.constant 0 : i32
    %573 = tpu.memref_slice %arg3[%c63_i32_252, %c0_i32_255] : memref<64x32xf32, #tpu.memory_space<vmem>> -> memref<1x32xf32, #tpu.memory_space<vmem>>
    %574 = tpu.memref_squeeze %573 : memref<1x32xf32, #tpu.memory_space<vmem>> -> memref<32xf32, #tpu.memory_space<vmem>>
    %575 = tpu.memref_slice %arg4[%c63_i32_253] : memref<64x!tpu.dma_semaphore, #tpu.memory_space<semaphore_mem>> -> memref<1x!tpu.dma_semaphore, #tpu.memory_space<semaphore_mem>>
    %576 = tpu.memref_squeeze %575 : memref<1x!tpu.dma_semaphore, #tpu.memory_space<semaphore_mem>> -> memref<!tpu.dma_semaphore, #tpu.memory_space<semaphore_mem>>
    tpu.enqueue_dma source(%572 : memref<32xf32, #tpu.memory_space<any>>) target(%574 : memref<32xf32, #tpu.memory_space<vmem>>) target_semaphore(%576 : memref<!tpu.dma_semaphore, #tpu.memory_space<semaphore_mem>>)
    %c0_i32_256 = arith.constant 0 : i32
    %c0_i32_257 = arith.constant 0 : i32
    %c0_i32_258 = arith.constant 0 : i32
    %577 = tpu.memref_slice %arg2[%3, %c0_i32_258] : memref<50x32xf32, #tpu.memory_space<any>> -> memref<1x32xf32, #tpu.memory_space<any>>
    %578 = tpu.memref_squeeze %577 : memref<1x32xf32, #tpu.memory_space<any>> -> memref<32xf32, #tpu.memory_space<any>>
    %c0_i32_259 = arith.constant 0 : i32
    %579 = tpu.memref_slice %arg3[%c0_i32_256, %c0_i32_259] : memref<64x32xf32, #tpu.memory_space<vmem>> -> memref<1x32xf32, #tpu.memory_space<vmem>>
    %580 = tpu.memref_squeeze %579 : memref<1x32xf32, #tpu.memory_space<vmem>> -> memref<32xf32, #tpu.memory_space<vmem>>
    %581 = tpu.memref_slice %arg4[%c0_i32_257] : memref<64x!tpu.dma_semaphore, #tpu.memory_space<semaphore_mem>> -> memref<1x!tpu.dma_semaphore, #tpu.memory_space<semaphore_mem>>
    %582 = tpu.memref_squeeze %581 : memref<1x!tpu.dma_semaphore, #tpu.memory_space<semaphore_mem>> -> memref<!tpu.dma_semaphore, #tpu.memory_space<semaphore_mem>>
    tpu.wait_dma2 semaphore(%582 : memref<!tpu.dma_semaphore, #tpu.memory_space<semaphore_mem>>) src(%578 : memref<32xf32, #tpu.memory_space<any>>) dst(%580 : memref<32xf32, #tpu.memory_space<vmem>>)
    %c1_i32_260 = arith.constant 1 : i32
    %c1_i32_261 = arith.constant 1 : i32
    %c0_i32_262 = arith.constant 0 : i32
    %583 = tpu.memref_slice %arg2[%12, %c0_i32_262] : memref<50x32xf32, #tpu.memory_space<any>> -> memref<1x32xf32, #tpu.memory_space<any>>
    %584 = tpu.memref_squeeze %583 : memref<1x32xf32, #tpu.memory_space<any>> -> memref<32xf32, #tpu.memory_space<any>>
    %c0_i32_263 = arith.constant 0 : i32
    %585 = tpu.memref_slice %arg3[%c1_i32_260, %c0_i32_263] : memref<64x32xf32, #tpu.memory_space<vmem>> -> memref<1x32xf32, #tpu.memory_space<vmem>>
    %586 = tpu.memref_squeeze %585 : memref<1x32xf32, #tpu.memory_space<vmem>> -> memref<32xf32, #tpu.memory_space<vmem>>
    %587 = tpu.memref_slice %arg4[%c1_i32_261] : memref<64x!tpu.dma_semaphore, #tpu.memory_space<semaphore_mem>> -> memref<1x!tpu.dma_semaphore, #tpu.memory_space<semaphore_mem>>
    %588 = tpu.memref_squeeze %587 : memref<1x!tpu.dma_semaphore, #tpu.memory_space<semaphore_mem>> -> memref<!tpu.dma_semaphore, #tpu.memory_space<semaphore_mem>>
    tpu.wait_dma2 semaphore(%588 : memref<!tpu.dma_semaphore, #tpu.memory_space<semaphore_mem>>) src(%584 : memref<32xf32, #tpu.memory_space<any>>) dst(%586 : memref<32xf32, #tpu.memory_space<vmem>>)
    %c2_i32_264 = arith.constant 2 : i32
    %c2_i32_265 = arith.constant 2 : i32
    %c0_i32_266 = arith.constant 0 : i32
    %589 = tpu.memref_slice %arg2[%21, %c0_i32_266] : memref<50x32xf32, #tpu.memory_space<any>> -> memref<1x32xf32, #tpu.memory_space<any>>
    %590 = tpu.memref_squeeze %589 : memref<1x32xf32, #tpu.memory_space<any>> -> memref<32xf32, #tpu.memory_space<any>>
    %c0_i32_267 = arith.constant 0 : i32
    %591 = tpu.memref_slice %arg3[%c2_i32_264, %c0_i32_267] : memref<64x32xf32, #tpu.memory_space<vmem>> -> memref<1x32xf32, #tpu.memory_space<vmem>>
    %592 = tpu.memref_squeeze %591 : memref<1x32xf32, #tpu.memory_space<vmem>> -> memref<32xf32, #tpu.memory_space<vmem>>
    %593 = tpu.memref_slice %arg4[%c2_i32_265] : memref<64x!tpu.dma_semaphore, #tpu.memory_space<semaphore_mem>> -> memref<1x!tpu.dma_semaphore, #tpu.memory_space<semaphore_mem>>
    %594 = tpu.memref_squeeze %593 : memref<1x!tpu.dma_semaphore, #tpu.memory_space<semaphore_mem>> -> memref<!tpu.dma_semaphore, #tpu.memory_space<semaphore_mem>>
    tpu.wait_dma2 semaphore(%594 : memref<!tpu.dma_semaphore, #tpu.memory_space<semaphore_mem>>) src(%590 : memref<32xf32, #tpu.memory_space<any>>) dst(%592 : memref<32xf32, #tpu.memory_space<vmem>>)
    %c3_i32_268 = arith.constant 3 : i32
    %c3_i32_269 = arith.constant 3 : i32
    %c0_i32_270 = arith.constant 0 : i32
    %595 = tpu.memref_slice %arg2[%30, %c0_i32_270] : memref<50x32xf32, #tpu.memory_space<any>> -> memref<1x32xf32, #tpu.memory_space<any>>
    %596 = tpu.memref_squeeze %595 : memref<1x32xf32, #tpu.memory_space<any>> -> memref<32xf32, #tpu.memory_space<any>>
    %c0_i32_271 = arith.constant 0 : i32
    %597 = tpu.memref_slice %arg3[%c3_i32_268, %c0_i32_271] : memref<64x32xf32, #tpu.memory_space<vmem>> -> memref<1x32xf32, #tpu.memory_space<vmem>>
    %598 = tpu.memref_squeeze %597 : memref<1x32xf32, #tpu.memory_space<vmem>> -> memref<32xf32, #tpu.memory_space<vmem>>
    %599 = tpu.memref_slice %arg4[%c3_i32_269] : memref<64x!tpu.dma_semaphore, #tpu.memory_space<semaphore_mem>> -> memref<1x!tpu.dma_semaphore, #tpu.memory_space<semaphore_mem>>
    %600 = tpu.memref_squeeze %599 : memref<1x!tpu.dma_semaphore, #tpu.memory_space<semaphore_mem>> -> memref<!tpu.dma_semaphore, #tpu.memory_space<semaphore_mem>>
    tpu.wait_dma2 semaphore(%600 : memref<!tpu.dma_semaphore, #tpu.memory_space<semaphore_mem>>) src(%596 : memref<32xf32, #tpu.memory_space<any>>) dst(%598 : memref<32xf32, #tpu.memory_space<vmem>>)
    %c4_i32_272 = arith.constant 4 : i32
    %c4_i32_273 = arith.constant 4 : i32
    %c0_i32_274 = arith.constant 0 : i32
    %601 = tpu.memref_slice %arg2[%39, %c0_i32_274] : memref<50x32xf32, #tpu.memory_space<any>> -> memref<1x32xf32, #tpu.memory_space<any>>
    %602 = tpu.memref_squeeze %601 : memref<1x32xf32, #tpu.memory_space<any>> -> memref<32xf32, #tpu.memory_space<any>>
    %c0_i32_275 = arith.constant 0 : i32
    %603 = tpu.memref_slice %arg3[%c4_i32_272, %c0_i32_275] : memref<64x32xf32, #tpu.memory_space<vmem>> -> memref<1x32xf32, #tpu.memory_space<vmem>>
    %604 = tpu.memref_squeeze %603 : memref<1x32xf32, #tpu.memory_space<vmem>> -> memref<32xf32, #tpu.memory_space<vmem>>
    %605 = tpu.memref_slice %arg4[%c4_i32_273] : memref<64x!tpu.dma_semaphore, #tpu.memory_space<semaphore_mem>> -> memref<1x!tpu.dma_semaphore, #tpu.memory_space<semaphore_mem>>
    %606 = tpu.memref_squeeze %605 : memref<1x!tpu.dma_semaphore, #tpu.memory_space<semaphore_mem>> -> memref<!tpu.dma_semaphore, #tpu.memory_space<semaphore_mem>>
    tpu.wait_dma2 semaphore(%606 : memref<!tpu.dma_semaphore, #tpu.memory_space<semaphore_mem>>) src(%602 : memref<32xf32, #tpu.memory_space<any>>) dst(%604 : memref<32xf32, #tpu.memory_space<vmem>>)
    %c5_i32_276 = arith.constant 5 : i32
    %c5_i32_277 = arith.constant 5 : i32
    %c0_i32_278 = arith.constant 0 : i32
    %607 = tpu.memref_slice %arg2[%48, %c0_i32_278] : memref<50x32xf32, #tpu.memory_space<any>> -> memref<1x32xf32, #tpu.memory_space<any>>
    %608 = tpu.memref_squeeze %607 : memref<1x32xf32, #tpu.memory_space<any>> -> memref<32xf32, #tpu.memory_space<any>>
    %c0_i32_279 = arith.constant 0 : i32
    %609 = tpu.memref_slice %arg3[%c5_i32_276, %c0_i32_279] : memref<64x32xf32, #tpu.memory_space<vmem>> -> memref<1x32xf32, #tpu.memory_space<vmem>>
    %610 = tpu.memref_squeeze %609 : memref<1x32xf32, #tpu.memory_space<vmem>> -> memref<32xf32, #tpu.memory_space<vmem>>
    %611 = tpu.memref_slice %arg4[%c5_i32_277] : memref<64x!tpu.dma_semaphore, #tpu.memory_space<semaphore_mem>> -> memref<1x!tpu.dma_semaphore, #tpu.memory_space<semaphore_mem>>
    %612 = tpu.memref_squeeze %611 : memref<1x!tpu.dma_semaphore, #tpu.memory_space<semaphore_mem>> -> memref<!tpu.dma_semaphore, #tpu.memory_space<semaphore_mem>>
    tpu.wait_dma2 semaphore(%612 : memref<!tpu.dma_semaphore, #tpu.memory_space<semaphore_mem>>) src(%608 : memref<32xf32, #tpu.memory_space<any>>) dst(%610 : memref<32xf32, #tpu.memory_space<vmem>>)
    %c6_i32_280 = arith.constant 6 : i32
    %c6_i32_281 = arith.constant 6 : i32
    %c0_i32_282 = arith.constant 0 : i32
    %613 = tpu.memref_slice %arg2[%57, %c0_i32_282] : memref<50x32xf32, #tpu.memory_space<any>> -> memref<1x32xf32, #tpu.memory_space<any>>
    %614 = tpu.memref_squeeze %613 : memref<1x32xf32, #tpu.memory_space<any>> -> memref<32xf32, #tpu.memory_space<any>>
    %c0_i32_283 = arith.constant 0 : i32
    %615 = tpu.memref_slice %arg3[%c6_i32_280, %c0_i32_283] : memref<64x32xf32, #tpu.memory_space<vmem>> -> memref<1x32xf32, #tpu.memory_space<vmem>>
    %616 = tpu.memref_squeeze %615 : memref<1x32xf32, #tpu.memory_space<vmem>> -> memref<32xf32, #tpu.memory_space<vmem>>
    %617 = tpu.memref_slice %arg4[%c6_i32_281] : memref<64x!tpu.dma_semaphore, #tpu.memory_space<semaphore_mem>> -> memref<1x!tpu.dma_semaphore, #tpu.memory_space<semaphore_mem>>
    %618 = tpu.memref_squeeze %617 : memref<1x!tpu.dma_semaphore, #tpu.memory_space<semaphore_mem>> -> memref<!tpu.dma_semaphore, #tpu.memory_space<semaphore_mem>>
    tpu.wait_dma2 semaphore(%618 : memref<!tpu.dma_semaphore, #tpu.memory_space<semaphore_mem>>) src(%614 : memref<32xf32, #tpu.memory_space<any>>) dst(%616 : memref<32xf32, #tpu.memory_space<vmem>>)
    %c7_i32_284 = arith.constant 7 : i32
    %c7_i32_285 = arith.constant 7 : i32
    %c0_i32_286 = arith.constant 0 : i32
    %619 = tpu.memref_slice %arg2[%66, %c0_i32_286] : memref<50x32xf32, #tpu.memory_space<any>> -> memref<1x32xf32, #tpu.memory_space<any>>
    %620 = tpu.memref_squeeze %619 : memref<1x32xf32, #tpu.memory_space<any>> -> memref<32xf32, #tpu.memory_space<any>>
    %c0_i32_287 = arith.constant 0 : i32
    %621 = tpu.memref_slice %arg3[%c7_i32_284, %c0_i32_287] : memref<64x32xf32, #tpu.memory_space<vmem>> -> memref<1x32xf32, #tpu.memory_space<vmem>>
    %622 = tpu.memref_squeeze %621 : memref<1x32xf32, #tpu.memory_space<vmem>> -> memref<32xf32, #tpu.memory_space<vmem>>
    %623 = tpu.memref_slice %arg4[%c7_i32_285] : memref<64x!tpu.dma_semaphore, #tpu.memory_space<semaphore_mem>> -> memref<1x!tpu.dma_semaphore, #tpu.memory_space<semaphore_mem>>
    %624 = tpu.memref_squeeze %623 : memref<1x!tpu.dma_semaphore, #tpu.memory_space<semaphore_mem>> -> memref<!tpu.dma_semaphore, #tpu.memory_space<semaphore_mem>>
    tpu.wait_dma2 semaphore(%624 : memref<!tpu.dma_semaphore, #tpu.memory_space<semaphore_mem>>) src(%620 : memref<32xf32, #tpu.memory_space<any>>) dst(%622 : memref<32xf32, #tpu.memory_space<vmem>>)
    %c8_i32_288 = arith.constant 8 : i32
    %c8_i32_289 = arith.constant 8 : i32
    %c0_i32_290 = arith.constant 0 : i32
    %625 = tpu.memref_slice %arg2[%75, %c0_i32_290] : memref<50x32xf32, #tpu.memory_space<any>> -> memref<1x32xf32, #tpu.memory_space<any>>
    %626 = tpu.memref_squeeze %625 : memref<1x32xf32, #tpu.memory_space<any>> -> memref<32xf32, #tpu.memory_space<any>>
    %c0_i32_291 = arith.constant 0 : i32
    %627 = tpu.memref_slice %arg3[%c8_i32_288, %c0_i32_291] : memref<64x32xf32, #tpu.memory_space<vmem>> -> memref<1x32xf32, #tpu.memory_space<vmem>>
    %628 = tpu.memref_squeeze %627 : memref<1x32xf32, #tpu.memory_space<vmem>> -> memref<32xf32, #tpu.memory_space<vmem>>
    %629 = tpu.memref_slice %arg4[%c8_i32_289] : memref<64x!tpu.dma_semaphore, #tpu.memory_space<semaphore_mem>> -> memref<1x!tpu.dma_semaphore, #tpu.memory_space<semaphore_mem>>
    %630 = tpu.memref_squeeze %629 : memref<1x!tpu.dma_semaphore, #tpu.memory_space<semaphore_mem>> -> memref<!tpu.dma_semaphore, #tpu.memory_space<semaphore_mem>>
    tpu.wait_dma2 semaphore(%630 : memref<!tpu.dma_semaphore, #tpu.memory_space<semaphore_mem>>) src(%626 : memref<32xf32, #tpu.memory_space<any>>) dst(%628 : memref<32xf32, #tpu.memory_space<vmem>>)
    %c9_i32_292 = arith.constant 9 : i32
    %c9_i32_293 = arith.constant 9 : i32
    %c0_i32_294 = arith.constant 0 : i32
    %631 = tpu.memref_slice %arg2[%84, %c0_i32_294] : memref<50x32xf32, #tpu.memory_space<any>> -> memref<1x32xf32, #tpu.memory_space<any>>
    %632 = tpu.memref_squeeze %631 : memref<1x32xf32, #tpu.memory_space<any>> -> memref<32xf32, #tpu.memory_space<any>>
    %c0_i32_295 = arith.constant 0 : i32
    %633 = tpu.memref_slice %arg3[%c9_i32_292, %c0_i32_295] : memref<64x32xf32, #tpu.memory_space<vmem>> -> memref<1x32xf32, #tpu.memory_space<vmem>>
    %634 = tpu.memref_squeeze %633 : memref<1x32xf32, #tpu.memory_space<vmem>> -> memref<32xf32, #tpu.memory_space<vmem>>
    %635 = tpu.memref_slice %arg4[%c9_i32_293] : memref<64x!tpu.dma_semaphore, #tpu.memory_space<semaphore_mem>> -> memref<1x!tpu.dma_semaphore, #tpu.memory_space<semaphore_mem>>
    %636 = tpu.memref_squeeze %635 : memref<1x!tpu.dma_semaphore, #tpu.memory_space<semaphore_mem>> -> memref<!tpu.dma_semaphore, #tpu.memory_space<semaphore_mem>>
    tpu.wait_dma2 semaphore(%636 : memref<!tpu.dma_semaphore, #tpu.memory_space<semaphore_mem>>) src(%632 : memref<32xf32, #tpu.memory_space<any>>) dst(%634 : memref<32xf32, #tpu.memory_space<vmem>>)
    %c10_i32_296 = arith.constant 10 : i32
    %c10_i32_297 = arith.constant 10 : i32
    %c0_i32_298 = arith.constant 0 : i32
    %637 = tpu.memref_slice %arg2[%93, %c0_i32_298] : memref<50x32xf32, #tpu.memory_space<any>> -> memref<1x32xf32, #tpu.memory_space<any>>
    %638 = tpu.memref_squeeze %637 : memref<1x32xf32, #tpu.memory_space<any>> -> memref<32xf32, #tpu.memory_space<any>>
    %c0_i32_299 = arith.constant 0 : i32
    %639 = tpu.memref_slice %arg3[%c10_i32_296, %c0_i32_299] : memref<64x32xf32, #tpu.memory_space<vmem>> -> memref<1x32xf32, #tpu.memory_space<vmem>>
    %640 = tpu.memref_squeeze %639 : memref<1x32xf32, #tpu.memory_space<vmem>> -> memref<32xf32, #tpu.memory_space<vmem>>
    %641 = tpu.memref_slice %arg4[%c10_i32_297] : memref<64x!tpu.dma_semaphore, #tpu.memory_space<semaphore_mem>> -> memref<1x!tpu.dma_semaphore, #tpu.memory_space<semaphore_mem>>
    %642 = tpu.memref_squeeze %641 : memref<1x!tpu.dma_semaphore, #tpu.memory_space<semaphore_mem>> -> memref<!tpu.dma_semaphore, #tpu.memory_space<semaphore_mem>>
    tpu.wait_dma2 semaphore(%642 : memref<!tpu.dma_semaphore, #tpu.memory_space<semaphore_mem>>) src(%638 : memref<32xf32, #tpu.memory_space<any>>) dst(%640 : memref<32xf32, #tpu.memory_space<vmem>>)
    %c11_i32_300 = arith.constant 11 : i32
    %c11_i32_301 = arith.constant 11 : i32
    %c0_i32_302 = arith.constant 0 : i32
    %643 = tpu.memref_slice %arg2[%102, %c0_i32_302] : memref<50x32xf32, #tpu.memory_space<any>> -> memref<1x32xf32, #tpu.memory_space<any>>
    %644 = tpu.memref_squeeze %643 : memref<1x32xf32, #tpu.memory_space<any>> -> memref<32xf32, #tpu.memory_space<any>>
    %c0_i32_303 = arith.constant 0 : i32
    %645 = tpu.memref_slice %arg3[%c11_i32_300, %c0_i32_303] : memref<64x32xf32, #tpu.memory_space<vmem>> -> memref<1x32xf32, #tpu.memory_space<vmem>>
    %646 = tpu.memref_squeeze %645 : memref<1x32xf32, #tpu.memory_space<vmem>> -> memref<32xf32, #tpu.memory_space<vmem>>
    %647 = tpu.memref_slice %arg4[%c11_i32_301] : memref<64x!tpu.dma_semaphore, #tpu.memory_space<semaphore_mem>> -> memref<1x!tpu.dma_semaphore, #tpu.memory_space<semaphore_mem>>
    %648 = tpu.memref_squeeze %647 : memref<1x!tpu.dma_semaphore, #tpu.memory_space<semaphore_mem>> -> memref<!tpu.dma_semaphore, #tpu.memory_space<semaphore_mem>>
    tpu.wait_dma2 semaphore(%648 : memref<!tpu.dma_semaphore, #tpu.memory_space<semaphore_mem>>) src(%644 : memref<32xf32, #tpu.memory_space<any>>) dst(%646 : memref<32xf32, #tpu.memory_space<vmem>>)
    %c12_i32_304 = arith.constant 12 : i32
    %c12_i32_305 = arith.constant 12 : i32
    %c0_i32_306 = arith.constant 0 : i32
    %649 = tpu.memref_slice %arg2[%111, %c0_i32_306] : memref<50x32xf32, #tpu.memory_space<any>> -> memref<1x32xf32, #tpu.memory_space<any>>
    %650 = tpu.memref_squeeze %649 : memref<1x32xf32, #tpu.memory_space<any>> -> memref<32xf32, #tpu.memory_space<any>>
    %c0_i32_307 = arith.constant 0 : i32
    %651 = tpu.memref_slice %arg3[%c12_i32_304, %c0_i32_307] : memref<64x32xf32, #tpu.memory_space<vmem>> -> memref<1x32xf32, #tpu.memory_space<vmem>>
    %652 = tpu.memref_squeeze %651 : memref<1x32xf32, #tpu.memory_space<vmem>> -> memref<32xf32, #tpu.memory_space<vmem>>
    %653 = tpu.memref_slice %arg4[%c12_i32_305] : memref<64x!tpu.dma_semaphore, #tpu.memory_space<semaphore_mem>> -> memref<1x!tpu.dma_semaphore, #tpu.memory_space<semaphore_mem>>
    %654 = tpu.memref_squeeze %653 : memref<1x!tpu.dma_semaphore, #tpu.memory_space<semaphore_mem>> -> memref<!tpu.dma_semaphore, #tpu.memory_space<semaphore_mem>>
    tpu.wait_dma2 semaphore(%654 : memref<!tpu.dma_semaphore, #tpu.memory_space<semaphore_mem>>) src(%650 : memref<32xf32, #tpu.memory_space<any>>) dst(%652 : memref<32xf32, #tpu.memory_space<vmem>>)
    %c13_i32_308 = arith.constant 13 : i32
    %c13_i32_309 = arith.constant 13 : i32
    %c0_i32_310 = arith.constant 0 : i32
    %655 = tpu.memref_slice %arg2[%120, %c0_i32_310] : memref<50x32xf32, #tpu.memory_space<any>> -> memref<1x32xf32, #tpu.memory_space<any>>
    %656 = tpu.memref_squeeze %655 : memref<1x32xf32, #tpu.memory_space<any>> -> memref<32xf32, #tpu.memory_space<any>>
    %c0_i32_311 = arith.constant 0 : i32
    %657 = tpu.memref_slice %arg3[%c13_i32_308, %c0_i32_311] : memref<64x32xf32, #tpu.memory_space<vmem>> -> memref<1x32xf32, #tpu.memory_space<vmem>>
    %658 = tpu.memref_squeeze %657 : memref<1x32xf32, #tpu.memory_space<vmem>> -> memref<32xf32, #tpu.memory_space<vmem>>
    %659 = tpu.memref_slice %arg4[%c13_i32_309] : memref<64x!tpu.dma_semaphore, #tpu.memory_space<semaphore_mem>> -> memref<1x!tpu.dma_semaphore, #tpu.memory_space<semaphore_mem>>
    %660 = tpu.memref_squeeze %659 : memref<1x!tpu.dma_semaphore, #tpu.memory_space<semaphore_mem>> -> memref<!tpu.dma_semaphore, #tpu.memory_space<semaphore_mem>>
    tpu.wait_dma2 semaphore(%660 : memref<!tpu.dma_semaphore, #tpu.memory_space<semaphore_mem>>) src(%656 : memref<32xf32, #tpu.memory_space<any>>) dst(%658 : memref<32xf32, #tpu.memory_space<vmem>>)
    %c14_i32_312 = arith.constant 14 : i32
    %c14_i32_313 = arith.constant 14 : i32
    %c0_i32_314 = arith.constant 0 : i32
    %661 = tpu.memref_slice %arg2[%129, %c0_i32_314] : memref<50x32xf32, #tpu.memory_space<any>> -> memref<1x32xf32, #tpu.memory_space<any>>
    %662 = tpu.memref_squeeze %661 : memref<1x32xf32, #tpu.memory_space<any>> -> memref<32xf32, #tpu.memory_space<any>>
    %c0_i32_315 = arith.constant 0 : i32
    %663 = tpu.memref_slice %arg3[%c14_i32_312, %c0_i32_315] : memref<64x32xf32, #tpu.memory_space<vmem>> -> memref<1x32xf32, #tpu.memory_space<vmem>>
    %664 = tpu.memref_squeeze %663 : memref<1x32xf32, #tpu.memory_space<vmem>> -> memref<32xf32, #tpu.memory_space<vmem>>
    %665 = tpu.memref_slice %arg4[%c14_i32_313] : memref<64x!tpu.dma_semaphore, #tpu.memory_space<semaphore_mem>> -> memref<1x!tpu.dma_semaphore, #tpu.memory_space<semaphore_mem>>
    %666 = tpu.memref_squeeze %665 : memref<1x!tpu.dma_semaphore, #tpu.memory_space<semaphore_mem>> -> memref<!tpu.dma_semaphore, #tpu.memory_space<semaphore_mem>>
    tpu.wait_dma2 semaphore(%666 : memref<!tpu.dma_semaphore, #tpu.memory_space<semaphore_mem>>) src(%662 : memref<32xf32, #tpu.memory_space<any>>) dst(%664 : memref<32xf32, #tpu.memory_space<vmem>>)
    %c15_i32_316 = arith.constant 15 : i32
    %c15_i32_317 = arith.constant 15 : i32
    %c0_i32_318 = arith.constant 0 : i32
    %667 = tpu.memref_slice %arg2[%138, %c0_i32_318] : memref<50x32xf32, #tpu.memory_space<any>> -> memref<1x32xf32, #tpu.memory_space<any>>
    %668 = tpu.memref_squeeze %667 : memref<1x32xf32, #tpu.memory_space<any>> -> memref<32xf32, #tpu.memory_space<any>>
    %c0_i32_319 = arith.constant 0 : i32
    %669 = tpu.memref_slice %arg3[%c15_i32_316, %c0_i32_319] : memref<64x32xf32, #tpu.memory_space<vmem>> -> memref<1x32xf32, #tpu.memory_space<vmem>>
    %670 = tpu.memref_squeeze %669 : memref<1x32xf32, #tpu.memory_space<vmem>> -> memref<32xf32, #tpu.memory_space<vmem>>
    %671 = tpu.memref_slice %arg4[%c15_i32_317] : memref<64x!tpu.dma_semaphore, #tpu.memory_space<semaphore_mem>> -> memref<1x!tpu.dma_semaphore, #tpu.memory_space<semaphore_mem>>
    %672 = tpu.memref_squeeze %671 : memref<1x!tpu.dma_semaphore, #tpu.memory_space<semaphore_mem>> -> memref<!tpu.dma_semaphore, #tpu.memory_space<semaphore_mem>>
    tpu.wait_dma2 semaphore(%672 : memref<!tpu.dma_semaphore, #tpu.memory_space<semaphore_mem>>) src(%668 : memref<32xf32, #tpu.memory_space<any>>) dst(%670 : memref<32xf32, #tpu.memory_space<vmem>>)
    %c16_i32_320 = arith.constant 16 : i32
    %c16_i32_321 = arith.constant 16 : i32
    %c0_i32_322 = arith.constant 0 : i32
    %673 = tpu.memref_slice %arg2[%147, %c0_i32_322] : memref<50x32xf32, #tpu.memory_space<any>> -> memref<1x32xf32, #tpu.memory_space<any>>
    %674 = tpu.memref_squeeze %673 : memref<1x32xf32, #tpu.memory_space<any>> -> memref<32xf32, #tpu.memory_space<any>>
    %c0_i32_323 = arith.constant 0 : i32
    %675 = tpu.memref_slice %arg3[%c16_i32_320, %c0_i32_323] : memref<64x32xf32, #tpu.memory_space<vmem>> -> memref<1x32xf32, #tpu.memory_space<vmem>>
    %676 = tpu.memref_squeeze %675 : memref<1x32xf32, #tpu.memory_space<vmem>> -> memref<32xf32, #tpu.memory_space<vmem>>
    %677 = tpu.memref_slice %arg4[%c16_i32_321] : memref<64x!tpu.dma_semaphore, #tpu.memory_space<semaphore_mem>> -> memref<1x!tpu.dma_semaphore, #tpu.memory_space<semaphore_mem>>
    %678 = tpu.memref_squeeze %677 : memref<1x!tpu.dma_semaphore, #tpu.memory_space<semaphore_mem>> -> memref<!tpu.dma_semaphore, #tpu.memory_space<semaphore_mem>>
    tpu.wait_dma2 semaphore(%678 : memref<!tpu.dma_semaphore, #tpu.memory_space<semaphore_mem>>) src(%674 : memref<32xf32, #tpu.memory_space<any>>) dst(%676 : memref<32xf32, #tpu.memory_space<vmem>>)
    %c17_i32_324 = arith.constant 17 : i32
    %c17_i32_325 = arith.constant 17 : i32
    %c0_i32_326 = arith.constant 0 : i32
    %679 = tpu.memref_slice %arg2[%156, %c0_i32_326] : memref<50x32xf32, #tpu.memory_space<any>> -> memref<1x32xf32, #tpu.memory_space<any>>
    %680 = tpu.memref_squeeze %679 : memref<1x32xf32, #tpu.memory_space<any>> -> memref<32xf32, #tpu.memory_space<any>>
    %c0_i32_327 = arith.constant 0 : i32
    %681 = tpu.memref_slice %arg3[%c17_i32_324, %c0_i32_327] : memref<64x32xf32, #tpu.memory_space<vmem>> -> memref<1x32xf32, #tpu.memory_space<vmem>>
    %682 = tpu.memref_squeeze %681 : memref<1x32xf32, #tpu.memory_space<vmem>> -> memref<32xf32, #tpu.memory_space<vmem>>
    %683 = tpu.memref_slice %arg4[%c17_i32_325] : memref<64x!tpu.dma_semaphore, #tpu.memory_space<semaphore_mem>> -> memref<1x!tpu.dma_semaphore, #tpu.memory_space<semaphore_mem>>
    %684 = tpu.memref_squeeze %683 : memref<1x!tpu.dma_semaphore, #tpu.memory_space<semaphore_mem>> -> memref<!tpu.dma_semaphore, #tpu.memory_space<semaphore_mem>>
    tpu.wait_dma2 semaphore(%684 : memref<!tpu.dma_semaphore, #tpu.memory_space<semaphore_mem>>) src(%680 : memref<32xf32, #tpu.memory_space<any>>) dst(%682 : memref<32xf32, #tpu.memory_space<vmem>>)
    %c18_i32_328 = arith.constant 18 : i32
    %c18_i32_329 = arith.constant 18 : i32
    %c0_i32_330 = arith.constant 0 : i32
    %685 = tpu.memref_slice %arg2[%165, %c0_i32_330] : memref<50x32xf32, #tpu.memory_space<any>> -> memref<1x32xf32, #tpu.memory_space<any>>
    %686 = tpu.memref_squeeze %685 : memref<1x32xf32, #tpu.memory_space<any>> -> memref<32xf32, #tpu.memory_space<any>>
    %c0_i32_331 = arith.constant 0 : i32
    %687 = tpu.memref_slice %arg3[%c18_i32_328, %c0_i32_331] : memref<64x32xf32, #tpu.memory_space<vmem>> -> memref<1x32xf32, #tpu.memory_space<vmem>>
    %688 = tpu.memref_squeeze %687 : memref<1x32xf32, #tpu.memory_space<vmem>> -> memref<32xf32, #tpu.memory_space<vmem>>
    %689 = tpu.memref_slice %arg4[%c18_i32_329] : memref<64x!tpu.dma_semaphore, #tpu.memory_space<semaphore_mem>> -> memref<1x!tpu.dma_semaphore, #tpu.memory_space<semaphore_mem>>
    %690 = tpu.memref_squeeze %689 : memref<1x!tpu.dma_semaphore, #tpu.memory_space<semaphore_mem>> -> memref<!tpu.dma_semaphore, #tpu.memory_space<semaphore_mem>>
    tpu.wait_dma2 semaphore(%690 : memref<!tpu.dma_semaphore, #tpu.memory_space<semaphore_mem>>) src(%686 : memref<32xf32, #tpu.memory_space<any>>) dst(%688 : memref<32xf32, #tpu.memory_space<vmem>>)
    %c19_i32_332 = arith.constant 19 : i32
    %c19_i32_333 = arith.constant 19 : i32
    %c0_i32_334 = arith.constant 0 : i32
    %691 = tpu.memref_slice %arg2[%174, %c0_i32_334] : memref<50x32xf32, #tpu.memory_space<any>> -> memref<1x32xf32, #tpu.memory_space<any>>
    %692 = tpu.memref_squeeze %691 : memref<1x32xf32, #tpu.memory_space<any>> -> memref<32xf32, #tpu.memory_space<any>>
    %c0_i32_335 = arith.constant 0 : i32
    %693 = tpu.memref_slice %arg3[%c19_i32_332, %c0_i32_335] : memref<64x32xf32, #tpu.memory_space<vmem>> -> memref<1x32xf32, #tpu.memory_space<vmem>>
    %694 = tpu.memref_squeeze %693 : memref<1x32xf32, #tpu.memory_space<vmem>> -> memref<32xf32, #tpu.memory_space<vmem>>
    %695 = tpu.memref_slice %arg4[%c19_i32_333] : memref<64x!tpu.dma_semaphore, #tpu.memory_space<semaphore_mem>> -> memref<1x!tpu.dma_semaphore, #tpu.memory_space<semaphore_mem>>
    %696 = tpu.memref_squeeze %695 : memref<1x!tpu.dma_semaphore, #tpu.memory_space<semaphore_mem>> -> memref<!tpu.dma_semaphore, #tpu.memory_space<semaphore_mem>>
    tpu.wait_dma2 semaphore(%696 : memref<!tpu.dma_semaphore, #tpu.memory_space<semaphore_mem>>) src(%692 : memref<32xf32, #tpu.memory_space<any>>) dst(%694 : memref<32xf32, #tpu.memory_space<vmem>>)
    %c20_i32_336 = arith.constant 20 : i32
    %c20_i32_337 = arith.constant 20 : i32
    %c0_i32_338 = arith.constant 0 : i32
    %697 = tpu.memref_slice %arg2[%183, %c0_i32_338] : memref<50x32xf32, #tpu.memory_space<any>> -> memref<1x32xf32, #tpu.memory_space<any>>
    %698 = tpu.memref_squeeze %697 : memref<1x32xf32, #tpu.memory_space<any>> -> memref<32xf32, #tpu.memory_space<any>>
    %c0_i32_339 = arith.constant 0 : i32
    %699 = tpu.memref_slice %arg3[%c20_i32_336, %c0_i32_339] : memref<64x32xf32, #tpu.memory_space<vmem>> -> memref<1x32xf32, #tpu.memory_space<vmem>>
    %700 = tpu.memref_squeeze %699 : memref<1x32xf32, #tpu.memory_space<vmem>> -> memref<32xf32, #tpu.memory_space<vmem>>
    %701 = tpu.memref_slice %arg4[%c20_i32_337] : memref<64x!tpu.dma_semaphore, #tpu.memory_space<semaphore_mem>> -> memref<1x!tpu.dma_semaphore, #tpu.memory_space<semaphore_mem>>
    %702 = tpu.memref_squeeze %701 : memref<1x!tpu.dma_semaphore, #tpu.memory_space<semaphore_mem>> -> memref<!tpu.dma_semaphore, #tpu.memory_space<semaphore_mem>>
    tpu.wait_dma2 semaphore(%702 : memref<!tpu.dma_semaphore, #tpu.memory_space<semaphore_mem>>) src(%698 : memref<32xf32, #tpu.memory_space<any>>) dst(%700 : memref<32xf32, #tpu.memory_space<vmem>>)
    %c21_i32_340 = arith.constant 21 : i32
    %c21_i32_341 = arith.constant 21 : i32
    %c0_i32_342 = arith.constant 0 : i32
    %703 = tpu.memref_slice %arg2[%192, %c0_i32_342] : memref<50x32xf32, #tpu.memory_space<any>> -> memref<1x32xf32, #tpu.memory_space<any>>
    %704 = tpu.memref_squeeze %703 : memref<1x32xf32, #tpu.memory_space<any>> -> memref<32xf32, #tpu.memory_space<any>>
    %c0_i32_343 = arith.constant 0 : i32
    %705 = tpu.memref_slice %arg3[%c21_i32_340, %c0_i32_343] : memref<64x32xf32, #tpu.memory_space<vmem>> -> memref<1x32xf32, #tpu.memory_space<vmem>>
    %706 = tpu.memref_squeeze %705 : memref<1x32xf32, #tpu.memory_space<vmem>> -> memref<32xf32, #tpu.memory_space<vmem>>
    %707 = tpu.memref_slice %arg4[%c21_i32_341] : memref<64x!tpu.dma_semaphore, #tpu.memory_space<semaphore_mem>> -> memref<1x!tpu.dma_semaphore, #tpu.memory_space<semaphore_mem>>
    %708 = tpu.memref_squeeze %707 : memref<1x!tpu.dma_semaphore, #tpu.memory_space<semaphore_mem>> -> memref<!tpu.dma_semaphore, #tpu.memory_space<semaphore_mem>>
    tpu.wait_dma2 semaphore(%708 : memref<!tpu.dma_semaphore, #tpu.memory_space<semaphore_mem>>) src(%704 : memref<32xf32, #tpu.memory_space<any>>) dst(%706 : memref<32xf32, #tpu.memory_space<vmem>>)
    %c22_i32_344 = arith.constant 22 : i32
    %c22_i32_345 = arith.constant 22 : i32
    %c0_i32_346 = arith.constant 0 : i32
    %709 = tpu.memref_slice %arg2[%201, %c0_i32_346] : memref<50x32xf32, #tpu.memory_space<any>> -> memref<1x32xf32, #tpu.memory_space<any>>
    %710 = tpu.memref_squeeze %709 : memref<1x32xf32, #tpu.memory_space<any>> -> memref<32xf32, #tpu.memory_space<any>>
    %c0_i32_347 = arith.constant 0 : i32
    %711 = tpu.memref_slice %arg3[%c22_i32_344, %c0_i32_347] : memref<64x32xf32, #tpu.memory_space<vmem>> -> memref<1x32xf32, #tpu.memory_space<vmem>>
    %712 = tpu.memref_squeeze %711 : memref<1x32xf32, #tpu.memory_space<vmem>> -> memref<32xf32, #tpu.memory_space<vmem>>
    %713 = tpu.memref_slice %arg4[%c22_i32_345] : memref<64x!tpu.dma_semaphore, #tpu.memory_space<semaphore_mem>> -> memref<1x!tpu.dma_semaphore, #tpu.memory_space<semaphore_mem>>
    %714 = tpu.memref_squeeze %713 : memref<1x!tpu.dma_semaphore, #tpu.memory_space<semaphore_mem>> -> memref<!tpu.dma_semaphore, #tpu.memory_space<semaphore_mem>>
    tpu.wait_dma2 semaphore(%714 : memref<!tpu.dma_semaphore, #tpu.memory_space<semaphore_mem>>) src(%710 : memref<32xf32, #tpu.memory_space<any>>) dst(%712 : memref<32xf32, #tpu.memory_space<vmem>>)
    %c23_i32_348 = arith.constant 23 : i32
    %c23_i32_349 = arith.constant 23 : i32
    %c0_i32_350 = arith.constant 0 : i32
    %715 = tpu.memref_slice %arg2[%210, %c0_i32_350] : memref<50x32xf32, #tpu.memory_space<any>> -> memref<1x32xf32, #tpu.memory_space<any>>
    %716 = tpu.memref_squeeze %715 : memref<1x32xf32, #tpu.memory_space<any>> -> memref<32xf32, #tpu.memory_space<any>>
    %c0_i32_351 = arith.constant 0 : i32
    %717 = tpu.memref_slice %arg3[%c23_i32_348, %c0_i32_351] : memref<64x32xf32, #tpu.memory_space<vmem>> -> memref<1x32xf32, #tpu.memory_space<vmem>>
    %718 = tpu.memref_squeeze %717 : memref<1x32xf32, #tpu.memory_space<vmem>> -> memref<32xf32, #tpu.memory_space<vmem>>
    %719 = tpu.memref_slice %arg4[%c23_i32_349] : memref<64x!tpu.dma_semaphore, #tpu.memory_space<semaphore_mem>> -> memref<1x!tpu.dma_semaphore, #tpu.memory_space<semaphore_mem>>
    %720 = tpu.memref_squeeze %719 : memref<1x!tpu.dma_semaphore, #tpu.memory_space<semaphore_mem>> -> memref<!tpu.dma_semaphore, #tpu.memory_space<semaphore_mem>>
    tpu.wait_dma2 semaphore(%720 : memref<!tpu.dma_semaphore, #tpu.memory_space<semaphore_mem>>) src(%716 : memref<32xf32, #tpu.memory_space<any>>) dst(%718 : memref<32xf32, #tpu.memory_space<vmem>>)
    %c24_i32_352 = arith.constant 24 : i32
    %c24_i32_353 = arith.constant 24 : i32
    %c0_i32_354 = arith.constant 0 : i32
    %721 = tpu.memref_slice %arg2[%219, %c0_i32_354] : memref<50x32xf32, #tpu.memory_space<any>> -> memref<1x32xf32, #tpu.memory_space<any>>
    %722 = tpu.memref_squeeze %721 : memref<1x32xf32, #tpu.memory_space<any>> -> memref<32xf32, #tpu.memory_space<any>>
    %c0_i32_355 = arith.constant 0 : i32
    %723 = tpu.memref_slice %arg3[%c24_i32_352, %c0_i32_355] : memref<64x32xf32, #tpu.memory_space<vmem>> -> memref<1x32xf32, #tpu.memory_space<vmem>>
    %724 = tpu.memref_squeeze %723 : memref<1x32xf32, #tpu.memory_space<vmem>> -> memref<32xf32, #tpu.memory_space<vmem>>
    %725 = tpu.memref_slice %arg4[%c24_i32_353] : memref<64x!tpu.dma_semaphore, #tpu.memory_space<semaphore_mem>> -> memref<1x!tpu.dma_semaphore, #tpu.memory_space<semaphore_mem>>
    %726 = tpu.memref_squeeze %725 : memref<1x!tpu.dma_semaphore, #tpu.memory_space<semaphore_mem>> -> memref<!tpu.dma_semaphore, #tpu.memory_space<semaphore_mem>>
    tpu.wait_dma2 semaphore(%726 : memref<!tpu.dma_semaphore, #tpu.memory_space<semaphore_mem>>) src(%722 : memref<32xf32, #tpu.memory_space<any>>) dst(%724 : memref<32xf32, #tpu.memory_space<vmem>>)
    %c25_i32_356 = arith.constant 25 : i32
    %c25_i32_357 = arith.constant 25 : i32
    %c0_i32_358 = arith.constant 0 : i32
    %727 = tpu.memref_slice %arg2[%228, %c0_i32_358] : memref<50x32xf32, #tpu.memory_space<any>> -> memref<1x32xf32, #tpu.memory_space<any>>
    %728 = tpu.memref_squeeze %727 : memref<1x32xf32, #tpu.memory_space<any>> -> memref<32xf32, #tpu.memory_space<any>>
    %c0_i32_359 = arith.constant 0 : i32
    %729 = tpu.memref_slice %arg3[%c25_i32_356, %c0_i32_359] : memref<64x32xf32, #tpu.memory_space<vmem>> -> memref<1x32xf32, #tpu.memory_space<vmem>>
    %730 = tpu.memref_squeeze %729 : memref<1x32xf32, #tpu.memory_space<vmem>> -> memref<32xf32, #tpu.memory_space<vmem>>
    %731 = tpu.memref_slice %arg4[%c25_i32_357] : memref<64x!tpu.dma_semaphore, #tpu.memory_space<semaphore_mem>> -> memref<1x!tpu.dma_semaphore, #tpu.memory_space<semaphore_mem>>
    %732 = tpu.memref_squeeze %731 : memref<1x!tpu.dma_semaphore, #tpu.memory_space<semaphore_mem>> -> memref<!tpu.dma_semaphore, #tpu.memory_space<semaphore_mem>>
    tpu.wait_dma2 semaphore(%732 : memref<!tpu.dma_semaphore, #tpu.memory_space<semaphore_mem>>) src(%728 : memref<32xf32, #tpu.memory_space<any>>) dst(%730 : memref<32xf32, #tpu.memory_space<vmem>>)
    %c26_i32_360 = arith.constant 26 : i32
    %c26_i32_361 = arith.constant 26 : i32
    %c0_i32_362 = arith.constant 0 : i32
    %733 = tpu.memref_slice %arg2[%237, %c0_i32_362] : memref<50x32xf32, #tpu.memory_space<any>> -> memref<1x32xf32, #tpu.memory_space<any>>
    %734 = tpu.memref_squeeze %733 : memref<1x32xf32, #tpu.memory_space<any>> -> memref<32xf32, #tpu.memory_space<any>>
    %c0_i32_363 = arith.constant 0 : i32
    %735 = tpu.memref_slice %arg3[%c26_i32_360, %c0_i32_363] : memref<64x32xf32, #tpu.memory_space<vmem>> -> memref<1x32xf32, #tpu.memory_space<vmem>>
    %736 = tpu.memref_squeeze %735 : memref<1x32xf32, #tpu.memory_space<vmem>> -> memref<32xf32, #tpu.memory_space<vmem>>
    %737 = tpu.memref_slice %arg4[%c26_i32_361] : memref<64x!tpu.dma_semaphore, #tpu.memory_space<semaphore_mem>> -> memref<1x!tpu.dma_semaphore, #tpu.memory_space<semaphore_mem>>
    %738 = tpu.memref_squeeze %737 : memref<1x!tpu.dma_semaphore, #tpu.memory_space<semaphore_mem>> -> memref<!tpu.dma_semaphore, #tpu.memory_space<semaphore_mem>>
    tpu.wait_dma2 semaphore(%738 : memref<!tpu.dma_semaphore, #tpu.memory_space<semaphore_mem>>) src(%734 : memref<32xf32, #tpu.memory_space<any>>) dst(%736 : memref<32xf32, #tpu.memory_space<vmem>>)
    %c27_i32_364 = arith.constant 27 : i32
    %c27_i32_365 = arith.constant 27 : i32
    %c0_i32_366 = arith.constant 0 : i32
    %739 = tpu.memref_slice %arg2[%246, %c0_i32_366] : memref<50x32xf32, #tpu.memory_space<any>> -> memref<1x32xf32, #tpu.memory_space<any>>
    %740 = tpu.memref_squeeze %739 : memref<1x32xf32, #tpu.memory_space<any>> -> memref<32xf32, #tpu.memory_space<any>>
    %c0_i32_367 = arith.constant 0 : i32
    %741 = tpu.memref_slice %arg3[%c27_i32_364, %c0_i32_367] : memref<64x32xf32, #tpu.memory_space<vmem>> -> memref<1x32xf32, #tpu.memory_space<vmem>>
    %742 = tpu.memref_squeeze %741 : memref<1x32xf32, #tpu.memory_space<vmem>> -> memref<32xf32, #tpu.memory_space<vmem>>
    %743 = tpu.memref_slice %arg4[%c27_i32_365] : memref<64x!tpu.dma_semaphore, #tpu.memory_space<semaphore_mem>> -> memref<1x!tpu.dma_semaphore, #tpu.memory_space<semaphore_mem>>
    %744 = tpu.memref_squeeze %743 : memref<1x!tpu.dma_semaphore, #tpu.memory_space<semaphore_mem>> -> memref<!tpu.dma_semaphore, #tpu.memory_space<semaphore_mem>>
    tpu.wait_dma2 semaphore(%744 : memref<!tpu.dma_semaphore, #tpu.memory_space<semaphore_mem>>) src(%740 : memref<32xf32, #tpu.memory_space<any>>) dst(%742 : memref<32xf32, #tpu.memory_space<vmem>>)
    %c28_i32_368 = arith.constant 28 : i32
    %c28_i32_369 = arith.constant 28 : i32
    %c0_i32_370 = arith.constant 0 : i32
    %745 = tpu.memref_slice %arg2[%255, %c0_i32_370] : memref<50x32xf32, #tpu.memory_space<any>> -> memref<1x32xf32, #tpu.memory_space<any>>
    %746 = tpu.memref_squeeze %745 : memref<1x32xf32, #tpu.memory_space<any>> -> memref<32xf32, #tpu.memory_space<any>>
    %c0_i32_371 = arith.constant 0 : i32
    %747 = tpu.memref_slice %arg3[%c28_i32_368, %c0_i32_371] : memref<64x32xf32, #tpu.memory_space<vmem>> -> memref<1x32xf32, #tpu.memory_space<vmem>>
    %748 = tpu.memref_squeeze %747 : memref<1x32xf32, #tpu.memory_space<vmem>> -> memref<32xf32, #tpu.memory_space<vmem>>
    %749 = tpu.memref_slice %arg4[%c28_i32_369] : memref<64x!tpu.dma_semaphore, #tpu.memory_space<semaphore_mem>> -> memref<1x!tpu.dma_semaphore, #tpu.memory_space<semaphore_mem>>
    %750 = tpu.memref_squeeze %749 : memref<1x!tpu.dma_semaphore, #tpu.memory_space<semaphore_mem>> -> memref<!tpu.dma_semaphore, #tpu.memory_space<semaphore_mem>>
    tpu.wait_dma2 semaphore(%750 : memref<!tpu.dma_semaphore, #tpu.memory_space<semaphore_mem>>) src(%746 : memref<32xf32, #tpu.memory_space<any>>) dst(%748 : memref<32xf32, #tpu.memory_space<vmem>>)
    %c29_i32_372 = arith.constant 29 : i32
    %c29_i32_373 = arith.constant 29 : i32
    %c0_i32_374 = arith.constant 0 : i32
    %751 = tpu.memref_slice %arg2[%264, %c0_i32_374] : memref<50x32xf32, #tpu.memory_space<any>> -> memref<1x32xf32, #tpu.memory_space<any>>
    %752 = tpu.memref_squeeze %751 : memref<1x32xf32, #tpu.memory_space<any>> -> memref<32xf32, #tpu.memory_space<any>>
    %c0_i32_375 = arith.constant 0 : i32
    %753 = tpu.memref_slice %arg3[%c29_i32_372, %c0_i32_375] : memref<64x32xf32, #tpu.memory_space<vmem>> -> memref<1x32xf32, #tpu.memory_space<vmem>>
    %754 = tpu.memref_squeeze %753 : memref<1x32xf32, #tpu.memory_space<vmem>> -> memref<32xf32, #tpu.memory_space<vmem>>
    %755 = tpu.memref_slice %arg4[%c29_i32_373] : memref<64x!tpu.dma_semaphore, #tpu.memory_space<semaphore_mem>> -> memref<1x!tpu.dma_semaphore, #tpu.memory_space<semaphore_mem>>
    %756 = tpu.memref_squeeze %755 : memref<1x!tpu.dma_semaphore, #tpu.memory_space<semaphore_mem>> -> memref<!tpu.dma_semaphore, #tpu.memory_space<semaphore_mem>>
    tpu.wait_dma2 semaphore(%756 : memref<!tpu.dma_semaphore, #tpu.memory_space<semaphore_mem>>) src(%752 : memref<32xf32, #tpu.memory_space<any>>) dst(%754 : memref<32xf32, #tpu.memory_space<vmem>>)
    %c30_i32_376 = arith.constant 30 : i32
    %c30_i32_377 = arith.constant 30 : i32
    %c0_i32_378 = arith.constant 0 : i32
    %757 = tpu.memref_slice %arg2[%273, %c0_i32_378] : memref<50x32xf32, #tpu.memory_space<any>> -> memref<1x32xf32, #tpu.memory_space<any>>
    %758 = tpu.memref_squeeze %757 : memref<1x32xf32, #tpu.memory_space<any>> -> memref<32xf32, #tpu.memory_space<any>>
    %c0_i32_379 = arith.constant 0 : i32
    %759 = tpu.memref_slice %arg3[%c30_i32_376, %c0_i32_379] : memref<64x32xf32, #tpu.memory_space<vmem>> -> memref<1x32xf32, #tpu.memory_space<vmem>>
    %760 = tpu.memref_squeeze %759 : memref<1x32xf32, #tpu.memory_space<vmem>> -> memref<32xf32, #tpu.memory_space<vmem>>
    %761 = tpu.memref_slice %arg4[%c30_i32_377] : memref<64x!tpu.dma_semaphore, #tpu.memory_space<semaphore_mem>> -> memref<1x!tpu.dma_semaphore, #tpu.memory_space<semaphore_mem>>
    %762 = tpu.memref_squeeze %761 : memref<1x!tpu.dma_semaphore, #tpu.memory_space<semaphore_mem>> -> memref<!tpu.dma_semaphore, #tpu.memory_space<semaphore_mem>>
    tpu.wait_dma2 semaphore(%762 : memref<!tpu.dma_semaphore, #tpu.memory_space<semaphore_mem>>) src(%758 : memref<32xf32, #tpu.memory_space<any>>) dst(%760 : memref<32xf32, #tpu.memory_space<vmem>>)
    %c31_i32_380 = arith.constant 31 : i32
    %c31_i32_381 = arith.constant 31 : i32
    %c0_i32_382 = arith.constant 0 : i32
    %763 = tpu.memref_slice %arg2[%282, %c0_i32_382] : memref<50x32xf32, #tpu.memory_space<any>> -> memref<1x32xf32, #tpu.memory_space<any>>
    %764 = tpu.memref_squeeze %763 : memref<1x32xf32, #tpu.memory_space<any>> -> memref<32xf32, #tpu.memory_space<any>>
    %c0_i32_383 = arith.constant 0 : i32
    %765 = tpu.memref_slice %arg3[%c31_i32_380, %c0_i32_383] : memref<64x32xf32, #tpu.memory_space<vmem>> -> memref<1x32xf32, #tpu.memory_space<vmem>>
    %766 = tpu.memref_squeeze %765 : memref<1x32xf32, #tpu.memory_space<vmem>> -> memref<32xf32, #tpu.memory_space<vmem>>
    %767 = tpu.memref_slice %arg4[%c31_i32_381] : memref<64x!tpu.dma_semaphore, #tpu.memory_space<semaphore_mem>> -> memref<1x!tpu.dma_semaphore, #tpu.memory_space<semaphore_mem>>
    %768 = tpu.memref_squeeze %767 : memref<1x!tpu.dma_semaphore, #tpu.memory_space<semaphore_mem>> -> memref<!tpu.dma_semaphore, #tpu.memory_space<semaphore_mem>>
    tpu.wait_dma2 semaphore(%768 : memref<!tpu.dma_semaphore, #tpu.memory_space<semaphore_mem>>) src(%764 : memref<32xf32, #tpu.memory_space<any>>) dst(%766 : memref<32xf32, #tpu.memory_space<vmem>>)
    %c32_i32_384 = arith.constant 32 : i32
    %c32_i32_385 = arith.constant 32 : i32
    %c0_i32_386 = arith.constant 0 : i32
    %769 = tpu.memref_slice %arg2[%291, %c0_i32_386] : memref<50x32xf32, #tpu.memory_space<any>> -> memref<1x32xf32, #tpu.memory_space<any>>
    %770 = tpu.memref_squeeze %769 : memref<1x32xf32, #tpu.memory_space<any>> -> memref<32xf32, #tpu.memory_space<any>>
    %c0_i32_387 = arith.constant 0 : i32
    %771 = tpu.memref_slice %arg3[%c32_i32_384, %c0_i32_387] : memref<64x32xf32, #tpu.memory_space<vmem>> -> memref<1x32xf32, #tpu.memory_space<vmem>>
    %772 = tpu.memref_squeeze %771 : memref<1x32xf32, #tpu.memory_space<vmem>> -> memref<32xf32, #tpu.memory_space<vmem>>
    %773 = tpu.memref_slice %arg4[%c32_i32_385] : memref<64x!tpu.dma_semaphore, #tpu.memory_space<semaphore_mem>> -> memref<1x!tpu.dma_semaphore, #tpu.memory_space<semaphore_mem>>
    %774 = tpu.memref_squeeze %773 : memref<1x!tpu.dma_semaphore, #tpu.memory_space<semaphore_mem>> -> memref<!tpu.dma_semaphore, #tpu.memory_space<semaphore_mem>>
    tpu.wait_dma2 semaphore(%774 : memref<!tpu.dma_semaphore, #tpu.memory_space<semaphore_mem>>) src(%770 : memref<32xf32, #tpu.memory_space<any>>) dst(%772 : memref<32xf32, #tpu.memory_space<vmem>>)
    %c33_i32_388 = arith.constant 33 : i32
    %c33_i32_389 = arith.constant 33 : i32
    %c0_i32_390 = arith.constant 0 : i32
    %775 = tpu.memref_slice %arg2[%300, %c0_i32_390] : memref<50x32xf32, #tpu.memory_space<any>> -> memref<1x32xf32, #tpu.memory_space<any>>
    %776 = tpu.memref_squeeze %775 : memref<1x32xf32, #tpu.memory_space<any>> -> memref<32xf32, #tpu.memory_space<any>>
    %c0_i32_391 = arith.constant 0 : i32
    %777 = tpu.memref_slice %arg3[%c33_i32_388, %c0_i32_391] : memref<64x32xf32, #tpu.memory_space<vmem>> -> memref<1x32xf32, #tpu.memory_space<vmem>>
    %778 = tpu.memref_squeeze %777 : memref<1x32xf32, #tpu.memory_space<vmem>> -> memref<32xf32, #tpu.memory_space<vmem>>
    %779 = tpu.memref_slice %arg4[%c33_i32_389] : memref<64x!tpu.dma_semaphore, #tpu.memory_space<semaphore_mem>> -> memref<1x!tpu.dma_semaphore, #tpu.memory_space<semaphore_mem>>
    %780 = tpu.memref_squeeze %779 : memref<1x!tpu.dma_semaphore, #tpu.memory_space<semaphore_mem>> -> memref<!tpu.dma_semaphore, #tpu.memory_space<semaphore_mem>>
    tpu.wait_dma2 semaphore(%780 : memref<!tpu.dma_semaphore, #tpu.memory_space<semaphore_mem>>) src(%776 : memref<32xf32, #tpu.memory_space<any>>) dst(%778 : memref<32xf32, #tpu.memory_space<vmem>>)
    %c34_i32_392 = arith.constant 34 : i32
    %c34_i32_393 = arith.constant 34 : i32
    %c0_i32_394 = arith.constant 0 : i32
    %781 = tpu.memref_slice %arg2[%309, %c0_i32_394] : memref<50x32xf32, #tpu.memory_space<any>> -> memref<1x32xf32, #tpu.memory_space<any>>
    %782 = tpu.memref_squeeze %781 : memref<1x32xf32, #tpu.memory_space<any>> -> memref<32xf32, #tpu.memory_space<any>>
    %c0_i32_395 = arith.constant 0 : i32
    %783 = tpu.memref_slice %arg3[%c34_i32_392, %c0_i32_395] : memref<64x32xf32, #tpu.memory_space<vmem>> -> memref<1x32xf32, #tpu.memory_space<vmem>>
    %784 = tpu.memref_squeeze %783 : memref<1x32xf32, #tpu.memory_space<vmem>> -> memref<32xf32, #tpu.memory_space<vmem>>
    %785 = tpu.memref_slice %arg4[%c34_i32_393] : memref<64x!tpu.dma_semaphore, #tpu.memory_space<semaphore_mem>> -> memref<1x!tpu.dma_semaphore, #tpu.memory_space<semaphore_mem>>
    %786 = tpu.memref_squeeze %785 : memref<1x!tpu.dma_semaphore, #tpu.memory_space<semaphore_mem>> -> memref<!tpu.dma_semaphore, #tpu.memory_space<semaphore_mem>>
    tpu.wait_dma2 semaphore(%786 : memref<!tpu.dma_semaphore, #tpu.memory_space<semaphore_mem>>) src(%782 : memref<32xf32, #tpu.memory_space<any>>) dst(%784 : memref<32xf32, #tpu.memory_space<vmem>>)
    %c35_i32_396 = arith.constant 35 : i32
    %c35_i32_397 = arith.constant 35 : i32
    %c0_i32_398 = arith.constant 0 : i32
    %787 = tpu.memref_slice %arg2[%318, %c0_i32_398] : memref<50x32xf32, #tpu.memory_space<any>> -> memref<1x32xf32, #tpu.memory_space<any>>
    %788 = tpu.memref_squeeze %787 : memref<1x32xf32, #tpu.memory_space<any>> -> memref<32xf32, #tpu.memory_space<any>>
    %c0_i32_399 = arith.constant 0 : i32
    %789 = tpu.memref_slice %arg3[%c35_i32_396, %c0_i32_399] : memref<64x32xf32, #tpu.memory_space<vmem>> -> memref<1x32xf32, #tpu.memory_space<vmem>>
    %790 = tpu.memref_squeeze %789 : memref<1x32xf32, #tpu.memory_space<vmem>> -> memref<32xf32, #tpu.memory_space<vmem>>
    %791 = tpu.memref_slice %arg4[%c35_i32_397] : memref<64x!tpu.dma_semaphore, #tpu.memory_space<semaphore_mem>> -> memref<1x!tpu.dma_semaphore, #tpu.memory_space<semaphore_mem>>
    %792 = tpu.memref_squeeze %791 : memref<1x!tpu.dma_semaphore, #tpu.memory_space<semaphore_mem>> -> memref<!tpu.dma_semaphore, #tpu.memory_space<semaphore_mem>>
    tpu.wait_dma2 semaphore(%792 : memref<!tpu.dma_semaphore, #tpu.memory_space<semaphore_mem>>) src(%788 : memref<32xf32, #tpu.memory_space<any>>) dst(%790 : memref<32xf32, #tpu.memory_space<vmem>>)
    %c36_i32_400 = arith.constant 36 : i32
    %c36_i32_401 = arith.constant 36 : i32
    %c0_i32_402 = arith.constant 0 : i32
    %793 = tpu.memref_slice %arg2[%327, %c0_i32_402] : memref<50x32xf32, #tpu.memory_space<any>> -> memref<1x32xf32, #tpu.memory_space<any>>
    %794 = tpu.memref_squeeze %793 : memref<1x32xf32, #tpu.memory_space<any>> -> memref<32xf32, #tpu.memory_space<any>>
    %c0_i32_403 = arith.constant 0 : i32
    %795 = tpu.memref_slice %arg3[%c36_i32_400, %c0_i32_403] : memref<64x32xf32, #tpu.memory_space<vmem>> -> memref<1x32xf32, #tpu.memory_space<vmem>>
    %796 = tpu.memref_squeeze %795 : memref<1x32xf32, #tpu.memory_space<vmem>> -> memref<32xf32, #tpu.memory_space<vmem>>
    %797 = tpu.memref_slice %arg4[%c36_i32_401] : memref<64x!tpu.dma_semaphore, #tpu.memory_space<semaphore_mem>> -> memref<1x!tpu.dma_semaphore, #tpu.memory_space<semaphore_mem>>
    %798 = tpu.memref_squeeze %797 : memref<1x!tpu.dma_semaphore, #tpu.memory_space<semaphore_mem>> -> memref<!tpu.dma_semaphore, #tpu.memory_space<semaphore_mem>>
    tpu.wait_dma2 semaphore(%798 : memref<!tpu.dma_semaphore, #tpu.memory_space<semaphore_mem>>) src(%794 : memref<32xf32, #tpu.memory_space<any>>) dst(%796 : memref<32xf32, #tpu.memory_space<vmem>>)
    %c37_i32_404 = arith.constant 37 : i32
    %c37_i32_405 = arith.constant 37 : i32
    %c0_i32_406 = arith.constant 0 : i32
    %799 = tpu.memref_slice %arg2[%336, %c0_i32_406] : memref<50x32xf32, #tpu.memory_space<any>> -> memref<1x32xf32, #tpu.memory_space<any>>
    %800 = tpu.memref_squeeze %799 : memref<1x32xf32, #tpu.memory_space<any>> -> memref<32xf32, #tpu.memory_space<any>>
    %c0_i32_407 = arith.constant 0 : i32
    %801 = tpu.memref_slice %arg3[%c37_i32_404, %c0_i32_407] : memref<64x32xf32, #tpu.memory_space<vmem>> -> memref<1x32xf32, #tpu.memory_space<vmem>>
    %802 = tpu.memref_squeeze %801 : memref<1x32xf32, #tpu.memory_space<vmem>> -> memref<32xf32, #tpu.memory_space<vmem>>
    %803 = tpu.memref_slice %arg4[%c37_i32_405] : memref<64x!tpu.dma_semaphore, #tpu.memory_space<semaphore_mem>> -> memref<1x!tpu.dma_semaphore, #tpu.memory_space<semaphore_mem>>
    %804 = tpu.memref_squeeze %803 : memref<1x!tpu.dma_semaphore, #tpu.memory_space<semaphore_mem>> -> memref<!tpu.dma_semaphore, #tpu.memory_space<semaphore_mem>>
    tpu.wait_dma2 semaphore(%804 : memref<!tpu.dma_semaphore, #tpu.memory_space<semaphore_mem>>) src(%800 : memref<32xf32, #tpu.memory_space<any>>) dst(%802 : memref<32xf32, #tpu.memory_space<vmem>>)
    %c38_i32_408 = arith.constant 38 : i32
    %c38_i32_409 = arith.constant 38 : i32
    %c0_i32_410 = arith.constant 0 : i32
    %805 = tpu.memref_slice %arg2[%345, %c0_i32_410] : memref<50x32xf32, #tpu.memory_space<any>> -> memref<1x32xf32, #tpu.memory_space<any>>
    %806 = tpu.memref_squeeze %805 : memref<1x32xf32, #tpu.memory_space<any>> -> memref<32xf32, #tpu.memory_space<any>>
    %c0_i32_411 = arith.constant 0 : i32
    %807 = tpu.memref_slice %arg3[%c38_i32_408, %c0_i32_411] : memref<64x32xf32, #tpu.memory_space<vmem>> -> memref<1x32xf32, #tpu.memory_space<vmem>>
    %808 = tpu.memref_squeeze %807 : memref<1x32xf32, #tpu.memory_space<vmem>> -> memref<32xf32, #tpu.memory_space<vmem>>
    %809 = tpu.memref_slice %arg4[%c38_i32_409] : memref<64x!tpu.dma_semaphore, #tpu.memory_space<semaphore_mem>> -> memref<1x!tpu.dma_semaphore, #tpu.memory_space<semaphore_mem>>
    %810 = tpu.memref_squeeze %809 : memref<1x!tpu.dma_semaphore, #tpu.memory_space<semaphore_mem>> -> memref<!tpu.dma_semaphore, #tpu.memory_space<semaphore_mem>>
    tpu.wait_dma2 semaphore(%810 : memref<!tpu.dma_semaphore, #tpu.memory_space<semaphore_mem>>) src(%806 : memref<32xf32, #tpu.memory_space<any>>) dst(%808 : memref<32xf32, #tpu.memory_space<vmem>>)
    %c39_i32_412 = arith.constant 39 : i32
    %c39_i32_413 = arith.constant 39 : i32
    %c0_i32_414 = arith.constant 0 : i32
    %811 = tpu.memref_slice %arg2[%354, %c0_i32_414] : memref<50x32xf32, #tpu.memory_space<any>> -> memref<1x32xf32, #tpu.memory_space<any>>
    %812 = tpu.memref_squeeze %811 : memref<1x32xf32, #tpu.memory_space<any>> -> memref<32xf32, #tpu.memory_space<any>>
    %c0_i32_415 = arith.constant 0 : i32
    %813 = tpu.memref_slice %arg3[%c39_i32_412, %c0_i32_415] : memref<64x32xf32, #tpu.memory_space<vmem>> -> memref<1x32xf32, #tpu.memory_space<vmem>>
    %814 = tpu.memref_squeeze %813 : memref<1x32xf32, #tpu.memory_space<vmem>> -> memref<32xf32, #tpu.memory_space<vmem>>
    %815 = tpu.memref_slice %arg4[%c39_i32_413] : memref<64x!tpu.dma_semaphore, #tpu.memory_space<semaphore_mem>> -> memref<1x!tpu.dma_semaphore, #tpu.memory_space<semaphore_mem>>
    %816 = tpu.memref_squeeze %815 : memref<1x!tpu.dma_semaphore, #tpu.memory_space<semaphore_mem>> -> memref<!tpu.dma_semaphore, #tpu.memory_space<semaphore_mem>>
    tpu.wait_dma2 semaphore(%816 : memref<!tpu.dma_semaphore, #tpu.memory_space<semaphore_mem>>) src(%812 : memref<32xf32, #tpu.memory_space<any>>) dst(%814 : memref<32xf32, #tpu.memory_space<vmem>>)
    %c40_i32_416 = arith.constant 40 : i32
    %c40_i32_417 = arith.constant 40 : i32
    %c0_i32_418 = arith.constant 0 : i32
    %817 = tpu.memref_slice %arg2[%363, %c0_i32_418] : memref<50x32xf32, #tpu.memory_space<any>> -> memref<1x32xf32, #tpu.memory_space<any>>
    %818 = tpu.memref_squeeze %817 : memref<1x32xf32, #tpu.memory_space<any>> -> memref<32xf32, #tpu.memory_space<any>>
    %c0_i32_419 = arith.constant 0 : i32
    %819 = tpu.memref_slice %arg3[%c40_i32_416, %c0_i32_419] : memref<64x32xf32, #tpu.memory_space<vmem>> -> memref<1x32xf32, #tpu.memory_space<vmem>>
    %820 = tpu.memref_squeeze %819 : memref<1x32xf32, #tpu.memory_space<vmem>> -> memref<32xf32, #tpu.memory_space<vmem>>
    %821 = tpu.memref_slice %arg4[%c40_i32_417] : memref<64x!tpu.dma_semaphore, #tpu.memory_space<semaphore_mem>> -> memref<1x!tpu.dma_semaphore, #tpu.memory_space<semaphore_mem>>
    %822 = tpu.memref_squeeze %821 : memref<1x!tpu.dma_semaphore, #tpu.memory_space<semaphore_mem>> -> memref<!tpu.dma_semaphore, #tpu.memory_space<semaphore_mem>>
    tpu.wait_dma2 semaphore(%822 : memref<!tpu.dma_semaphore, #tpu.memory_space<semaphore_mem>>) src(%818 : memref<32xf32, #tpu.memory_space<any>>) dst(%820 : memref<32xf32, #tpu.memory_space<vmem>>)
    %c41_i32_420 = arith.constant 41 : i32
    %c41_i32_421 = arith.constant 41 : i32
    %c0_i32_422 = arith.constant 0 : i32
    %823 = tpu.memref_slice %arg2[%372, %c0_i32_422] : memref<50x32xf32, #tpu.memory_space<any>> -> memref<1x32xf32, #tpu.memory_space<any>>
    %824 = tpu.memref_squeeze %823 : memref<1x32xf32, #tpu.memory_space<any>> -> memref<32xf32, #tpu.memory_space<any>>
    %c0_i32_423 = arith.constant 0 : i32
    %825 = tpu.memref_slice %arg3[%c41_i32_420, %c0_i32_423] : memref<64x32xf32, #tpu.memory_space<vmem>> -> memref<1x32xf32, #tpu.memory_space<vmem>>
    %826 = tpu.memref_squeeze %825 : memref<1x32xf32, #tpu.memory_space<vmem>> -> memref<32xf32, #tpu.memory_space<vmem>>
    %827 = tpu.memref_slice %arg4[%c41_i32_421] : memref<64x!tpu.dma_semaphore, #tpu.memory_space<semaphore_mem>> -> memref<1x!tpu.dma_semaphore, #tpu.memory_space<semaphore_mem>>
    %828 = tpu.memref_squeeze %827 : memref<1x!tpu.dma_semaphore, #tpu.memory_space<semaphore_mem>> -> memref<!tpu.dma_semaphore, #tpu.memory_space<semaphore_mem>>
    tpu.wait_dma2 semaphore(%828 : memref<!tpu.dma_semaphore, #tpu.memory_space<semaphore_mem>>) src(%824 : memref<32xf32, #tpu.memory_space<any>>) dst(%826 : memref<32xf32, #tpu.memory_space<vmem>>)
    %c42_i32_424 = arith.constant 42 : i32
    %c42_i32_425 = arith.constant 42 : i32
    %c0_i32_426 = arith.constant 0 : i32
    %829 = tpu.memref_slice %arg2[%381, %c0_i32_426] : memref<50x32xf32, #tpu.memory_space<any>> -> memref<1x32xf32, #tpu.memory_space<any>>
    %830 = tpu.memref_squeeze %829 : memref<1x32xf32, #tpu.memory_space<any>> -> memref<32xf32, #tpu.memory_space<any>>
    %c0_i32_427 = arith.constant 0 : i32
    %831 = tpu.memref_slice %arg3[%c42_i32_424, %c0_i32_427] : memref<64x32xf32, #tpu.memory_space<vmem>> -> memref<1x32xf32, #tpu.memory_space<vmem>>
    %832 = tpu.memref_squeeze %831 : memref<1x32xf32, #tpu.memory_space<vmem>> -> memref<32xf32, #tpu.memory_space<vmem>>
    %833 = tpu.memref_slice %arg4[%c42_i32_425] : memref<64x!tpu.dma_semaphore, #tpu.memory_space<semaphore_mem>> -> memref<1x!tpu.dma_semaphore, #tpu.memory_space<semaphore_mem>>
    %834 = tpu.memref_squeeze %833 : memref<1x!tpu.dma_semaphore, #tpu.memory_space<semaphore_mem>> -> memref<!tpu.dma_semaphore, #tpu.memory_space<semaphore_mem>>
    tpu.wait_dma2 semaphore(%834 : memref<!tpu.dma_semaphore, #tpu.memory_space<semaphore_mem>>) src(%830 : memref<32xf32, #tpu.memory_space<any>>) dst(%832 : memref<32xf32, #tpu.memory_space<vmem>>)
    %c43_i32_428 = arith.constant 43 : i32
    %c43_i32_429 = arith.constant 43 : i32
    %c0_i32_430 = arith.constant 0 : i32
    %835 = tpu.memref_slice %arg2[%390, %c0_i32_430] : memref<50x32xf32, #tpu.memory_space<any>> -> memref<1x32xf32, #tpu.memory_space<any>>
    %836 = tpu.memref_squeeze %835 : memref<1x32xf32, #tpu.memory_space<any>> -> memref<32xf32, #tpu.memory_space<any>>
    %c0_i32_431 = arith.constant 0 : i32
    %837 = tpu.memref_slice %arg3[%c43_i32_428, %c0_i32_431] : memref<64x32xf32, #tpu.memory_space<vmem>> -> memref<1x32xf32, #tpu.memory_space<vmem>>
    %838 = tpu.memref_squeeze %837 : memref<1x32xf32, #tpu.memory_space<vmem>> -> memref<32xf32, #tpu.memory_space<vmem>>
    %839 = tpu.memref_slice %arg4[%c43_i32_429] : memref<64x!tpu.dma_semaphore, #tpu.memory_space<semaphore_mem>> -> memref<1x!tpu.dma_semaphore, #tpu.memory_space<semaphore_mem>>
    %840 = tpu.memref_squeeze %839 : memref<1x!tpu.dma_semaphore, #tpu.memory_space<semaphore_mem>> -> memref<!tpu.dma_semaphore, #tpu.memory_space<semaphore_mem>>
    tpu.wait_dma2 semaphore(%840 : memref<!tpu.dma_semaphore, #tpu.memory_space<semaphore_mem>>) src(%836 : memref<32xf32, #tpu.memory_space<any>>) dst(%838 : memref<32xf32, #tpu.memory_space<vmem>>)
    %c44_i32_432 = arith.constant 44 : i32
    %c44_i32_433 = arith.constant 44 : i32
    %c0_i32_434 = arith.constant 0 : i32
    %841 = tpu.memref_slice %arg2[%399, %c0_i32_434] : memref<50x32xf32, #tpu.memory_space<any>> -> memref<1x32xf32, #tpu.memory_space<any>>
    %842 = tpu.memref_squeeze %841 : memref<1x32xf32, #tpu.memory_space<any>> -> memref<32xf32, #tpu.memory_space<any>>
    %c0_i32_435 = arith.constant 0 : i32
    %843 = tpu.memref_slice %arg3[%c44_i32_432, %c0_i32_435] : memref<64x32xf32, #tpu.memory_space<vmem>> -> memref<1x32xf32, #tpu.memory_space<vmem>>
    %844 = tpu.memref_squeeze %843 : memref<1x32xf32, #tpu.memory_space<vmem>> -> memref<32xf32, #tpu.memory_space<vmem>>
    %845 = tpu.memref_slice %arg4[%c44_i32_433] : memref<64x!tpu.dma_semaphore, #tpu.memory_space<semaphore_mem>> -> memref<1x!tpu.dma_semaphore, #tpu.memory_space<semaphore_mem>>
    %846 = tpu.memref_squeeze %845 : memref<1x!tpu.dma_semaphore, #tpu.memory_space<semaphore_mem>> -> memref<!tpu.dma_semaphore, #tpu.memory_space<semaphore_mem>>
    tpu.wait_dma2 semaphore(%846 : memref<!tpu.dma_semaphore, #tpu.memory_space<semaphore_mem>>) src(%842 : memref<32xf32, #tpu.memory_space<any>>) dst(%844 : memref<32xf32, #tpu.memory_space<vmem>>)
    %c45_i32_436 = arith.constant 45 : i32
    %c45_i32_437 = arith.constant 45 : i32
    %c0_i32_438 = arith.constant 0 : i32
    %847 = tpu.memref_slice %arg2[%408, %c0_i32_438] : memref<50x32xf32, #tpu.memory_space<any>> -> memref<1x32xf32, #tpu.memory_space<any>>
    %848 = tpu.memref_squeeze %847 : memref<1x32xf32, #tpu.memory_space<any>> -> memref<32xf32, #tpu.memory_space<any>>
    %c0_i32_439 = arith.constant 0 : i32
    %849 = tpu.memref_slice %arg3[%c45_i32_436, %c0_i32_439] : memref<64x32xf32, #tpu.memory_space<vmem>> -> memref<1x32xf32, #tpu.memory_space<vmem>>
    %850 = tpu.memref_squeeze %849 : memref<1x32xf32, #tpu.memory_space<vmem>> -> memref<32xf32, #tpu.memory_space<vmem>>
    %851 = tpu.memref_slice %arg4[%c45_i32_437] : memref<64x!tpu.dma_semaphore, #tpu.memory_space<semaphore_mem>> -> memref<1x!tpu.dma_semaphore, #tpu.memory_space<semaphore_mem>>
    %852 = tpu.memref_squeeze %851 : memref<1x!tpu.dma_semaphore, #tpu.memory_space<semaphore_mem>> -> memref<!tpu.dma_semaphore, #tpu.memory_space<semaphore_mem>>
    tpu.wait_dma2 semaphore(%852 : memref<!tpu.dma_semaphore, #tpu.memory_space<semaphore_mem>>) src(%848 : memref<32xf32, #tpu.memory_space<any>>) dst(%850 : memref<32xf32, #tpu.memory_space<vmem>>)
    %c46_i32_440 = arith.constant 46 : i32
    %c46_i32_441 = arith.constant 46 : i32
    %c0_i32_442 = arith.constant 0 : i32
    %853 = tpu.memref_slice %arg2[%417, %c0_i32_442] : memref<50x32xf32, #tpu.memory_space<any>> -> memref<1x32xf32, #tpu.memory_space<any>>
    %854 = tpu.memref_squeeze %853 : memref<1x32xf32, #tpu.memory_space<any>> -> memref<32xf32, #tpu.memory_space<any>>
    %c0_i32_443 = arith.constant 0 : i32
    %855 = tpu.memref_slice %arg3[%c46_i32_440, %c0_i32_443] : memref<64x32xf32, #tpu.memory_space<vmem>> -> memref<1x32xf32, #tpu.memory_space<vmem>>
    %856 = tpu.memref_squeeze %855 : memref<1x32xf32, #tpu.memory_space<vmem>> -> memref<32xf32, #tpu.memory_space<vmem>>
    %857 = tpu.memref_slice %arg4[%c46_i32_441] : memref<64x!tpu.dma_semaphore, #tpu.memory_space<semaphore_mem>> -> memref<1x!tpu.dma_semaphore, #tpu.memory_space<semaphore_mem>>
    %858 = tpu.memref_squeeze %857 : memref<1x!tpu.dma_semaphore, #tpu.memory_space<semaphore_mem>> -> memref<!tpu.dma_semaphore, #tpu.memory_space<semaphore_mem>>
    tpu.wait_dma2 semaphore(%858 : memref<!tpu.dma_semaphore, #tpu.memory_space<semaphore_mem>>) src(%854 : memref<32xf32, #tpu.memory_space<any>>) dst(%856 : memref<32xf32, #tpu.memory_space<vmem>>)
    %c47_i32_444 = arith.constant 47 : i32
    %c47_i32_445 = arith.constant 47 : i32
    %c0_i32_446 = arith.constant 0 : i32
    %859 = tpu.memref_slice %arg2[%426, %c0_i32_446] : memref<50x32xf32, #tpu.memory_space<any>> -> memref<1x32xf32, #tpu.memory_space<any>>
    %860 = tpu.memref_squeeze %859 : memref<1x32xf32, #tpu.memory_space<any>> -> memref<32xf32, #tpu.memory_space<any>>
    %c0_i32_447 = arith.constant 0 : i32
    %861 = tpu.memref_slice %arg3[%c47_i32_444, %c0_i32_447] : memref<64x32xf32, #tpu.memory_space<vmem>> -> memref<1x32xf32, #tpu.memory_space<vmem>>
    %862 = tpu.memref_squeeze %861 : memref<1x32xf32, #tpu.memory_space<vmem>> -> memref<32xf32, #tpu.memory_space<vmem>>
    %863 = tpu.memref_slice %arg4[%c47_i32_445] : memref<64x!tpu.dma_semaphore, #tpu.memory_space<semaphore_mem>> -> memref<1x!tpu.dma_semaphore, #tpu.memory_space<semaphore_mem>>
    %864 = tpu.memref_squeeze %863 : memref<1x!tpu.dma_semaphore, #tpu.memory_space<semaphore_mem>> -> memref<!tpu.dma_semaphore, #tpu.memory_space<semaphore_mem>>
    tpu.wait_dma2 semaphore(%864 : memref<!tpu.dma_semaphore, #tpu.memory_space<semaphore_mem>>) src(%860 : memref<32xf32, #tpu.memory_space<any>>) dst(%862 : memref<32xf32, #tpu.memory_space<vmem>>)
    %c48_i32_448 = arith.constant 48 : i32
    %c48_i32_449 = arith.constant 48 : i32
    %c0_i32_450 = arith.constant 0 : i32
    %865 = tpu.memref_slice %arg2[%435, %c0_i32_450] : memref<50x32xf32, #tpu.memory_space<any>> -> memref<1x32xf32, #tpu.memory_space<any>>
    %866 = tpu.memref_squeeze %865 : memref<1x32xf32, #tpu.memory_space<any>> -> memref<32xf32, #tpu.memory_space<any>>
    %c0_i32_451 = arith.constant 0 : i32
    %867 = tpu.memref_slice %arg3[%c48_i32_448, %c0_i32_451] : memref<64x32xf32, #tpu.memory_space<vmem>> -> memref<1x32xf32, #tpu.memory_space<vmem>>
    %868 = tpu.memref_squeeze %867 : memref<1x32xf32, #tpu.memory_space<vmem>> -> memref<32xf32, #tpu.memory_space<vmem>>
    %869 = tpu.memref_slice %arg4[%c48_i32_449] : memref<64x!tpu.dma_semaphore, #tpu.memory_space<semaphore_mem>> -> memref<1x!tpu.dma_semaphore, #tpu.memory_space<semaphore_mem>>
    %870 = tpu.memref_squeeze %869 : memref<1x!tpu.dma_semaphore, #tpu.memory_space<semaphore_mem>> -> memref<!tpu.dma_semaphore, #tpu.memory_space<semaphore_mem>>
    tpu.wait_dma2 semaphore(%870 : memref<!tpu.dma_semaphore, #tpu.memory_space<semaphore_mem>>) src(%866 : memref<32xf32, #tpu.memory_space<any>>) dst(%868 : memref<32xf32, #tpu.memory_space<vmem>>)
    %c49_i32_452 = arith.constant 49 : i32
    %c49_i32_453 = arith.constant 49 : i32
    %c0_i32_454 = arith.constant 0 : i32
    %871 = tpu.memref_slice %arg2[%444, %c0_i32_454] : memref<50x32xf32, #tpu.memory_space<any>> -> memref<1x32xf32, #tpu.memory_space<any>>
    %872 = tpu.memref_squeeze %871 : memref<1x32xf32, #tpu.memory_space<any>> -> memref<32xf32, #tpu.memory_space<any>>
    %c0_i32_455 = arith.constant 0 : i32
    %873 = tpu.memref_slice %arg3[%c49_i32_452, %c0_i32_455] : memref<64x32xf32, #tpu.memory_space<vmem>> -> memref<1x32xf32, #tpu.memory_space<vmem>>
    %874 = tpu.memref_squeeze %873 : memref<1x32xf32, #tpu.memory_space<vmem>> -> memref<32xf32, #tpu.memory_space<vmem>>
    %875 = tpu.memref_slice %arg4[%c49_i32_453] : memref<64x!tpu.dma_semaphore, #tpu.memory_space<semaphore_mem>> -> memref<1x!tpu.dma_semaphore, #tpu.memory_space<semaphore_mem>>
    %876 = tpu.memref_squeeze %875 : memref<1x!tpu.dma_semaphore, #tpu.memory_space<semaphore_mem>> -> memref<!tpu.dma_semaphore, #tpu.memory_space<semaphore_mem>>
    tpu.wait_dma2 semaphore(%876 : memref<!tpu.dma_semaphore, #tpu.memory_space<semaphore_mem>>) src(%872 : memref<32xf32, #tpu.memory_space<any>>) dst(%874 : memref<32xf32, #tpu.memory_space<vmem>>)
    %c50_i32_456 = arith.constant 50 : i32
    %c50_i32_457 = arith.constant 50 : i32
    %c0_i32_458 = arith.constant 0 : i32
    %877 = tpu.memref_slice %arg2[%453, %c0_i32_458] : memref<50x32xf32, #tpu.memory_space<any>> -> memref<1x32xf32, #tpu.memory_space<any>>
    %878 = tpu.memref_squeeze %877 : memref<1x32xf32, #tpu.memory_space<any>> -> memref<32xf32, #tpu.memory_space<any>>
    %c0_i32_459 = arith.constant 0 : i32
    %879 = tpu.memref_slice %arg3[%c50_i32_456, %c0_i32_459] : memref<64x32xf32, #tpu.memory_space<vmem>> -> memref<1x32xf32, #tpu.memory_space<vmem>>
    %880 = tpu.memref_squeeze %879 : memref<1x32xf32, #tpu.memory_space<vmem>> -> memref<32xf32, #tpu.memory_space<vmem>>
    %881 = tpu.memref_slice %arg4[%c50_i32_457] : memref<64x!tpu.dma_semaphore, #tpu.memory_space<semaphore_mem>> -> memref<1x!tpu.dma_semaphore, #tpu.memory_space<semaphore_mem>>
    %882 = tpu.memref_squeeze %881 : memref<1x!tpu.dma_semaphore, #tpu.memory_space<semaphore_mem>> -> memref<!tpu.dma_semaphore, #tpu.memory_space<semaphore_mem>>
    tpu.wait_dma2 semaphore(%882 : memref<!tpu.dma_semaphore, #tpu.memory_space<semaphore_mem>>) src(%878 : memref<32xf32, #tpu.memory_space<any>>) dst(%880 : memref<32xf32, #tpu.memory_space<vmem>>)
    %c51_i32_460 = arith.constant 51 : i32
    %c51_i32_461 = arith.constant 51 : i32
    %c0_i32_462 = arith.constant 0 : i32
    %883 = tpu.memref_slice %arg2[%462, %c0_i32_462] : memref<50x32xf32, #tpu.memory_space<any>> -> memref<1x32xf32, #tpu.memory_space<any>>
    %884 = tpu.memref_squeeze %883 : memref<1x32xf32, #tpu.memory_space<any>> -> memref<32xf32, #tpu.memory_space<any>>
    %c0_i32_463 = arith.constant 0 : i32
    %885 = tpu.memref_slice %arg3[%c51_i32_460, %c0_i32_463] : memref<64x32xf32, #tpu.memory_space<vmem>> -> memref<1x32xf32, #tpu.memory_space<vmem>>
    %886 = tpu.memref_squeeze %885 : memref<1x32xf32, #tpu.memory_space<vmem>> -> memref<32xf32, #tpu.memory_space<vmem>>
    %887 = tpu.memref_slice %arg4[%c51_i32_461] : memref<64x!tpu.dma_semaphore, #tpu.memory_space<semaphore_mem>> -> memref<1x!tpu.dma_semaphore, #tpu.memory_space<semaphore_mem>>
    %888 = tpu.memref_squeeze %887 : memref<1x!tpu.dma_semaphore, #tpu.memory_space<semaphore_mem>> -> memref<!tpu.dma_semaphore, #tpu.memory_space<semaphore_mem>>
    tpu.wait_dma2 semaphore(%888 : memref<!tpu.dma_semaphore, #tpu.memory_space<semaphore_mem>>) src(%884 : memref<32xf32, #tpu.memory_space<any>>) dst(%886 : memref<32xf32, #tpu.memory_space<vmem>>)
    %c52_i32_464 = arith.constant 52 : i32
    %c52_i32_465 = arith.constant 52 : i32
    %c0_i32_466 = arith.constant 0 : i32
    %889 = tpu.memref_slice %arg2[%471, %c0_i32_466] : memref<50x32xf32, #tpu.memory_space<any>> -> memref<1x32xf32, #tpu.memory_space<any>>
    %890 = tpu.memref_squeeze %889 : memref<1x32xf32, #tpu.memory_space<any>> -> memref<32xf32, #tpu.memory_space<any>>
    %c0_i32_467 = arith.constant 0 : i32
    %891 = tpu.memref_slice %arg3[%c52_i32_464, %c0_i32_467] : memref<64x32xf32, #tpu.memory_space<vmem>> -> memref<1x32xf32, #tpu.memory_space<vmem>>
    %892 = tpu.memref_squeeze %891 : memref<1x32xf32, #tpu.memory_space<vmem>> -> memref<32xf32, #tpu.memory_space<vmem>>
    %893 = tpu.memref_slice %arg4[%c52_i32_465] : memref<64x!tpu.dma_semaphore, #tpu.memory_space<semaphore_mem>> -> memref<1x!tpu.dma_semaphore, #tpu.memory_space<semaphore_mem>>
    %894 = tpu.memref_squeeze %893 : memref<1x!tpu.dma_semaphore, #tpu.memory_space<semaphore_mem>> -> memref<!tpu.dma_semaphore, #tpu.memory_space<semaphore_mem>>
    tpu.wait_dma2 semaphore(%894 : memref<!tpu.dma_semaphore, #tpu.memory_space<semaphore_mem>>) src(%890 : memref<32xf32, #tpu.memory_space<any>>) dst(%892 : memref<32xf32, #tpu.memory_space<vmem>>)
    %c53_i32_468 = arith.constant 53 : i32
    %c53_i32_469 = arith.constant 53 : i32
    %c0_i32_470 = arith.constant 0 : i32
    %895 = tpu.memref_slice %arg2[%480, %c0_i32_470] : memref<50x32xf32, #tpu.memory_space<any>> -> memref<1x32xf32, #tpu.memory_space<any>>
    %896 = tpu.memref_squeeze %895 : memref<1x32xf32, #tpu.memory_space<any>> -> memref<32xf32, #tpu.memory_space<any>>
    %c0_i32_471 = arith.constant 0 : i32
    %897 = tpu.memref_slice %arg3[%c53_i32_468, %c0_i32_471] : memref<64x32xf32, #tpu.memory_space<vmem>> -> memref<1x32xf32, #tpu.memory_space<vmem>>
    %898 = tpu.memref_squeeze %897 : memref<1x32xf32, #tpu.memory_space<vmem>> -> memref<32xf32, #tpu.memory_space<vmem>>
    %899 = tpu.memref_slice %arg4[%c53_i32_469] : memref<64x!tpu.dma_semaphore, #tpu.memory_space<semaphore_mem>> -> memref<1x!tpu.dma_semaphore, #tpu.memory_space<semaphore_mem>>
    %900 = tpu.memref_squeeze %899 : memref<1x!tpu.dma_semaphore, #tpu.memory_space<semaphore_mem>> -> memref<!tpu.dma_semaphore, #tpu.memory_space<semaphore_mem>>
    tpu.wait_dma2 semaphore(%900 : memref<!tpu.dma_semaphore, #tpu.memory_space<semaphore_mem>>) src(%896 : memref<32xf32, #tpu.memory_space<any>>) dst(%898 : memref<32xf32, #tpu.memory_space<vmem>>)
    %c54_i32_472 = arith.constant 54 : i32
    %c54_i32_473 = arith.constant 54 : i32
    %c0_i32_474 = arith.constant 0 : i32
    %901 = tpu.memref_slice %arg2[%489, %c0_i32_474] : memref<50x32xf32, #tpu.memory_space<any>> -> memref<1x32xf32, #tpu.memory_space<any>>
    %902 = tpu.memref_squeeze %901 : memref<1x32xf32, #tpu.memory_space<any>> -> memref<32xf32, #tpu.memory_space<any>>
    %c0_i32_475 = arith.constant 0 : i32
    %903 = tpu.memref_slice %arg3[%c54_i32_472, %c0_i32_475] : memref<64x32xf32, #tpu.memory_space<vmem>> -> memref<1x32xf32, #tpu.memory_space<vmem>>
    %904 = tpu.memref_squeeze %903 : memref<1x32xf32, #tpu.memory_space<vmem>> -> memref<32xf32, #tpu.memory_space<vmem>>
    %905 = tpu.memref_slice %arg4[%c54_i32_473] : memref<64x!tpu.dma_semaphore, #tpu.memory_space<semaphore_mem>> -> memref<1x!tpu.dma_semaphore, #tpu.memory_space<semaphore_mem>>
    %906 = tpu.memref_squeeze %905 : memref<1x!tpu.dma_semaphore, #tpu.memory_space<semaphore_mem>> -> memref<!tpu.dma_semaphore, #tpu.memory_space<semaphore_mem>>
    tpu.wait_dma2 semaphore(%906 : memref<!tpu.dma_semaphore, #tpu.memory_space<semaphore_mem>>) src(%902 : memref<32xf32, #tpu.memory_space<any>>) dst(%904 : memref<32xf32, #tpu.memory_space<vmem>>)
    %c55_i32_476 = arith.constant 55 : i32
    %c55_i32_477 = arith.constant 55 : i32
    %c0_i32_478 = arith.constant 0 : i32
    %907 = tpu.memref_slice %arg2[%498, %c0_i32_478] : memref<50x32xf32, #tpu.memory_space<any>> -> memref<1x32xf32, #tpu.memory_space<any>>
    %908 = tpu.memref_squeeze %907 : memref<1x32xf32, #tpu.memory_space<any>> -> memref<32xf32, #tpu.memory_space<any>>
    %c0_i32_479 = arith.constant 0 : i32
    %909 = tpu.memref_slice %arg3[%c55_i32_476, %c0_i32_479] : memref<64x32xf32, #tpu.memory_space<vmem>> -> memref<1x32xf32, #tpu.memory_space<vmem>>
    %910 = tpu.memref_squeeze %909 : memref<1x32xf32, #tpu.memory_space<vmem>> -> memref<32xf32, #tpu.memory_space<vmem>>
    %911 = tpu.memref_slice %arg4[%c55_i32_477] : memref<64x!tpu.dma_semaphore, #tpu.memory_space<semaphore_mem>> -> memref<1x!tpu.dma_semaphore, #tpu.memory_space<semaphore_mem>>
    %912 = tpu.memref_squeeze %911 : memref<1x!tpu.dma_semaphore, #tpu.memory_space<semaphore_mem>> -> memref<!tpu.dma_semaphore, #tpu.memory_space<semaphore_mem>>
    tpu.wait_dma2 semaphore(%912 : memref<!tpu.dma_semaphore, #tpu.memory_space<semaphore_mem>>) src(%908 : memref<32xf32, #tpu.memory_space<any>>) dst(%910 : memref<32xf32, #tpu.memory_space<vmem>>)
    %c56_i32_480 = arith.constant 56 : i32
    %c56_i32_481 = arith.constant 56 : i32
    %c0_i32_482 = arith.constant 0 : i32
    %913 = tpu.memref_slice %arg2[%507, %c0_i32_482] : memref<50x32xf32, #tpu.memory_space<any>> -> memref<1x32xf32, #tpu.memory_space<any>>
    %914 = tpu.memref_squeeze %913 : memref<1x32xf32, #tpu.memory_space<any>> -> memref<32xf32, #tpu.memory_space<any>>
    %c0_i32_483 = arith.constant 0 : i32
    %915 = tpu.memref_slice %arg3[%c56_i32_480, %c0_i32_483] : memref<64x32xf32, #tpu.memory_space<vmem>> -> memref<1x32xf32, #tpu.memory_space<vmem>>
    %916 = tpu.memref_squeeze %915 : memref<1x32xf32, #tpu.memory_space<vmem>> -> memref<32xf32, #tpu.memory_space<vmem>>
    %917 = tpu.memref_slice %arg4[%c56_i32_481] : memref<64x!tpu.dma_semaphore, #tpu.memory_space<semaphore_mem>> -> memref<1x!tpu.dma_semaphore, #tpu.memory_space<semaphore_mem>>
    %918 = tpu.memref_squeeze %917 : memref<1x!tpu.dma_semaphore, #tpu.memory_space<semaphore_mem>> -> memref<!tpu.dma_semaphore, #tpu.memory_space<semaphore_mem>>
    tpu.wait_dma2 semaphore(%918 : memref<!tpu.dma_semaphore, #tpu.memory_space<semaphore_mem>>) src(%914 : memref<32xf32, #tpu.memory_space<any>>) dst(%916 : memref<32xf32, #tpu.memory_space<vmem>>)
    %c57_i32_484 = arith.constant 57 : i32
    %c57_i32_485 = arith.constant 57 : i32
    %c0_i32_486 = arith.constant 0 : i32
    %919 = tpu.memref_slice %arg2[%516, %c0_i32_486] : memref<50x32xf32, #tpu.memory_space<any>> -> memref<1x32xf32, #tpu.memory_space<any>>
    %920 = tpu.memref_squeeze %919 : memref<1x32xf32, #tpu.memory_space<any>> -> memref<32xf32, #tpu.memory_space<any>>
    %c0_i32_487 = arith.constant 0 : i32
    %921 = tpu.memref_slice %arg3[%c57_i32_484, %c0_i32_487] : memref<64x32xf32, #tpu.memory_space<vmem>> -> memref<1x32xf32, #tpu.memory_space<vmem>>
    %922 = tpu.memref_squeeze %921 : memref<1x32xf32, #tpu.memory_space<vmem>> -> memref<32xf32, #tpu.memory_space<vmem>>
    %923 = tpu.memref_slice %arg4[%c57_i32_485] : memref<64x!tpu.dma_semaphore, #tpu.memory_space<semaphore_mem>> -> memref<1x!tpu.dma_semaphore, #tpu.memory_space<semaphore_mem>>
    %924 = tpu.memref_squeeze %923 : memref<1x!tpu.dma_semaphore, #tpu.memory_space<semaphore_mem>> -> memref<!tpu.dma_semaphore, #tpu.memory_space<semaphore_mem>>
    tpu.wait_dma2 semaphore(%924 : memref<!tpu.dma_semaphore, #tpu.memory_space<semaphore_mem>>) src(%920 : memref<32xf32, #tpu.memory_space<any>>) dst(%922 : memref<32xf32, #tpu.memory_space<vmem>>)
    %c58_i32_488 = arith.constant 58 : i32
    %c58_i32_489 = arith.constant 58 : i32
    %c0_i32_490 = arith.constant 0 : i32
    %925 = tpu.memref_slice %arg2[%525, %c0_i32_490] : memref<50x32xf32, #tpu.memory_space<any>> -> memref<1x32xf32, #tpu.memory_space<any>>
    %926 = tpu.memref_squeeze %925 : memref<1x32xf32, #tpu.memory_space<any>> -> memref<32xf32, #tpu.memory_space<any>>
    %c0_i32_491 = arith.constant 0 : i32
    %927 = tpu.memref_slice %arg3[%c58_i32_488, %c0_i32_491] : memref<64x32xf32, #tpu.memory_space<vmem>> -> memref<1x32xf32, #tpu.memory_space<vmem>>
    %928 = tpu.memref_squeeze %927 : memref<1x32xf32, #tpu.memory_space<vmem>> -> memref<32xf32, #tpu.memory_space<vmem>>
    %929 = tpu.memref_slice %arg4[%c58_i32_489] : memref<64x!tpu.dma_semaphore, #tpu.memory_space<semaphore_mem>> -> memref<1x!tpu.dma_semaphore, #tpu.memory_space<semaphore_mem>>
    %930 = tpu.memref_squeeze %929 : memref<1x!tpu.dma_semaphore, #tpu.memory_space<semaphore_mem>> -> memref<!tpu.dma_semaphore, #tpu.memory_space<semaphore_mem>>
    tpu.wait_dma2 semaphore(%930 : memref<!tpu.dma_semaphore, #tpu.memory_space<semaphore_mem>>) src(%926 : memref<32xf32, #tpu.memory_space<any>>) dst(%928 : memref<32xf32, #tpu.memory_space<vmem>>)
    %c59_i32_492 = arith.constant 59 : i32
    %c59_i32_493 = arith.constant 59 : i32
    %c0_i32_494 = arith.constant 0 : i32
    %931 = tpu.memref_slice %arg2[%534, %c0_i32_494] : memref<50x32xf32, #tpu.memory_space<any>> -> memref<1x32xf32, #tpu.memory_space<any>>
    %932 = tpu.memref_squeeze %931 : memref<1x32xf32, #tpu.memory_space<any>> -> memref<32xf32, #tpu.memory_space<any>>
    %c0_i32_495 = arith.constant 0 : i32
    %933 = tpu.memref_slice %arg3[%c59_i32_492, %c0_i32_495] : memref<64x32xf32, #tpu.memory_space<vmem>> -> memref<1x32xf32, #tpu.memory_space<vmem>>
    %934 = tpu.memref_squeeze %933 : memref<1x32xf32, #tpu.memory_space<vmem>> -> memref<32xf32, #tpu.memory_space<vmem>>
    %935 = tpu.memref_slice %arg4[%c59_i32_493] : memref<64x!tpu.dma_semaphore, #tpu.memory_space<semaphore_mem>> -> memref<1x!tpu.dma_semaphore, #tpu.memory_space<semaphore_mem>>
    %936 = tpu.memref_squeeze %935 : memref<1x!tpu.dma_semaphore, #tpu.memory_space<semaphore_mem>> -> memref<!tpu.dma_semaphore, #tpu.memory_space<semaphore_mem>>
    tpu.wait_dma2 semaphore(%936 : memref<!tpu.dma_semaphore, #tpu.memory_space<semaphore_mem>>) src(%932 : memref<32xf32, #tpu.memory_space<any>>) dst(%934 : memref<32xf32, #tpu.memory_space<vmem>>)
    %c60_i32_496 = arith.constant 60 : i32
    %c60_i32_497 = arith.constant 60 : i32
    %c0_i32_498 = arith.constant 0 : i32
    %937 = tpu.memref_slice %arg2[%543, %c0_i32_498] : memref<50x32xf32, #tpu.memory_space<any>> -> memref<1x32xf32, #tpu.memory_space<any>>
    %938 = tpu.memref_squeeze %937 : memref<1x32xf32, #tpu.memory_space<any>> -> memref<32xf32, #tpu.memory_space<any>>
    %c0_i32_499 = arith.constant 0 : i32
    %939 = tpu.memref_slice %arg3[%c60_i32_496, %c0_i32_499] : memref<64x32xf32, #tpu.memory_space<vmem>> -> memref<1x32xf32, #tpu.memory_space<vmem>>
    %940 = tpu.memref_squeeze %939 : memref<1x32xf32, #tpu.memory_space<vmem>> -> memref<32xf32, #tpu.memory_space<vmem>>
    %941 = tpu.memref_slice %arg4[%c60_i32_497] : memref<64x!tpu.dma_semaphore, #tpu.memory_space<semaphore_mem>> -> memref<1x!tpu.dma_semaphore, #tpu.memory_space<semaphore_mem>>
    %942 = tpu.memref_squeeze %941 : memref<1x!tpu.dma_semaphore, #tpu.memory_space<semaphore_mem>> -> memref<!tpu.dma_semaphore, #tpu.memory_space<semaphore_mem>>
    tpu.wait_dma2 semaphore(%942 : memref<!tpu.dma_semaphore, #tpu.memory_space<semaphore_mem>>) src(%938 : memref<32xf32, #tpu.memory_space<any>>) dst(%940 : memref<32xf32, #tpu.memory_space<vmem>>)
    %c61_i32_500 = arith.constant 61 : i32
    %c61_i32_501 = arith.constant 61 : i32
    %c0_i32_502 = arith.constant 0 : i32
    %943 = tpu.memref_slice %arg2[%552, %c0_i32_502] : memref<50x32xf32, #tpu.memory_space<any>> -> memref<1x32xf32, #tpu.memory_space<any>>
    %944 = tpu.memref_squeeze %943 : memref<1x32xf32, #tpu.memory_space<any>> -> memref<32xf32, #tpu.memory_space<any>>
    %c0_i32_503 = arith.constant 0 : i32
    %945 = tpu.memref_slice %arg3[%c61_i32_500, %c0_i32_503] : memref<64x32xf32, #tpu.memory_space<vmem>> -> memref<1x32xf32, #tpu.memory_space<vmem>>
    %946 = tpu.memref_squeeze %945 : memref<1x32xf32, #tpu.memory_space<vmem>> -> memref<32xf32, #tpu.memory_space<vmem>>
    %947 = tpu.memref_slice %arg4[%c61_i32_501] : memref<64x!tpu.dma_semaphore, #tpu.memory_space<semaphore_mem>> -> memref<1x!tpu.dma_semaphore, #tpu.memory_space<semaphore_mem>>
    %948 = tpu.memref_squeeze %947 : memref<1x!tpu.dma_semaphore, #tpu.memory_space<semaphore_mem>> -> memref<!tpu.dma_semaphore, #tpu.memory_space<semaphore_mem>>
    tpu.wait_dma2 semaphore(%948 : memref<!tpu.dma_semaphore, #tpu.memory_space<semaphore_mem>>) src(%944 : memref<32xf32, #tpu.memory_space<any>>) dst(%946 : memref<32xf32, #tpu.memory_space<vmem>>)
    %c62_i32_504 = arith.constant 62 : i32
    %c62_i32_505 = arith.constant 62 : i32
    %c0_i32_506 = arith.constant 0 : i32
    %949 = tpu.memref_slice %arg2[%561, %c0_i32_506] : memref<50x32xf32, #tpu.memory_space<any>> -> memref<1x32xf32, #tpu.memory_space<any>>
    %950 = tpu.memref_squeeze %949 : memref<1x32xf32, #tpu.memory_space<any>> -> memref<32xf32, #tpu.memory_space<any>>
    %c0_i32_507 = arith.constant 0 : i32
    %951 = tpu.memref_slice %arg3[%c62_i32_504, %c0_i32_507] : memref<64x32xf32, #tpu.memory_space<vmem>> -> memref<1x32xf32, #tpu.memory_space<vmem>>
    %952 = tpu.memref_squeeze %951 : memref<1x32xf32, #tpu.memory_space<vmem>> -> memref<32xf32, #tpu.memory_space<vmem>>
    %953 = tpu.memref_slice %arg4[%c62_i32_505] : memref<64x!tpu.dma_semaphore, #tpu.memory_space<semaphore_mem>> -> memref<1x!tpu.dma_semaphore, #tpu.memory_space<semaphore_mem>>
    %954 = tpu.memref_squeeze %953 : memref<1x!tpu.dma_semaphore, #tpu.memory_space<semaphore_mem>> -> memref<!tpu.dma_semaphore, #tpu.memory_space<semaphore_mem>>
    tpu.wait_dma2 semaphore(%954 : memref<!tpu.dma_semaphore, #tpu.memory_space<semaphore_mem>>) src(%950 : memref<32xf32, #tpu.memory_space<any>>) dst(%952 : memref<32xf32, #tpu.memory_space<vmem>>)
    %c63_i32_508 = arith.constant 63 : i32
    %c63_i32_509 = arith.constant 63 : i32
    %c0_i32_510 = arith.constant 0 : i32
    %955 = tpu.memref_slice %arg2[%570, %c0_i32_510] : memref<50x32xf32, #tpu.memory_space<any>> -> memref<1x32xf32, #tpu.memory_space<any>>
    %956 = tpu.memref_squeeze %955 : memref<1x32xf32, #tpu.memory_space<any>> -> memref<32xf32, #tpu.memory_space<any>>
    %c0_i32_511 = arith.constant 0 : i32
    %957 = tpu.memref_slice %arg3[%c63_i32_508, %c0_i32_511] : memref<64x32xf32, #tpu.memory_space<vmem>> -> memref<1x32xf32, #tpu.memory_space<vmem>>
    %958 = tpu.memref_squeeze %957 : memref<1x32xf32, #tpu.memory_space<vmem>> -> memref<32xf32, #tpu.memory_space<vmem>>
    %959 = tpu.memref_slice %arg4[%c63_i32_509] : memref<64x!tpu.dma_semaphore, #tpu.memory_space<semaphore_mem>> -> memref<1x!tpu.dma_semaphore, #tpu.memory_space<semaphore_mem>>
    %960 = tpu.memref_squeeze %959 : memref<1x!tpu.dma_semaphore, #tpu.memory_space<semaphore_mem>> -> memref<!tpu.dma_semaphore, #tpu.memory_space<semaphore_mem>>
    tpu.wait_dma2 semaphore(%960 : memref<!tpu.dma_semaphore, #tpu.memory_space<semaphore_mem>>) src(%956 : memref<32xf32, #tpu.memory_space<any>>) dst(%958 : memref<32xf32, #tpu.memory_space<vmem>>)
    return
  }
  func.func @transform_1(%arg0: i32, %arg1: memref<64xi32, #tpu.memory_space<smem>>) -> (i32, i32) {
    %c0_i32 = arith.constant 0 : i32
    %c0_i32_0 = arith.constant 0 : i32
    return %arg0, %c0_i32 : i32, i32
  }
}

</mosaic_0001>

<bundles_post_ra>
// kernel: tpu_custom_call.1
= control target key start
LH: loop header
LB: loop body
LE: loop exit
PB: predicated region body
PF: predicated region fallthrough
CT: control target
= control target key end

     0   :  { %s5420_s0 = inlined_call_operand.vmem [shape: s32[64], index: 0, kind: input, shape index: {}]   ;;  %s5421_s1 = inlined_call_operand.vmem [shape: f32[50,32], index: 1, kind: input, shape index: {}]   ;;  %s5422_s2 = inlined_call_operand.vmem [shape: f32[64,32], index: 2, kind: output, shape index: {}]  }
   0x1   :  { %s7_s11 = sshll.u32 %s5420_s0, 4  ;;  %s8_s11 = int_to_ptr.vmem [resolvable:$true] %s7_s11 }
   0x2   :  { %s4875_s12 = scalar_lea.vmem %s8_s11, 16  ;;  %p4880_p1 = scmp.lt.s32.totalorder %s8_s11, %s8_s11 }
   0x3   :  { %p4876_p0 = scmp.ne.s32.totalorder %s8_s11, %s4875_s12  ;;  %p4881_p2 = scmp.lt.s32.totalorder %s4875_s12, %s4875_s12 }
   0x5   :  { %p4882_p3 = por %p4881_p2, %p4880_p1 }
   0x7   :  { %p4883_p4 = pnand %p4882_p3, %p4876_p0 }
   0x9   :  { %4886 = shalt.err (!%p4883_p4)  }
   0xa   :  { %s5017_s13 = smov [#allocation4]  }
   0xb   :  { %10 = dma.vmem_to_smem %s8_s11, 16, %s5017_s13, [#allocation3] }
   0xc   :  { %4887 = dma.done.wait [#allocation3], 16 }
   0xd   :  { %4888 = vsyncadd [#allocation3], 4294967280 }
   0xe   :  { %12 = sfence }
   0xf   :  { %s14_s14 = sld [smem:[#allocation4]] }
  0x15   :  { %s15_s17 = scalar_lea.vmem %s5421_s1, %s14_s14 }
  0x16   :  { %v34_v0 = vld [vmem:[%s15_s17] sm:$0x1] }
  0x17   :  { %35 = vst [vmem:[%s5422_s2] sm:$0x1] %v34_v0 }
  0x18   :  { %61 = vsyncadd [#allocation2], 16  ;;  %s4621_s19 = sld [smem:[#allocation4 + $0x1]] }
  0x1e   :  { %s64_s22 = scalar_lea.vmem %s5421_s1, %s4621_s19 }
  0x1f   :  { %v85_v1 = vld [vmem:[%s64_s22] sm:$0x1] }
  0x20   :  { %4623 = vst [vmem:[%s5422_s2 + $0x1] sm:$0x1] %v85_v1 }
  0x21   :  { %112 = vsyncadd [#allocation2 + $0x1], 16  ;;  %s4624_s25 = sld [smem:[#allocation4 + $0x2]] }
  0x27   :  { %s115_s28 = scalar_lea.vmem %s5421_s1, %s4624_s25 }
  0x28   :  { %v136_v2 = vld [vmem:[%s115_s28] sm:$0x1] }
  0x29   :  { %4626 = vst [vmem:[%s5422_s2 + $0x2] sm:$0x1] %v136_v2 }
  0x2a   :  { %163 = vsyncadd [#allocation2 + $0x2], 16  ;;  %s4627_s3 = sld [smem:[#allocation4 + $0x3]] }
  0x30   :  { %s166_s6 = scalar_lea.vmem %s5421_s1, %s4627_s3 }
  0x31   :  { %v187_v3 = vld [vmem:[%s166_s6] sm:$0x1] }
  0x32   :  { %4629 = vst [vmem:[%s5422_s2 + $0x3] sm:$0x1] %v187_v3 }
  0x33   :  { %214 = vsyncadd [#allocation2 + $0x3], 16  ;;  %s4630_s9 = sld [smem:[#allocation4 + $0x4]] }
  0x39   :  { %s217_s12 = scalar_lea.vmem %s5421_s1, %s4630_s9 }
  0x3a   :  { %v238_v4 = vld [vmem:[%s217_s12] sm:$0x1] }
  0x3b   :  { %4632 = vst [vmem:[%s5422_s2 + $0x4] sm:$0x1] %v238_v4 }
  0x3c   :  { %265 = vsyncadd [#allocation2 + $0x4], 16  ;;  %s4633_s15 = sld [smem:[#allocation4 + $0x5]] }
  0x42   :  { %s268_s0 = scalar_lea.vmem %s5421_s1, %s4633_s15 }
  0x43   :  { %v289_v5 = vld [vmem:[%s268_s0] sm:$0x1] }
  0x44   :  { %4635 = vst [vmem:[%s5422_s2 + $0x5] sm:$0x1] %v289_v5 }
  0x45   :  { %316 = vsyncadd [#allocation2 + $0x5], 16  ;;  %s4636_s20 = sld [smem:[#allocation4 + $0x6]] }
  0x4b   :  { %s319_s23 = scalar_lea.vmem %s5421_s1, %s4636_s20 }
  0x4c   :  { %v340_v6 = vld [vmem:[%s319_s23] sm:$0x1] }
  0x4d   :  { %4638 = vst [vmem:[%s5422_s2 + $0x6] sm:$0x1] %v340_v6 }
  0x4e   :  { %367 = vsyncadd [#allocation2 + $0x6], 16  ;;  %s4639_s26 = sld [smem:[#allocation4 + $0x7]] }
  0x54   :  { %s370_s29 = scalar_lea.vmem %s5421_s1, %s4639_s26 }
  0x55   :  { %v391_v7 = vld [vmem:[%s370_s29] sm:$0x1] }
  0x56   :  { %4641 = vst [vmem:[%s5422_s2 + $0x7] sm:$0x1] %v391_v7 }
  0x57   :  { %418 = vsyncadd [#allocation2 + $0x7], 16  ;;  %s4642_s4 = sld [smem:[#allocation4 + $0x8]] }
  0x5d   :  { %s421_s7 = scalar_lea.vmem %s5421_s1, %s4642_s4 }
  0x5e   :  { %v442_v8 = vld [vmem:[%s421_s7] sm:$0x1] }
  0x5f   :  { %4644 = vst [vmem:[%s5422_s2 + $0x8] sm:$0x1] %v442_v8 }
  0x60   :  { %469 = vsyncadd [#allocation2 + $0x8], 16  ;;  %s4645_s10 = sld [smem:[#allocation4 + $0x9]] }
  0x66   :  { %s472_s13 = scalar_lea.vmem %s5421_s1, %s4645_s10 }
  0x67   :  { %v493_v9 = vld [vmem:[%s472_s13] sm:$0x1] }
  0x68   :  { %4647 = vst [vmem:[%s5422_s2 + $0x9] sm:$0x1] %v493_v9 }
  0x69   :  { %520 = vsyncadd [#allocation2 + $0x9], 16  ;;  %s4648_s16 = sld [smem:[#allocation4 + $0xa]] }
  0x6f   :  { %s523_s18 = scalar_lea.vmem %s5421_s1, %s4648_s16 }
  0x70   :  { %v544_v10 = vld [vmem:[%s523_s18] sm:$0x1] }
  0x71   :  { %4650 = vst [vmem:[%s5422_s2 + $0xa] sm:$0x1] %v544_v10 }
  0x72   :  { %571 = vsyncadd [#allocation2 + $0xa], 16  ;;  %s4651_s21 = sld [smem:[#allocation4 + $0xb]] }
  0x78   :  { %s574_s24 = scalar_lea.vmem %s5421_s1, %s4651_s21 }
  0x79   :  { %v595_v11 = vld [vmem:[%s574_s24] sm:$0x1] }
  0x7a   :  { %4653 = vst [vmem:[%s5422_s2 + $0xb] sm:$0x1] %v595_v11 }
  0x7b   :  { %622 = vsyncadd [#allocation2 + $0xb], 16  ;;  %s4654_s27 = sld [smem:[#allocation4 + $0xc]] }
  0x81   :  { %s625_s30 = scalar_lea.vmem %s5421_s1, %s4654_s27 }
  0x82   :  { %v646_v12 = vld [vmem:[%s625_s30] sm:$0x1] }
  0x83   :  { %4656 = vst [vmem:[%s5422_s2 + $0xc] sm:$0x1] %v646_v12 }
  0x84   :  { %673 = vsyncadd [#allocation2 + $0xc], 16  ;;  %s4657_s5 = sld [smem:[#allocation4 + $0xd]] }
  0x8a   :  { %s676_s8 = scalar_lea.vmem %s5421_s1, %s4657_s5 }
  0x8b   :  { %v697_v13 = vld [vmem:[%s676_s8] sm:$0x1] }
  0x8c   :  { %4659 = vst [vmem:[%s5422_s2 + $0xd] sm:$0x1] %v697_v13 }
  0x8d   :  { %724 = vsyncadd [#allocation2 + $0xd], 16  ;;  %s4660_s11 = sld [smem:[#allocation4 + $0xe]] }
  0x93   :  { %s727_s14 = scalar_lea.vmem %s5421_s1, %s4660_s11 }
  0x94   :  { %v748_v14 = vld [vmem:[%s727_s14] sm:$0x1] }
  0x95   :  { %4662 = vst [vmem:[%s5422_s2 + $0xe] sm:$0x1] %v748_v14 }
  0x96   :  { %775 = vsyncadd [#allocation2 + $0xe], 16  ;;  %s4663_s17 = sld [smem:[#allocation4 + $0xf]] }
  0x9c   :  { %s778_s19 = scalar_lea.vmem %s5421_s1, %s4663_s17 }
  0x9d   :  { %v799_v15 = vld [vmem:[%s778_s19] sm:$0x1] }
  0x9e   :  { %4665 = vst [vmem:[%s5422_s2 + $0xf] sm:$0x1] %v799_v15 }
  0x9f   :  { %826 = vsyncadd [#allocation2 + $0xf], 16  ;;  %s4666_s22 = sld [smem:[#allocation4 + $0x10]] }
  0xa5   :  { %s829_s25 = scalar_lea.vmem %s5421_s1, %s4666_s22 }
  0xa6   :  { %v850_v16 = vld [vmem:[%s829_s25] sm:$0x1] }
  0xa7   :  { %4668 = vst [vmem:[%s5422_s2 + $0x10] sm:$0x1] %v850_v16 }
  0xa8   :  { %877 = vsyncadd [#allocation2 + $0x10], 16  ;;  %s4669_s28 = sld [smem:[#allocation4 + $0x11]] }
  0xae   :  { %s880_s3 = scalar_lea.vmem %s5421_s1, %s4669_s28 }
  0xaf   :  { %v901_v17 = vld [vmem:[%s880_s3] sm:$0x1] }
  0xb0   :  { %4671 = vst [vmem:[%s5422_s2 + $0x11] sm:$0x1] %v901_v17 }
  0xb1   :  { %928 = vsyncadd [#allocation2 + $0x11], 16  ;;  %s4672_s6 = sld [smem:[#allocation4 + $0x12]] }
  0xb7   :  { %s931_s9 = scalar_lea.vmem %s5421_s1, %s4672_s6 }
  0xb8   :  { %v952_v18 = vld [vmem:[%s931_s9] sm:$0x1] }
  0xb9   :  { %4674 = vst [vmem:[%s5422_s2 + $0x12] sm:$0x1] %v952_v18 }
  0xba   :  { %979 = vsyncadd [#allocation2 + $0x12], 16  ;;  %s4675_s12 = sld [smem:[#allocation4 + $0x13]] }
  0xc0   :  { %s982_s15 = scalar_lea.vmem %s5421_s1, %s4675_s12 }
  0xc1   :  { %v1003_v19 = vld [vmem:[%s982_s15] sm:$0x1] }
  0xc2   :  { %4677 = vst [vmem:[%s5422_s2 + $0x13] sm:$0x1] %v1003_v19 }
  0xc3   :  { %1030 = vsyncadd [#allocation2 + $0x13], 16  ;;  %s4678_s0 = sld [smem:[#allocation4 + $0x14]] }
  0xc9   :  { %s1033_s20 = scalar_lea.vmem %s5421_s1, %s4678_s0 }
  0xca   :  { %v1054_v20 = vld [vmem:[%s1033_s20] sm:$0x1] }
  0xcb   :  { %4680 = vst [vmem:[%s5422_s2 + $0x14] sm:$0x1] %v1054_v20 }
  0xcc   :  { %1081 = vsyncadd [#allocation2 + $0x14], 16  ;;  %s4681_s23 = sld [smem:[#allocation4 + $0x15]] }
  0xd2   :  { %s1084_s26 = scalar_lea.vmem %s5421_s1, %s4681_s23 }
  0xd3   :  { %v1105_v21 = vld [vmem:[%s1084_s26] sm:$0x1] }
  0xd4   :  { %4683 = vst [vmem:[%s5422_s2 + $0x15] sm:$0x1] %v1105_v21 }
  0xd5   :  { %1132 = vsyncadd [#allocation2 + $0x15], 16  ;;  %s4684_s29 = sld [smem:[#allocation4 + $0x16]] }
  0xdb   :  { %s1135_s4 = scalar_lea.vmem %s5421_s1, %s4684_s29 }
  0xdc   :  { %v1156_v22 = vld [vmem:[%s1135_s4] sm:$0x1] }
  0xdd   :  { %4686 = vst [vmem:[%s5422_s2 + $0x16] sm:$0x1] %v1156_v22 }
  0xde   :  { %1183 = vsyncadd [#allocation2 + $0x16], 16  ;;  %s4687_s7 = sld [smem:[#allocation4 + $0x17]] }
  0xe4   :  { %s1186_s10 = scalar_lea.vmem %s5421_s1, %s4687_s7 }
  0xe5   :  { %v1207_v23 = vld [vmem:[%s1186_s10] sm:$0x1] }
  0xe6   :  { %4689 = vst [vmem:[%s5422_s2 + $0x17] sm:$0x1] %v1207_v23 }
  0xe7   :  { %1234 = vsyncadd [#allocation2 + $0x17], 16  ;;  %s4690_s13 = sld [smem:[#allocation4 + $0x18]] }
  0xed   :  { %s1237_s16 = scalar_lea.vmem %s5421_s1, %s4690_s13 }
  0xee   :  { %v1258_v24 = vld [vmem:[%s1237_s16] sm:$0x1] }
  0xef   :  { %4692 = vst [vmem:[%s5422_s2 + $0x18] sm:$0x1] %v1258_v24 }
  0xf0   :  { %1285 = vsyncadd [#allocation2 + $0x18], 16  ;;  %s4693_s18 = sld [smem:[#allocation4 + $0x19]] }
  0xf6   :  { %s1288_s21 = scalar_lea.vmem %s5421_s1, %s4693_s18 }
  0xf7   :  { %v1309_v25 = vld [vmem:[%s1288_s21] sm:$0x1] }
  0xf8   :  { %4695 = vst [vmem:[%s5422_s2 + $0x19] sm:$0x1] %v1309_v25 }
  0xf9   :  { %1336 = vsyncadd [#allocation2 + $0x19], 16  ;;  %s4696_s24 = sld [smem:[#allocation4 + $0x1a]] }
  0xff   :  { %s1339_s27 = scalar_lea.vmem %s5421_s1, %s4696_s24 }
 0x100   :  { %v1360_v26 = vld [vmem:[%s1339_s27] sm:$0x1] }
 0x101   :  { %4698 = vst [vmem:[%s5422_s2 + $0x1a] sm:$0x1] %v1360_v26 }
 0x102   :  { %1387 = vsyncadd [#allocation2 + $0x1a], 16  ;;  %s4699_s30 = sld [smem:[#allocation4 + $0x1b]] }
 0x108   :  { %s1390_s5 = scalar_lea.vmem %s5421_s1, %s4699_s30 }
 0x109   :  { %v1411_v27 = vld [vmem:[%s1390_s5] sm:$0x1] }
 0x10a   :  { %4701 = vst [vmem:[%s5422_s2 + $0x1b] sm:$0x1] %v1411_v27 }
 0x10b   :  { %1438 = vsyncadd [#allocation2 + $0x1b], 16  ;;  %s4702_s8 = sld [smem:[#allocation4 + $0x1c]] }
 0x111   :  { %s1441_s11 = scalar_lea.vmem %s5421_s1, %s4702_s8 }
 0x112   :  { %v1462_v28 = vld [vmem:[%s1441_s11] sm:$0x1] }
 0x113   :  { %4704 = vst [vmem:[%s5422_s2 + $0x1c] sm:$0x1] %v1462_v28 }
 0x114   :  { %1489 = vsyncadd [#allocation2 + $0x1c], 16  ;;  %s4705_s14 = sld [smem:[#allocation4 + $0x1d]] }
 0x11a   :  { %s1492_s17 = scalar_lea.vmem %s5421_s1, %s4705_s14 }
 0x11b   :  { %v1513_v29 = vld [vmem:[%s1492_s17] sm:$0x1] }
 0x11c   :  { %4707 = vst [vmem:[%s5422_s2 + $0x1d] sm:$0x1] %v1513_v29 }
 0x11d   :  { %1540 = vsyncadd [#allocation2 + $0x1d], 16  ;;  %s4708_s19 = sld [smem:[#allocation4 + $0x1e]] }
 0x123   :  { %s1543_s22 = scalar_lea.vmem %s5421_s1, %s4708_s19 }
 0x124   :  { %v1564_v30 = vld [vmem:[%s1543_s22] sm:$0x1] }
 0x125   :  { %4710 = vst [vmem:[%s5422_s2 + $0x1e] sm:$0x1] %v1564_v30 }
 0x126   :  { %1591 = vsyncadd [#allocation2 + $0x1e], 16  ;;  %s4711_s25 = sld [smem:[#allocation4 + $0x1f]] }
 0x12c   :  { %s1594_s28 = scalar_lea.vmem %s5421_s1, %s4711_s25 }
 0x12d   :  { %v1615_v31 = vld [vmem:[%s1594_s28] sm:$0x1] }
 0x12e   :  { %4713 = vst [vmem:[%s5422_s2 + $0x1f] sm:$0x1] %v1615_v31 }
 0x12f   :  { %1642 = vsyncadd [#allocation2 + $0x1f], 16  ;;  %s4714_s3 = sld [smem:[#allocation4 + $0x20]] }
 0x135   :  { %s1645_s6 = scalar_lea.vmem %s5421_s1, %s4714_s3 }
 0x136   :  { %v1666_v32 = vld [vmem:[%s1645_s6] sm:$0x1] }
 0x137   :  { %4716 = vst [vmem:[%s5422_s2 + $0x20] sm:$0x1] %v1666_v32 }
 0x138   :  { %1693 = vsyncadd [#allocation2 + $0x20], 16  ;;  %s4717_s9 = sld [smem:[#allocation4 + $0x21]] }
 0x13e   :  { %s1696_s12 = scalar_lea.vmem %s5421_s1, %s4717_s9 }
 0x13f   :  { %v1717_v33 = vld [vmem:[%s1696_s12] sm:$0x1] }
 0x140   :  { %4719 = vst [vmem:[%s5422_s2 + $0x21] sm:$0x1] %v1717_v33 }
 0x141   :  { %1744 = vsyncadd [#allocation2 + $0x21], 16  ;;  %s4720_s15 = sld [smem:[#allocation4 + $0x22]] }
 0x147   :  { %s1747_s0 = scalar_lea.vmem %s5421_s1, %s4720_s15 }
 0x148   :  { %v1768_v34 = vld [vmem:[%s1747_s0] sm:$0x1] }
 0x149   :  { %4722 = vst [vmem:[%s5422_s2 + $0x22] sm:$0x1] %v1768_v34 }
 0x14a   :  { %1795 = vsyncadd [#allocation2 + $0x22], 16  ;;  %s4723_s20 = sld [smem:[#allocation4 + $0x23]] }
 0x150   :  { %s1798_s23 = scalar_lea.vmem %s5421_s1, %s4723_s20 }
 0x151   :  { %v1819_v35 = vld [vmem:[%s1798_s23] sm:$0x1] }
 0x152   :  { %4725 = vst [vmem:[%s5422_s2 + $0x23] sm:$0x1] %v1819_v35 }
 0x153   :  { %1846 = vsyncadd [#allocation2 + $0x23], 16  ;;  %s4726_s26 = sld [smem:[#allocation4 + $0x24]] }
 0x159   :  { %s1849_s29 = scalar_lea.vmem %s5421_s1, %s4726_s26 }
 0x15a   :  { %v1870_v36 = vld [vmem:[%s1849_s29] sm:$0x1] }
 0x15b   :  { %4728 = vst [vmem:[%s5422_s2 + $0x24] sm:$0x1] %v1870_v36 }
 0x15c   :  { %1897 = vsyncadd [#allocation2 + $0x24], 16  ;;  %s4729_s4 = sld [smem:[#allocation4 + $0x25]] }
 0x162   :  { %s1900_s7 = scalar_lea.vmem %s5421_s1, %s4729_s4 }
 0x163   :  { %v1921_v37 = vld [vmem:[%s1900_s7] sm:$0x1] }
 0x164   :  { %4731 = vst [vmem:[%s5422_s2 + $0x25] sm:$0x1] %v1921_v37 }
 0x165   :  { %1948 = vsyncadd [#allocation2 + $0x25], 16  ;;  %s4732_s10 = sld [smem:[#allocation4 + $0x26]] }
 0x16b   :  { %s1951_s13 = scalar_lea.vmem %s5421_s1, %s4732_s10 }
 0x16c   :  { %v1972_v38 = vld [vmem:[%s1951_s13] sm:$0x1] }
 0x16d   :  { %4734 = vst [vmem:[%s5422_s2 + $0x26] sm:$0x1] %v1972_v38 }
 0x16e   :  { %1999 = vsyncadd [#allocation2 + $0x26], 16  ;;  %s4735_s16 = sld [smem:[#allocation4 + $0x27]] }
 0x174   :  { %s2002_s18 = scalar_lea.vmem %s5421_s1, %s4735_s16 }
 0x175   :  { %v2023_v39 = vld [vmem:[%s2002_s18] sm:$0x1] }
 0x176   :  { %4737 = vst [vmem:[%s5422_s2 + $0x27] sm:$0x1] %v2023_v39 }
 0x177   :  { %2050 = vsyncadd [#allocation2 + $0x27], 16  ;;  %s4738_s21 = sld [smem:[#allocation4 + $0x28]] }
 0x17d   :  { %s2053_s24 = scalar_lea.vmem %s5421_s1, %s4738_s21 }
 0x17e   :  { %v2074_v40 = vld [vmem:[%s2053_s24] sm:$0x1] }
 0x17f   :  { %4740 = vst [vmem:[%s5422_s2 + $0x28] sm:$0x1] %v2074_v40 }
 0x180   :  { %2101 = vsyncadd [#allocation2 + $0x28], 16  ;;  %s4741_s27 = sld [smem:[#allocation4 + $0x29]] }
 0x186   :  { %s2104_s30 = scalar_lea.vmem %s5421_s1, %s4741_s27 }
 0x187   :  { %v2125_v41 = vld [vmem:[%s2104_s30] sm:$0x1] }
 0x188   :  { %4743 = vst [vmem:[%s5422_s2 + $0x29] sm:$0x1] %v2125_v41 }
 0x189   :  { %2152 = vsyncadd [#allocation2 + $0x29], 16  ;;  %s4744_s5 = sld [smem:[#allocation4 + $0x2a]] }
 0x18f   :  { %s2155_s8 = scalar_lea.vmem %s5421_s1, %s4744_s5 }
 0x190   :  { %v2176_v42 = vld [vmem:[%s2155_s8] sm:$0x1] }
 0x191   :  { %4746 = vst [vmem:[%s5422_s2 + $0x2a] sm:$0x1] %v2176_v42 }
 0x192   :  { %2203 = vsyncadd [#allocation2 + $0x2a], 16  ;;  %s4747_s11 = sld [smem:[#allocation4 + $0x2b]] }
 0x198   :  { %s2206_s14 = scalar_lea.vmem %s5421_s1, %s4747_s11 }
 0x199   :  { %v2227_v43 = vld [vmem:[%s2206_s14] sm:$0x1] }
 0x19a   :  { %4749 = vst [vmem:[%s5422_s2 + $0x2b] sm:$0x1] %v2227_v43 }
 0x19b   :  { %2254 = vsyncadd [#allocation2 + $0x2b], 16  ;;  %s4750_s17 = sld [smem:[#allocation4 + $0x2c]] }
 0x1a1   :  { %s2257_s19 = scalar_lea.vmem %s5421_s1, %s4750_s17 }
 0x1a2   :  { %v2278_v44 = vld [vmem:[%s2257_s19] sm:$0x1] }
 0x1a3   :  { %4752 = vst [vmem:[%s5422_s2 + $0x2c] sm:$0x1] %v2278_v44 }
 0x1a4   :  { %2305 = vsyncadd [#allocation2 + $0x2c], 16  ;;  %s4753_s22 = sld [smem:[#allocation4 + $0x2d]] }
 0x1aa   :  { %s2308_s25 = scalar_lea.vmem %s5421_s1, %s4753_s22 }
 0x1ab   :  { %v2329_v45 = vld [vmem:[%s2308_s25] sm:$0x1] }
 0x1ac   :  { %4755 = vst [vmem:[%s5422_s2 + $0x2d] sm:$0x1] %v2329_v45 }
 0x1ad   :  { %2356 = vsyncadd [#allocation2 + $0x2d], 16  ;;  %s4756_s28 = sld [smem:[#allocation4 + $0x2e]] }
 0x1b3   :  { %s2359_s3 = scalar_lea.vmem %s5421_s1, %s4756_s28 }
 0x1b4   :  { %v2380_v46 = vld [vmem:[%s2359_s3] sm:$0x1] }
 0x1b5   :  { %4758 = vst [vmem:[%s5422_s2 + $0x2e] sm:$0x1] %v2380_v46 }
 0x1b6   :  { %2407 = vsyncadd [#allocation2 + $0x2e], 16  ;;  %s4759_s6 = sld [smem:[#allocation4 + $0x2f]] }
 0x1bc   :  { %s2410_s9 = scalar_lea.vmem %s5421_s1, %s4759_s6 }
 0x1bd   :  { %v2431_v47 = vld [vmem:[%s2410_s9] sm:$0x1] }
 0x1be   :  { %4761 = vst [vmem:[%s5422_s2 + $0x2f] sm:$0x1] %v2431_v47 }
 0x1bf   :  { %2458 = vsyncadd [#allocation2 + $0x2f], 16  ;;  %s4762_s12 = sld [smem:[#allocation4 + $0x30]] }
 0x1c5   :  { %s2461_s15 = scalar_lea.vmem %s5421_s1, %s4762_s12 }
 0x1c6   :  { %v2482_v48 = vld [vmem:[%s2461_s15] sm:$0x1] }
 0x1c7   :  { %4764 = vst [vmem:[%s5422_s2 + $0x30] sm:$0x1] %v2482_v48 }
 0x1c8   :  { %2509 = vsyncadd [#allocation2 + $0x30], 16  ;;  %s4765_s0 = sld [smem:[#allocation4 + $0x31]] }
 0x1ce   :  { %s2512_s20 = scalar_lea.vmem %s5421_s1, %s4765_s0 }
 0x1cf   :  { %v2533_v49 = vld [vmem:[%s2512_s20] sm:$0x1] }
 0x1d0   :  { %4767 = vst [vmem:[%s5422_s2 + $0x31] sm:$0x1] %v2533_v49 }
 0x1d1   :  { %2560 = vsyncadd [#allocation2 + $0x31], 16  ;;  %s4768_s23 = sld [smem:[#allocation4 + $0x32]] }
 0x1d7   :  { %s2563_s26 = scalar_lea.vmem %s5421_s1, %s4768_s23 }
 0x1d8   :  { %v2584_v50 = vld [vmem:[%s2563_s26] sm:$0x1] }
 0x1d9   :  { %4770 = vst [vmem:[%s5422_s2 + $0x32] sm:$0x1] %v2584_v50 }
 0x1da   :  { %2611 = vsyncadd [#allocation2 + $0x32], 16  ;;  %s4771_s29 = sld [smem:[#allocation4 + $0x33]] }
 0x1e0   :  { %s2614_s4 = scalar_lea.vmem %s5421_s1, %s4771_s29 }
 0x1e1   :  { %v2635_v51 = vld [vmem:[%s2614_s4] sm:$0x1] }
 0x1e2   :  { %4773 = vst [vmem:[%s5422_s2 + $0x33] sm:$0x1] %v2635_v51 }
 0x1e3   :  { %2662 = vsyncadd [#allocation2 + $0x33], 16  ;;  %s4774_s7 = sld [smem:[#allocation4 + $0x34]] }
 0x1e9   :  { %s2665_s10 = scalar_lea.vmem %s5421_s1, %s4774_s7 }
 0x1ea   :  { %v2686_v52 = vld [vmem:[%s2665_s10] sm:$0x1] }
 0x1eb   :  { %4776 = vst [vmem:[%s5422_s2 + $0x34] sm:$0x1] %v2686_v52 }
 0x1ec   :  { %2713 = vsyncadd [#allocation2 + $0x34], 16  ;;  %s4777_s13 = sld [smem:[#allocation4 + $0x35]] }
 0x1f2   :  { %s2716_s16 = scalar_lea.vmem %s5421_s1, %s4777_s13 }
 0x1f3   :  { %v2737_v53 = vld [vmem:[%s2716_s16] sm:$0x1] }
 0x1f4   :  { %4779 = vst [vmem:[%s5422_s2 + $0x35] sm:$0x1] %v2737_v53 }
 0x1f5   :  { %2764 = vsyncadd [#allocation2 + $0x35], 16  ;;  %s4780_s18 = sld [smem:[#allocation4 + $0x36]] }
 0x1fb   :  { %s2767_s21 = scalar_lea.vmem %s5421_s1, %s4780_s18 }
 0x1fc   :  { %v2788_v54 = vld [vmem:[%s2767_s21] sm:$0x1] }
 0x1fd   :  { %4782 = vst [vmem:[%s5422_s2 + $0x36] sm:$0x1] %v2788_v54 }
 0x1fe   :  { %2815 = vsyncadd [#allocation2 + $0x36], 16  ;;  %s4783_s24 = sld [smem:[#allocation4 + $0x37]] }
 0x204   :  { %s2818_s27 = scalar_lea.vmem %s5421_s1, %s4783_s24 }
 0x205   :  { %v2839_v55 = vld [vmem:[%s2818_s27] sm:$0x1] }
 0x206   :  { %4785 = vst [vmem:[%s5422_s2 + $0x37] sm:$0x1] %v2839_v55 }
 0x207   :  { %2866 = vsyncadd [#allocation2 + $0x37], 16  ;;  %s4786_s30 = sld [smem:[#allocation4 + $0x38]] }
 0x20d   :  { %s2869_s5 = scalar_lea.vmem %s5421_s1, %s4786_s30 }
 0x20e   :  { %v2890_v56 = vld [vmem:[%s2869_s5] sm:$0x1] }
 0x20f   :  { %4788 = vst [vmem:[%s5422_s2 + $0x38] sm:$0x1] %v2890_v56 }
 0x210   :  { %2917 = vsyncadd [#allocation2 + $0x38], 16  ;;  %s4789_s8 = sld [smem:[#allocation4 + $0x39]] }
 0x216   :  { %s2920_s11 = scalar_lea.vmem %s5421_s1, %s4789_s8 }
 0x217   :  { %v2941_v57 = vld [vmem:[%s2920_s11] sm:$0x1] }
 0x218   :  { %4791 = vst [vmem:[%s5422_s2 + $0x39] sm:$0x1] %v2941_v57 }
 0x219   :  { %2968 = vsyncadd [#allocation2 + $0x39], 16  ;;  %s4792_s14 = sld [smem:[#allocation4 + $0x3a]] }
 0x21f   :  { %s2971_s17 = scalar_lea.vmem %s5421_s1, %s4792_s14 }
 0x220   :  { %v2992_v58 = vld [vmem:[%s2971_s17] sm:$0x1] }
 0x221   :  { %4794 = vst [vmem:[%s5422_s2 + $0x3a] sm:$0x1] %v2992_v58 }
 0x222   :  { %3019 = vsyncadd [#allocation2 + $0x3a], 16  ;;  %s4795_s19 = sld [smem:[#allocation4 + $0x3b]] }
 0x228   :  { %s3022_s22 = scalar_lea.vmem %s5421_s1, %s4795_s19 }
 0x229   :  { %v3043_v59 = vld [vmem:[%s3022_s22] sm:$0x1] }
 0x22a   :  { %4797 = vst [vmem:[%s5422_s2 + $0x3b] sm:$0x1] %v3043_v59 }
 0x22b   :  { %3070 = vsyncadd [#allocation2 + $0x3b], 16  ;;  %s4798_s25 = sld [smem:[#allocation4 + $0x3c]] }
 0x231   :  { %s3073_s28 = scalar_lea.vmem %s5421_s1, %s4798_s25 }
 0x232   :  { %v3094_v60 = vld [vmem:[%s3073_s28] sm:$0x1] }
 0x233   :  { %4800 = vst [vmem:[%s5422_s2 + $0x3c] sm:$0x1] %v3094_v60 }
 0x234   :  { %3121 = vsyncadd [#allocation2 + $0x3c], 16  ;;  %s4801_s3 = sld [smem:[#allocation4 + $0x3d]] }
 0x23a   :  { %s3124_s6 = scalar_lea.vmem %s5421_s1, %s4801_s3 }
 0x23b   :  { %v3145_v61 = vld [vmem:[%s3124_s6] sm:$0x1] }
 0x23c   :  { %4803 = vst [vmem:[%s5422_s2 + $0x3d] sm:$0x1] %v3145_v61 }
 0x23d   :  { %3172 = vsyncadd [#allocation2 + $0x3d], 16  ;;  %s4804_s9 = sld [smem:[#allocation4 + $0x3e]] }
 0x243   :  { %s3175_s12 = scalar_lea.vmem %s5421_s1, %s4804_s9 }
 0x244   :  { %v3196_v62 = vld [vmem:[%s3175_s12] sm:$0x1] }
 0x245   :  { %4806 = vst [vmem:[%s5422_s2 + $0x3e] sm:$0x1] %v3196_v62 }
 0x246   :  { %3223 = vsyncadd [#allocation2 + $0x3e], 16  ;;  %s4807_s15 = sld [smem:[#allocation4 + $0x3f]] }
 0x24c   :  { %s3226_s0 = scalar_lea.vmem %s5421_s1, %s4807_s15 }
 0x24d   :  { %v3247_v63 = vld [vmem:[%s3226_s0] sm:$0x1] }
 0x24e   :  { %4809 = vst [vmem:[%s5422_s2 + $0x3f] sm:$0x1] %v3247_v63 }
 0x24f   :  { %3274 = vsyncadd [#allocation2 + $0x3f], 16 }
 0x250   :  { %4889 = dma.done.wait [#allocation2], 16 }
 0x251   :  { %4890 = vsyncadd [#allocation2], 4294967280 }
 0x252   :  { %4891 = dma.done.wait [#allocation2 + $0x1], 16 }
 0x253   :  { %4892 = vsyncadd [#allocation2 + $0x1], 4294967280 }
 0x254   :  { %4893 = dma.done.wait [#allocation2 + $0x2], 16 }
 0x255   :  { %4894 = vsyncadd [#allocation2 + $0x2], 4294967280 }
 0x256   :  { %4895 = dma.done.wait [#allocation2 + $0x3], 16 }
 0x257   :  { %4896 = vsyncadd [#allocation2 + $0x3], 4294967280 }
 0x258   :  { %4897 = dma.done.wait [#allocation2 + $0x4], 16 }
 0x259   :  { %4898 = vsyncadd [#allocation2 + $0x4], 4294967280 }
 0x25a   :  { %4899 = dma.done.wait [#allocation2 + $0x5], 16 }
 0x25b   :  { %4900 = vsyncadd [#allocation2 + $0x5], 4294967280 }
 0x25c   :  { %4901 = dma.done.wait [#allocation2 + $0x6], 16 }
 0x25d   :  { %4902 = vsyncadd [#allocation2 + $0x6], 4294967280 }
 0x25e   :  { %4903 = dma.done.wait [#allocation2 + $0x7], 16 }
 0x25f   :  { %4904 = vsyncadd [#allocation2 + $0x7], 4294967280 }
 0x260   :  { %4905 = dma.done.wait [#allocation2 + $0x8], 16 }
 0x261   :  { %4906 = vsyncadd [#allocation2 + $0x8], 4294967280 }
 0x262   :  { %4907 = dma.done.wait [#allocation2 + $0x9], 16 }
 0x263   :  { %4908 = vsyncadd [#allocation2 + $0x9], 4294967280 }
 0x264   :  { %4909 = dma.done.wait [#allocation2 + $0xa], 16 }
 0x265   :  { %4910 = vsyncadd [#allocation2 + $0xa], 4294967280 }
 0x266   :  { %4911 = dma.done.wait [#allocation2 + $0xb], 16 }
 0x267   :  { %4912 = vsyncadd [#allocation2 + $0xb], 4294967280 }
 0x268   :  { %4913 = dma.done.wait [#allocation2 + $0xc], 16 }
 0x269   :  { %4914 = vsyncadd [#allocation2 + $0xc], 4294967280 }
 0x26a   :  { %4915 = dma.done.wait [#allocation2 + $0xd], 16 }
 0x26b   :  { %4916 = vsyncadd [#allocation2 + $0xd], 4294967280 }
 0x26c   :  { %4917 = dma.done.wait [#allocation2 + $0xe], 16 }
 0x26d   :  { %4918 = vsyncadd [#allocation2 + $0xe], 4294967280 }
 0x26e   :  { %4919 = dma.done.wait [#allocation2 + $0xf], 16 }
 0x26f   :  { %4920 = vsyncadd [#allocation2 + $0xf], 4294967280 }
 0x270   :  { %4921 = dma.done.wait [#allocation2 + $0x10], 16 }
 0x271   :  { %4922 = vsyncadd [#allocation2 + $0x10], 4294967280 }
 0x272   :  { %4923 = dma.done.wait [#allocation2 + $0x11], 16 }
 0x273   :  { %4924 = vsyncadd [#allocation2 + $0x11], 4294967280 }
 0x274   :  { %4925 = dma.done.wait [#allocation2 + $0x12], 16 }
 0x275   :  { %4926 = vsyncadd [#allocation2 + $0x12], 4294967280 }
 0x276   :  { %4927 = dma.done.wait [#allocation2 + $0x13], 16 }
 0x277   :  { %4928 = vsyncadd [#allocation2 + $0x13], 4294967280 }
 0x278   :  { %4929 = dma.done.wait [#allocation2 + $0x14], 16 }
 0x279   :  { %4930 = vsyncadd [#allocation2 + $0x14], 4294967280 }
 0x27a   :  { %4931 = dma.done.wait [#allocation2 + $0x15], 16 }
 0x27b   :  { %4932 = vsyncadd [#allocation2 + $0x15], 4294967280 }
 0x27c   :  { %4933 = dma.done.wait [#allocation2 + $0x16], 16 }
 0x27d   :  { %4934 = vsyncadd [#allocation2 + $0x16], 4294967280 }
 0x27e   :  { %4935 = dma.done.wait [#allocation2 + $0x17], 16 }
 0x27f   :  { %4936 = vsyncadd [#allocation2 + $0x17], 4294967280 }
 0x280   :  { %4937 = dma.done.wait [#allocation2 + $0x18], 16 }
 0x281   :  { %4938 = vsyncadd [#allocation2 + $0x18], 4294967280 }
 0x282   :  { %4939 = dma.done.wait [#allocation2 + $0x19], 16 }
 0x283   :  { %4940 = vsyncadd [#allocation2 + $0x19], 4294967280 }
 0x284   :  { %4941 = dma.done.wait [#allocation2 + $0x1a], 16 }
 0x285   :  { %4942 = vsyncadd [#allocation2 + $0x1a], 4294967280 }
 0x286   :  { %4943 = dma.done.wait [#allocation2 + $0x1b], 16 }
 0x287   :  { %4944 = vsyncadd [#allocation2 + $0x1b], 4294967280 }
 0x288   :  { %4945 = dma.done.wait [#allocation2 + $0x1c], 16 }
 0x289   :  { %4946 = vsyncadd [#allocation2 + $0x1c], 4294967280 }
 0x28a   :  { %4947 = dma.done.wait [#allocation2 + $0x1d], 16 }
 0x28b   :  { %4948 = vsyncadd [#allocation2 + $0x1d], 4294967280 }
 0x28c   :  { %4949 = dma.done.wait [#allocation2 + $0x1e], 16 }
 0x28d   :  { %4950 = vsyncadd [#allocation2 + $0x1e], 4294967280 }
 0x28e   :  { %4951 = dma.done.wait [#allocation2 + $0x1f], 16 }
 0x28f   :  { %4952 = vsyncadd [#allocation2 + $0x1f], 4294967280 }
 0x290   :  { %4953 = dma.done.wait [#allocation2 + $0x20], 16 }
 0x291   :  { %4954 = vsyncadd [#allocation2 + $0x20], 4294967280 }
 0x292   :  { %4955 = dma.done.wait [#allocation2 + $0x21], 16 }
 0x293   :  { %4956 = vsyncadd [#allocation2 + $0x21], 4294967280 }
 0x294   :  { %4957 = dma.done.wait [#allocation2 + $0x22], 16 }
 0x295   :  { %4958 = vsyncadd [#allocation2 + $0x22], 4294967280 }
 0x296   :  { %4959 = dma.done.wait [#allocation2 + $0x23], 16 }
 0x297   :  { %4960 = vsyncadd [#allocation2 + $0x23], 4294967280 }
 0x298   :  { %4961 = dma.done.wait [#allocation2 + $0x24], 16 }
 0x299   :  { %4962 = vsyncadd [#allocation2 + $0x24], 4294967280 }
 0x29a   :  { %4963 = dma.done.wait [#allocation2 + $0x25], 16 }
 0x29b   :  { %4964 = vsyncadd [#allocation2 + $0x25], 4294967280 }
 0x29c   :  { %4965 = dma.done.wait [#allocation2 + $0x26], 16 }
 0x29d   :  { %4966 = vsyncadd [#allocation2 + $0x26], 4294967280 }
 0x29e   :  { %4967 = dma.done.wait [#allocation2 + $0x27], 16 }
 0x29f   :  { %4968 = vsyncadd [#allocation2 + $0x27], 4294967280 }
 0x2a0   :  { %4969 = dma.done.wait [#allocation2 + $0x28], 16 }
 0x2a1   :  { %4970 = vsyncadd [#allocation2 + $0x28], 4294967280 }
 0x2a2   :  { %4971 = dma.done.wait [#allocation2 + $0x29], 16 }
 0x2a3   :  { %4972 = vsyncadd [#allocation2 + $0x29], 4294967280 }
 0x2a4   :  { %4973 = dma.done.wait [#allocation2 + $0x2a], 16 }
 0x2a5   :  { %4974 = vsyncadd [#allocation2 + $0x2a], 4294967280 }
 0x2a6   :  { %4975 = dma.done.wait [#allocation2 + $0x2b], 16 }
 0x2a7   :  { %4976 = vsyncadd [#allocation2 + $0x2b], 4294967280 }
 0x2a8   :  { %4977 = dma.done.wait [#allocation2 + $0x2c], 16 }
 0x2a9   :  { %4978 = vsyncadd [#allocation2 + $0x2c], 4294967280 }
 0x2aa   :  { %4979 = dma.done.wait [#allocation2 + $0x2d], 16 }
 0x2ab   :  { %4980 = vsyncadd [#allocation2 + $0x2d], 4294967280 }
 0x2ac   :  { %4981 = dma.done.wait [#allocation2 + $0x2e], 16 }
 0x2ad   :  { %4982 = vsyncadd [#allocation2 + $0x2e], 4294967280 }
 0x2ae   :  { %4983 = dma.done.wait [#allocation2 + $0x2f], 16 }
 0x2af   :  { %4984 = vsyncadd [#allocation2 + $0x2f], 4294967280 }
 0x2b0   :  { %4985 = dma.done.wait [#allocation2 + $0x30], 16 }
 0x2b1   :  { %4986 = vsyncadd [#allocation2 + $0x30], 4294967280 }
 0x2b2   :  { %4987 = dma.done.wait [#allocation2 + $0x31], 16 }
 0x2b3   :  { %4988 = vsyncadd [#allocation2 + $0x31], 4294967280 }
 0x2b4   :  { %4989 = dma.done.wait [#allocation2 + $0x32], 16 }
 0x2b5   :  { %4990 = vsyncadd [#allocation2 + $0x32], 4294967280 }
 0x2b6   :  { %4991 = dma.done.wait [#allocation2 + $0x33], 16 }
 0x2b7   :  { %4992 = vsyncadd [#allocation2 + $0x33], 4294967280 }
 0x2b8   :  { %4993 = dma.done.wait [#allocation2 + $0x34], 16 }
 0x2b9   :  { %4994 = vsyncadd [#allocation2 + $0x34], 4294967280 }
 0x2ba   :  { %4995 = dma.done.wait [#allocation2 + $0x35], 16 }
 0x2bb   :  { %4996 = vsyncadd [#allocation2 + $0x35], 4294967280 }
 0x2bc   :  { %4997 = dma.done.wait [#allocation2 + $0x36], 16 }
 0x2bd   :  { %4998 = vsyncadd [#allocation2 + $0x36], 4294967280 }
 0x2be   :  { %4999 = dma.done.wait [#allocation2 + $0x37], 16 }
 0x2bf   :  { %5000 = vsyncadd [#allocation2 + $0x37], 4294967280 }
 0x2c0   :  { %5001 = dma.done.wait [#allocation2 + $0x38], 16 }
 0x2c1   :  { %5002 = vsyncadd [#allocation2 + $0x38], 4294967280 }
 0x2c2   :  { %5003 = dma.done.wait [#allocation2 + $0x39], 16 }
 0x2c3   :  { %5004 = vsyncadd [#allocation2 + $0x39], 4294967280 }
 0x2c4   :  { %5005 = dma.done.wait [#allocation2 + $0x3a], 16 }
 0x2c5   :  { %5006 = vsyncadd [#allocation2 + $0x3a], 4294967280 }
 0x2c6   :  { %5007 = dma.done.wait [#allocation2 + $0x3b], 16 }
 0x2c7   :  { %5008 = vsyncadd [#allocation2 + $0x3b], 4294967280 }
 0x2c8   :  { %5009 = dma.done.wait [#allocation2 + $0x3c], 16 }
 0x2c9   :  { %5010 = vsyncadd [#allocation2 + $0x3c], 4294967280 }
 0x2ca   :  { %5011 = dma.done.wait [#allocation2 + $0x3d], 16 }
 0x2cb   :  { %5012 = vsyncadd [#allocation2 + $0x3d], 4294967280 }
 0x2cc   :  { %5013 = dma.done.wait [#allocation2 + $0x3e], 16 }
 0x2cd   :  { %5014 = vsyncadd [#allocation2 + $0x3e], 4294967280 }
 0x2ce   :  { %5015 = dma.done.wait [#allocation2 + $0x3f], 16 }
 0x2cf   :  { %5016 = vsyncadd [#allocation2 + $0x3f], 4294967280 }
 0x2d0   :  { %3407 = vsyncmov [#allocation2] }
 0x2d3   :  { %s3408_s1 = vpop.sfrf %3407 }
 0x2d4   :  { %p4810_p5 = scmp.ne.s32.totalorder %s3408_s1, 0 }
 0x2d6   :  { %3412 = shalt.err (%p4810_p5)  }
 0x2d7   :  { %3414 = vsyncmov [#allocation2 + $0x1] }
 0x2da   :  { %s3415_s2 = vpop.sfrf %3414 }
 0x2db   :  { %p4811_p6 = scmp.ne.s32.totalorder %s3415_s2, 0 }
 0x2dd   :  { %3419 = shalt.err (%p4811_p6)  }
 0x2de   :  { %3421 = vsyncmov [#allocation2 + $0x2] }
 0x2e1   :  { %s3422_s20 = vpop.sfrf %3421 }
 0x2e2   :  { %p4812_p7 = scmp.ne.s32.totalorder %s3422_s20, 0 }
 0x2e4   :  { %3426 = shalt.err (%p4812_p7)  }
 0x2e5   :  { %3428 = vsyncmov [#allocation2 + $0x3] }
 0x2e8   :  { %s3429_s21 = vpop.sfrf %3428 }
 0x2e9   :  { %p4813_p8 = scmp.ne.s32.totalorder %s3429_s21, 0 }
 0x2eb   :  { %3433 = shalt.err (%p4813_p8)  }
 0x2ec   :  { %3435 = vsyncmov [#allocation2 + $0x4] }
 0x2ef   :  { %s3436_s22 = vpop.sfrf %3435 }
 0x2f0   :  { %p4814_p9 = scmp.ne.s32.totalorder %s3436_s22, 0 }
 0x2f2   :  { %3440 = shalt.err (%p4814_p9)  }
 0x2f3   :  { %3442 = vsyncmov [#allocation2 + $0x5] }
 0x2f6   :  { %s3443_s23 = vpop.sfrf %3442 }
 0x2f7   :  { %p4815_p10 = scmp.ne.s32.totalorder %s3443_s23, 0 }
 0x2f9   :  { %3447 = shalt.err (%p4815_p10)  }
 0x2fa   :  { %3449 = vsyncmov [#allocation2 + $0x6] }
 0x2fd   :  { %s3450_s24 = vpop.sfrf %3449 }
 0x2fe   :  { %p4816_p11 = scmp.ne.s32.totalorder %s3450_s24, 0 }
 0x300   :  { %3454 = shalt.err (%p4816_p11)  }
 0x301   :  { %3456 = vsyncmov [#allocation2 + $0x7] }
 0x304   :  { %s3457_s25 = vpop.sfrf %3456 }
 0x305   :  { %p4817_p12 = scmp.ne.s32.totalorder %s3457_s25, 0 }
 0x307   :  { %3461 = shalt.err (%p4817_p12)  }
 0x308   :  { %3463 = vsyncmov [#allocation2 + $0x8] }
 0x30b   :  { %s3464_s26 = vpop.sfrf %3463 }
 0x30c   :  { %p4818_p13 = scmp.ne.s32.totalorder %s3464_s26, 0 }
 0x30e   :  { %3468 = shalt.err (%p4818_p13)  }
 0x30f   :  { %3470 = vsyncmov [#allocation2 + $0x9] }
 0x312   :  { %s3471_s27 = vpop.sfrf %3470 }
 0x313   :  { %p4819_p0 = scmp.ne.s32.totalorder %s3471_s27, 0 }
 0x315   :  { %3475 = shalt.err (%p4819_p0)  }
 0x316   :  { %3477 = vsyncmov [#allocation2 + $0xa] }
 0x319   :  { %s3478_s28 = vpop.sfrf %3477 }
 0x31a   :  { %p4820_p1 = scmp.ne.s32.totalorder %s3478_s28, 0 }
 0x31c   :  { %3482 = shalt.err (%p4820_p1)  }
 0x31d   :  { %3484 = vsyncmov [#allocation2 + $0xb] }
 0x320   :  { %s3485_s29 = vpop.sfrf %3484 }
 0x321   :  { %p4821_p2 = scmp.ne.s32.totalorder %s3485_s29, 0 }
 0x323   :  { %3489 = shalt.err (%p4821_p2)  }
 0x324   :  { %3491 = vsyncmov [#allocation2 + $0xc] }
 0x327   :  { %s3492_s30 = vpop.sfrf %3491 }
 0x328   :  { %p4822_p3 = scmp.ne.s32.totalorder %s3492_s30, 0 }
 0x32a   :  { %3496 = shalt.err (%p4822_p3)  }
 0x32b   :  { %3498 = vsyncmov [#allocation2 + $0xd] }
 0x32e   :  { %s3499_s3 = vpop.sfrf %3498 }
 0x32f   :  { %p4823_p4 = scmp.ne.s32.totalorder %s3499_s3, 0 }
 0x331   :  { %3503 = shalt.err (%p4823_p4)  }
 0x332   :  { %3505 = vsyncmov [#allocation2 + $0xe] }
 0x335   :  { %s3506_s4 = vpop.sfrf %3505 }
 0x336   :  { %p4824_p5 = scmp.ne.s32.totalorder %s3506_s4, 0 }
 0x338   :  { %3510 = shalt.err (%p4824_p5)  }
 0x339   :  { %3512 = vsyncmov [#allocation2 + $0xf] }
 0x33c   :  { %s3513_s5 = vpop.sfrf %3512 }
 0x33d   :  { %p4825_p6 = scmp.ne.s32.totalorder %s3513_s5, 0 }
 0x33f   :  { %3517 = shalt.err (%p4825_p6)  }
 0x340   :  { %3519 = vsyncmov [#allocation2 + $0x10] }
 0x343   :  { %s3520_s6 = vpop.sfrf %3519 }
 0x344   :  { %p4826_p7 = scmp.ne.s32.totalorder %s3520_s6, 0 }
 0x346   :  { %3524 = shalt.err (%p4826_p7)  }
 0x347   :  { %3526 = vsyncmov [#allocation2 + $0x11] }
 0x34a   :  { %s3527_s7 = vpop.sfrf %3526 }
 0x34b   :  { %p4827_p8 = scmp.ne.s32.totalorder %s3527_s7, 0 }
 0x34d   :  { %3531 = shalt.err (%p4827_p8)  }
 0x34e   :  { %3533 = vsyncmov [#allocation2 + $0x12] }
 0x351   :  { %s3534_s8 = vpop.sfrf %3533 }
 0x352   :  { %p4828_p9 = scmp.ne.s32.totalorder %s3534_s8, 0 }
 0x354   :  { %3538 = shalt.err (%p4828_p9)  }
 0x355   :  { %3540 = vsyncmov [#allocation2 + $0x13] }
 0x358   :  { %s3541_s9 = vpop.sfrf %3540 }
 0x359   :  { %p4829_p10 = scmp.ne.s32.totalorder %s3541_s9, 0 }
 0x35b   :  { %3545 = shalt.err (%p4829_p10)  }
 0x35c   :  { %3547 = vsyncmov [#allocation2 + $0x14] }
 0x35f   :  { %s3548_s10 = vpop.sfrf %3547 }
 0x360   :  { %p4830_p11 = scmp.ne.s32.totalorder %s3548_s10, 0 }
 0x362   :  { %3552 = shalt.err (%p4830_p11)  }
 0x363   :  { %3554 = vsyncmov [#allocation2 + $0x15] }
 0x366   :  { %s3555_s11 = vpop.sfrf %3554 }
 0x367   :  { %p4831_p12 = scmp.ne.s32.totalorder %s3555_s11, 0 }
 0x369   :  { %3559 = shalt.err (%p4831_p12)  }
 0x36a   :  { %3561 = vsyncmov [#allocation2 + $0x16] }
 0x36d   :  { %s3562_s12 = vpop.sfrf %3561 }
 0x36e   :  { %p4832_p13 = scmp.ne.s32.totalorder %s3562_s12, 0 }
 0x370   :  { %3566 = shalt.err (%p4832_p13)  }
 0x371   :  { %3568 = vsyncmov [#allocation2 + $0x17] }
 0x374   :  { %s3569_s13 = vpop.sfrf %3568 }
 0x375   :  { %p4833_p0 = scmp.ne.s32.totalorder %s3569_s13, 0 }
 0x377   :  { %3573 = shalt.err (%p4833_p0)  }
 0x378   :  { %3575 = vsyncmov [#allocation2 + $0x18] }
 0x37b   :  { %s3576_s14 = vpop.sfrf %3575 }
 0x37c   :  { %p4834_p1 = scmp.ne.s32.totalorder %s3576_s14, 0 }
 0x37e   :  { %3580 = shalt.err (%p4834_p1)  }
 0x37f   :  { %3582 = vsyncmov [#allocation2 + $0x19] }
 0x382   :  { %s3583_s15 = vpop.sfrf %3582 }
 0x383   :  { %p4835_p2 = scmp.ne.s32.totalorder %s3583_s15, 0 }
 0x385   :  { %3587 = shalt.err (%p4835_p2)  }
 0x386   :  { %3589 = vsyncmov [#allocation2 + $0x1a] }
 0x389   :  { %s3590_s16 = vpop.sfrf %3589 }
 0x38a   :  { %p4836_p3 = scmp.ne.s32.totalorder %s3590_s16, 0 }
 0x38c   :  { %3594 = shalt.err (%p4836_p3)  }
 0x38d   :  { %3596 = vsyncmov [#allocation2 + $0x1b] }
 0x390   :  { %s3597_s17 = vpop.sfrf %3596 }
 0x391   :  { %p4837_p4 = scmp.ne.s32.totalorder %s3597_s17, 0 }
 0x393   :  { %3601 = shalt.err (%p4837_p4)  }
 0x394   :  { %3603 = vsyncmov [#allocation2 + $0x1c] }
 0x397   :  { %s3604_s0 = vpop.sfrf %3603 }
 0x398   :  { %p4838_p5 = scmp.ne.s32.totalorder %s3604_s0, 0 }
 0x39a   :  { %3608 = shalt.err (%p4838_p5)  }
 0x39b   :  { %3610 = vsyncmov [#allocation2 + $0x1d] }
 0x39e   :  { %s3611_s18 = vpop.sfrf %3610 }
 0x39f   :  { %p4839_p6 = scmp.ne.s32.totalorder %s3611_s18, 0 }
 0x3a1   :  { %3615 = shalt.err (%p4839_p6)  }
 0x3a2   :  { %3617 = vsyncmov [#allocation2 + $0x1e] }
 0x3a5   :  { %s3618_s19 = vpop.sfrf %3617 }
 0x3a6   :  { %p4840_p7 = scmp.ne.s32.totalorder %s3618_s19, 0 }
 0x3a8   :  { %3622 = shalt.err (%p4840_p7)  }
 0x3a9   :  { %3624 = vsyncmov [#allocation2 + $0x1f] }
 0x3ac   :  { %s3625_s1 = vpop.sfrf %3624 }
 0x3ad   :  { %p4841_p8 = scmp.ne.s32.totalorder %s3625_s1, 0 }
 0x3af   :  { %3629 = shalt.err (%p4841_p8)  }
 0x3b0   :  { %3631 = vsyncmov [#allocation2 + $0x20] }
 0x3b3   :  { %s3632_s2 = vpop.sfrf %3631 }
 0x3b4   :  { %p4842_p9 = scmp.ne.s32.totalorder %s3632_s2, 0 }
 0x3b6   :  { %3636 = shalt.err (%p4842_p9)  }
 0x3b7   :  { %3638 = vsyncmov [#allocation2 + $0x21] }
 0x3ba   :  { %s3639_s20 = vpop.sfrf %3638 }
 0x3bb   :  { %p4843_p10 = scmp.ne.s32.totalorder %s3639_s20, 0 }
 0x3bd   :  { %3643 = shalt.err (%p4843_p10)  }
 0x3be   :  { %3645 = vsyncmov [#allocation2 + $0x22] }
 0x3c1   :  { %s3646_s21 = vpop.sfrf %3645 }
 0x3c2   :  { %p4844_p11 = scmp.ne.s32.totalorder %s3646_s21, 0 }
 0x3c4   :  { %3650 = shalt.err (%p4844_p11)  }
 0x3c5   :  { %3652 = vsyncmov [#allocation2 + $0x23] }
 0x3c8   :  { %s3653_s22 = vpop.sfrf %3652 }
 0x3c9   :  { %p4845_p12 = scmp.ne.s32.totalorder %s3653_s22, 0 }
 0x3cb   :  { %3657 = shalt.err (%p4845_p12)  }
 0x3cc   :  { %3659 = vsyncmov [#allocation2 + $0x24] }
 0x3cf   :  { %s3660_s23 = vpop.sfrf %3659 }
 0x3d0   :  { %p4846_p13 = scmp.ne.s32.totalorder %s3660_s23, 0 }
 0x3d2   :  { %3664 = shalt.err (%p4846_p13)  }
 0x3d3   :  { %3666 = vsyncmov [#allocation2 + $0x25] }
 0x3d6   :  { %s3667_s24 = vpop.sfrf %3666 }
 0x3d7   :  { %p4847_p0 = scmp.ne.s32.totalorder %s3667_s24, 0 }
 0x3d9   :  { %3671 = shalt.err (%p4847_p0)  }
 0x3da   :  { %3673 = vsyncmov [#allocation2 + $0x26] }
 0x3dd   :  { %s3674_s25 = vpop.sfrf %3673 }
 0x3de   :  { %p4848_p1 = scmp.ne.s32.totalorder %s3674_s25, 0 }
 0x3e0   :  { %3678 = shalt.err (%p4848_p1)  }
 0x3e1   :  { %3680 = vsyncmov [#allocation2 + $0x27] }
 0x3e4   :  { %s3681_s26 = vpop.sfrf %3680 }
 0x3e5   :  { %p4849_p2 = scmp.ne.s32.totalorder %s3681_s26, 0 }
 0x3e7   :  { %3685 = shalt.err (%p4849_p2)  }
 0x3e8   :  { %3687 = vsyncmov [#allocation2 + $0x28] }
 0x3eb   :  { %s3688_s27 = vpop.sfrf %3687 }
 0x3ec   :  { %p4850_p3 = scmp.ne.s32.totalorder %s3688_s27, 0 }
 0x3ee   :  { %3692 = shalt.err (%p4850_p3)  }
 0x3ef   :  { %3694 = vsyncmov [#allocation2 + $0x29] }
 0x3f2   :  { %s3695_s28 = vpop.sfrf %3694 }
 0x3f3   :  { %p4851_p4 = scmp.ne.s32.totalorder %s3695_s28, 0 }
 0x3f5   :  { %3699 = shalt.err (%p4851_p4)  }
 0x3f6   :  { %3701 = vsyncmov [#allocation2 + $0x2a] }
 0x3f9   :  { %s3702_s29 = vpop.sfrf %3701 }
 0x3fa   :  { %p4852_p5 = scmp.ne.s32.totalorder %s3702_s29, 0 }
 0x3fc   :  { %3706 = shalt.err (%p4852_p5)  }
 0x3fd   :  { %3708 = vsyncmov [#allocation2 + $0x2b] }
 0x400   :  { %s3709_s30 = vpop.sfrf %3708 }
 0x401   :  { %p4853_p6 = scmp.ne.s32.totalorder %s3709_s30, 0 }
 0x403   :  { %3713 = shalt.err (%p4853_p6)  }
 0x404   :  { %3715 = vsyncmov [#allocation2 + $0x2c] }
 0x407   :  { %s3716_s3 = vpop.sfrf %3715 }
 0x408   :  { %p4854_p7 = scmp.ne.s32.totalorder %s3716_s3, 0 }
 0x40a   :  { %3720 = shalt.err (%p4854_p7)  }
 0x40b   :  { %3722 = vsyncmov [#allocation2 + $0x2d] }
 0x40e   :  { %s3723_s4 = vpop.sfrf %3722 }
 0x40f   :  { %p4855_p8 = scmp.ne.s32.totalorder %s3723_s4, 0 }
 0x411   :  { %3727 = shalt.err (%p4855_p8)  }
 0x412   :  { %3729 = vsyncmov [#allocation2 + $0x2e] }
 0x415   :  { %s3730_s5 = vpop.sfrf %3729 }
 0x416   :  { %p4856_p9 = scmp.ne.s32.totalorder %s3730_s5, 0 }
 0x418   :  { %3734 = shalt.err (%p4856_p9)  }
 0x419   :  { %3736 = vsyncmov [#allocation2 + $0x2f] }
 0x41c   :  { %s3737_s6 = vpop.sfrf %3736 }
 0x41d   :  { %p4857_p10 = scmp.ne.s32.totalorder %s3737_s6, 0 }
 0x41f   :  { %3741 = shalt.err (%p4857_p10)  }
 0x420   :  { %3743 = vsyncmov [#allocation2 + $0x30] }
 0x423   :  { %s3744_s7 = vpop.sfrf %3743 }
 0x424   :  { %p4858_p11 = scmp.ne.s32.totalorder %s3744_s7, 0 }
 0x426   :  { %3748 = shalt.err (%p4858_p11)  }
 0x427   :  { %3750 = vsyncmov [#allocation2 + $0x31] }
 0x42a   :  { %s3751_s8 = vpop.sfrf %3750 }
 0x42b   :  { %p4859_p12 = scmp.ne.s32.totalorder %s3751_s8, 0 }
 0x42d   :  { %3755 = shalt.err (%p4859_p12)  }
 0x42e   :  { %3757 = vsyncmov [#allocation2 + $0x32] }
 0x431   :  { %s3758_s9 = vpop.sfrf %3757 }
 0x432   :  { %p4860_p13 = scmp.ne.s32.totalorder %s3758_s9, 0 }
 0x434   :  { %3762 = shalt.err (%p4860_p13)  }
 0x435   :  { %3764 = vsyncmov [#allocation2 + $0x33] }
 0x438   :  { %s3765_s10 = vpop.sfrf %3764 }
 0x439   :  { %p4861_p0 = scmp.ne.s32.totalorder %s3765_s10, 0 }
 0x43b   :  { %3769 = shalt.err (%p4861_p0)  }
 0x43c   :  { %3771 = vsyncmov [#allocation2 + $0x34] }
 0x43f   :  { %s3772_s11 = vpop.sfrf %3771 }
 0x440   :  { %p4862_p1 = scmp.ne.s32.totalorder %s3772_s11, 0 }
 0x442   :  { %3776 = shalt.err (%p4862_p1)  }
 0x443   :  { %3778 = vsyncmov [#allocation2 + $0x35] }
 0x446   :  { %s3779_s12 = vpop.sfrf %3778 }
 0x447   :  { %p4863_p2 = scmp.ne.s32.totalorder %s3779_s12, 0 }
 0x449   :  { %3783 = shalt.err (%p4863_p2)  }
 0x44a   :  { %3785 = vsyncmov [#allocation2 + $0x36] }
 0x44d   :  { %s3786_s13 = vpop.sfrf %3785 }
 0x44e   :  { %p4864_p3 = scmp.ne.s32.totalorder %s3786_s13, 0 }
 0x450   :  { %3790 = shalt.err (%p4864_p3)  }
 0x451   :  { %3792 = vsyncmov [#allocation2 + $0x37] }
 0x454   :  { %s3793_s14 = vpop.sfrf %3792 }
 0x455   :  { %p4865_p4 = scmp.ne.s32.totalorder %s3793_s14, 0 }
 0x457   :  { %3797 = shalt.err (%p4865_p4)  }
 0x458   :  { %3799 = vsyncmov [#allocation2 + $0x38] }
 0x45b   :  { %s3800_s15 = vpop.sfrf %3799 }
 0x45c   :  { %p4866_p5 = scmp.ne.s32.totalorder %s3800_s15, 0 }
 0x45e   :  { %3804 = shalt.err (%p4866_p5)  }
 0x45f   :  { %3806 = vsyncmov [#allocation2 + $0x39] }
 0x462   :  { %s3807_s16 = vpop.sfrf %3806 }
 0x463   :  { %p4867_p6 = scmp.ne.s32.totalorder %s3807_s16, 0 }
 0x465   :  { %3811 = shalt.err (%p4867_p6)  }
 0x466   :  { %3813 = vsyncmov [#allocation2 + $0x3a] }
 0x469   :  { %s3814_s17 = vpop.sfrf %3813 }
 0x46a   :  { %p4868_p7 = scmp.ne.s32.totalorder %s3814_s17, 0 }
 0x46c   :  { %3818 = shalt.err (%p4868_p7)  }
 0x46d   :  { %3820 = vsyncmov [#allocation2 + $0x3b] }
 0x470   :  { %s3821_s0 = vpop.sfrf %3820 }
 0x471   :  { %p4869_p8 = scmp.ne.s32.totalorder %s3821_s0, 0 }
 0x473   :  { %3825 = shalt.err (%p4869_p8)  }
 0x474   :  { %3827 = vsyncmov [#allocation2 + $0x3c] }
 0x477   :  { %s3828_s18 = vpop.sfrf %3827 }
 0x478   :  { %p4870_p9 = scmp.ne.s32.totalorder %s3828_s18, 0 }
 0x47a   :  { %3832 = shalt.err (%p4870_p9)  }
 0x47b   :  { %3834 = vsyncmov [#allocation2 + $0x3d] }
 0x47e   :  { %s3835_s19 = vpop.sfrf %3834 }
 0x47f   :  { %p4871_p10 = scmp.ne.s32.totalorder %s3835_s19, 0 }
 0x481   :  { %3839 = shalt.err (%p4871_p10)  }
 0x482   :  { %3841 = vsyncmov [#allocation2 + $0x3e] }
 0x485   :  { %s3842_s1 = vpop.sfrf %3841 }
 0x486   :  { %p4872_p11 = scmp.ne.s32.totalorder %s3842_s1, 0 }
 0x488   :  { %3846 = shalt.err (%p4872_p11)  }
 0x489   :  { %3848 = vsyncmov [#allocation2 + $0x3f] }
 0x48c   :  { %s3849_s2 = vpop.sfrf %3848 }
 0x48d   :  { %p4873_p12 = scmp.ne.s32.totalorder %s3849_s2, 0 }
 0x48f   :  { %3853 = shalt.err (%p4873_p12)  }

</bundles_post_ra>
